<compile_context>
chip_gen: v5e
topology: v5e:2x2
jax: 0.10.0
libtpu: 0.0.40
codegen_flags: <defaults>
</compile_context>

<pallas_src>
import functools
import math

import jax
import jax.numpy as jnp
from jax.experimental import pallas as pl
from jax.experimental.pallas import tpu as pltpu

# ----------------------------- configuration ------------------------------
BATCH = 1
IMG = 128                       # hard-coded by ImageEncoder.forward view
SEQ_LEN = 12                    # hard-coded by view([-1, 12, dims])
OUT_SEQ_LEN = 3                 # scaled down from 24
DIMS = 256                      # scaled down from 2048
FF_WIDTH = 512                  # scaled down from 8192
HEADS = 8
ENCODE_BLOCKS = 2               # scaled down from 6
RANGE = 1024.0
CROP_LO, CROP_HI = IMG // 2 - 32, IMG // 2 + 32     # 64x64 center crop
ENC_CHANNELS = [1, 8, 16, 32, 64, 128, 256]         # scaled [1,64,...,2048]
DEC_SPECS = [                                       # (Cin, Cout, k, stride, act)
    (DIMS, 128, 5, 2, "tanh"),
    (128, 64, 5, 2, "tanh"),
    (64, 32, 5, 2, "tanh"),
    (32, 16, 5, 2, "tanh"),
    (16, 8, 5, 2, "tanh"),
    (8, 1, 4, 1, "none"),
]

# matmul tiling knobs
TM_BIG = 512                    # base row tile for big (im2col) matmuls
TM_MAX = 2048                   # grow row tile up to this when K is narrow
X_BLOCK_BYTES = 4 * 1024 * 1024  # target size of the x tile (bf16)
K_FULL_MAX = 8192               # K below this -> single full-K block, no k axis
TK_BIG = 512                    # K tile if K ever exceeds K_FULL_MAX
N_FULL_MAX = 512                # N below this -> single full-N block
VMEM_LIMIT = 32 * 1024 * 1024


def _round_up(x, m):
    return ((x + m - 1) // m) * m


# ------------------------------ Pallas kernels -----------------------------
def _matmul_kernel(x_ref, w_ref, b_ref, o_ref, acc_ref, *, activation, out_scale):
    k = pl.program_id(2)

    @pl.when(k == 0)
    def _():
        acc_ref[...] = jnp.zeros_like(acc_ref)

    acc_ref[...] += jnp.dot(x_ref[...], w_ref[...],
                            preferred_element_type=jnp.float32)

    @pl.when(k == pl.num_programs(2) - 1)
    def _():
        r = acc_ref[...] + b_ref[...]
        if activation == "tanh":
            r = jnp.tanh(r)
        elif activation == "sigmoid_scale":
            r = jax.nn.sigmoid(r) * out_scale
        o_ref[...] = r.astype(o_ref.dtype)


@functools.partial(jax.jit, static_argnames=("activation", "out_scale", "out_dtype"))
def pallas_dense(x, w, b, activation="none", out_scale=1.0, out_dtype=jnp.float32):
    """y = act(x @ w + b).  x:[M,K], w:[K,N], b:[N].  bf16 MXU, f32 epilogue."""
    M, K = x.shape
    N = w.shape[1]

    x = x.astype(jnp.bfloat16)
    w = w.astype(jnp.bfloat16)
    b2 = b.astype(jnp.float32).reshape(1, N)

    # ---- M tiling: single small tile or big ragged tiles (no pad copy) ----
    if M <= TM_BIG:
        tm = _round_up(M, 16)
        if tm != M:
            x = jnp.pad(x, ((0, tm - M), (0, 0)))      # tiny
        out_rows = tm
    else:
        tm = TM_BIG
        # narrow-K im2col matmuls: grow the row tile to amortize per-step cost
        while tm * 2 <= min(TM_MAX, M) and (tm * 2) * K * 2 <= X_BLOCK_BYTES:
            tm *= 2
        out_rows = M                                    # ragged last tile
    grid_m = pl.cdiv(out_rows, tm)

    # ---- K tiling: full-K block for everything in this model ----
    if K <= K_FULL_MAX:
        tk = K
        grid_k = 1
    else:
        tk = TK_BIG
        kp = _round_up(K, tk)
        x = jnp.pad(x, ((0, 0), (0, kp - K)))
        w = jnp.pad(w, ((0, kp - K), (0, 0)))
        grid_k = kp // tk

    # ---- N tiling: full-N block (never padded to 128 for tiny Cout) ----
    if N <= N_FULL_MAX:
        tn = N
        out_cols = N
    else:
        tn = 128
        out_cols = _round_up(N, tn)
        if out_cols != N:
            w = jnp.pad(w, ((0, 0), (0, out_cols - N)))
            b2 = jnp.pad(b2, ((0, 0), (0, out_cols - N)))
    grid_n = out_cols // tn

    out = pl.pallas_call(
        functools.partial(_matmul_kernel, activation=activation,
                          out_scale=out_scale),
        out_shape=jax.ShapeDtypeStruct((out_rows, out_cols), out_dtype),
        grid=(grid_m, grid_n, grid_k),
        in_specs=[
            pl.BlockSpec((tm, tk), lambda i, j, k: (i, k)),
            pl.BlockSpec((tk, tn), lambda i, j, k: (k, j)),
            pl.BlockSpec((1, tn), lambda i, j, k: (0, j)),
        ],
        out_specs=pl.BlockSpec((tm, tn), lambda i, j, k: (i, j)),
        scratch_shapes=[pltpu.VMEM((tm, tn), jnp.float32)],
        compiler_params=pltpu.CompilerParams(
            dimension_semantics=("parallel", "parallel", "arbitrary"),
            vmem_limit_bytes=VMEM_LIMIT),
    )(x, w, b2)
    if out_rows != M or out_cols != N:
        out = out[:M, :N]
    return out


def _add_ln_kernel(x_ref, r_ref, g_ref, b_ref, o_ref, *, eps):
    x = x_ref[...].astype(jnp.float32) + r_ref[...].astype(jnp.float32)
    mu = jnp.mean(x, axis=-1, keepdims=True)
    var = jnp.mean(jnp.square(x - mu), axis=-1, keepdims=True)
    y = (x - mu) * jax.lax.rsqrt(var + eps)
    o_ref[...] = (y * g_ref[...] + b_ref[...]).astype(o_ref.dtype)


@jax.jit
def pallas_add_layernorm(x, res, g, b):
    """LayerNorm(x + res) fused in one kernel (residual + LN)."""
    shape = x.shape
    D = shape[-1]
    x2 = x.reshape(-1, D)
    r2 = res.reshape(-1, D)
    M = x2.shape[0]
    out = pl.pallas_call(
        functools.partial(_add_ln_kernel, eps=1e-5),
        out_shape=jax.ShapeDtypeStruct((M, D), jnp.float32),
        grid=(1,),
        in_specs=[
            pl.BlockSpec((M, D), lambda i: (0, 0)),
            pl.BlockSpec((M, D), lambda i: (0, 0)),
            pl.BlockSpec((1, D), lambda i: (0, 0)),
            pl.BlockSpec((1, D), lambda i: (0, 0)),
        ],
        out_specs=pl.BlockSpec((M, D), lambda i: (0, 0)),
    )(x2, r2, g.reshape(1, D), b.reshape(1, D))
    return out.reshape(shape)


def _attention_kernel(q_ref, k_ref, v_ref, o_ref, *, scale):
    # all heads processed in one launch; shapes [BH, L, Dh] fit a single block.
    q = q_ref[...].astype(jnp.float32)
    k = k_ref[...].astype(jnp.float32)
    v = v_ref[...].astype(jnp.float32)
    s = jnp.einsum("bqd,bkd->bqk", q, k,
                   preferred_element_type=jnp.float32) * scale
    s = s - jnp.max(s, axis=-1, keepdims=True)
    p = jnp.exp(s)
    denom = jnp.sum(p, axis=-1, keepdims=True)
    p = p * pl.reciprocal(denom, approx=True)
    o = jnp.einsum("bqk,bkd->bqd", p, v, preferred_element_type=jnp.float32)
    o_ref[...] = o.astype(o_ref.dtype)


@jax.jit
def pallas_attention(q, k, v):
    """q:[BH,Lq,Dh], k/v:[BH,Lk,Dh] -> softmax(qk^T/sqrt(d)) v, single launch."""
    BH, Lq, Dh = q.shape
    Lk = k.shape[1]
    scale = 1.0 / math.sqrt(Dh)
    return pl.pallas_call(
        functools.partial(_attention_kernel, scale=scale),
        out_shape=jax.ShapeDtypeStruct((BH, Lq, Dh), jnp.float32),
        grid=(1,),
        in_specs=[
            pl.BlockSpec((BH, Lq, Dh), lambda i: (0, 0, 0)),
            pl.BlockSpec((BH, Lk, Dh), lambda i: (0, 0, 0)),
            pl.BlockSpec((BH, Lk, Dh), lambda i: (0, 0, 0)),
        ],
        out_specs=pl.BlockSpec((BH, Lq, Dh), lambda i: (0, 0, 0)),
    )(q, k, v)


# ------------------------- conv glue (NHWC im2col + matmul) -----------------
def _im2col_nhwc(x, kh, kw, stride):
    # x: [N, H, W, C] -> cols: [N*Ho*Wo, kh*kw*C]   feature order: (tap, channel)
    N, H, W, C = x.shape
    Ho = (H - kh) // stride + 1
    Wo = (W - kw) // stride + 1
    patches = []
    for i in range(kh):
        for j in range(kw):
            patches.append(x[:, i:i + (Ho - 1) * stride + 1:stride,
                              j:j + (Wo - 1) * stride + 1:stride, :])
    cols = jnp.stack(patches, axis=3)            # [N, Ho, Wo, kh*kw, C]
    return cols.reshape(N * Ho * Wo, kh * kw * C), Ho, Wo


def conv2d_nhwc(x, w_mat, bias, kh, kw, stride, activation,
                out_scale=1.0, out_dtype=jnp.bfloat16):
    # x NHWC, w_mat [kh*kw*Cin, Cout] -> NHWC
    N = x.shape[0]
    Cout = w_mat.shape[1]
    cols, Ho, Wo = _im2col_nhwc(x, kh, kw, stride)
    y = pallas_dense(cols, w_mat, bias, activation=activation,
                     out_scale=out_scale, out_dtype=out_dtype)
    return y.reshape(N, Ho, Wo, Cout)


def conv_transpose2d_nhwc(x, w_mat, k, stride, activation,
                          out_scale=1.0, crop=None, out_dtype=jnp.bfloat16):
    # ConvTranspose2d(pad=0, bias=False) == dilate(stride) + pad(k-1) + conv(k, s=1)
    # (w_mat stores the equivalent stride-1 conv kernel)
    N, H, W, C = x.shape
    if stride > 1:
        xd = jnp.zeros((N, (H - 1) * stride + 1, (W - 1) * stride + 1, C), x.dtype)
        xd = xd.at[:, ::stride, ::stride, :].set(x)
    else:
        xd = x
    xp = jnp.pad(xd, ((0, 0), (k - 1, k - 1), (k - 1, k - 1), (0, 0)))
    if crop is not None:
        # only compute the output rows/cols [lo, hi): crop the (padded) input
        lo, hi = crop
        xp = xp[:, lo:hi + k - 1, lo:hi + k - 1, :]
    zero_b = jnp.zeros((w_mat.shape[1],), jnp.float32)
    return conv2d_nhwc(xp, w_mat, zero_b, k, k, 1, activation,
                       out_scale=out_scale, out_dtype=out_dtype)


# ------------------------------- model blocks ------------------------------
def multihead_attention(p, q_in, kv_in):
    B, Lq, E = q_in.shape
    Lk = kv_in.shape[1]
    q = pallas_dense(q_in.reshape(B * Lq, E), p["q"]["w"], p["q"]["b"])
    k = pallas_dense(kv_in.reshape(B * Lk, E), p["k"]["w"], p["k"]["b"])
    v = pallas_dense(kv_in.reshape(B * Lk, E), p["v"]["w"], p["v"]["b"])
    dh = E // HEADS
    q = q.reshape(B, Lq, HEADS, dh).transpose(0, 2, 1, 3).reshape(B * HEADS, Lq, dh)
    k = k.reshape(B, Lk, HEADS, dh).transpose(0, 2, 1, 3).reshape(B * HEADS, Lk, dh)
    v = v.reshape(B, Lk, HEADS, dh).transpose(0, 2, 1, 3).reshape(B * HEADS, Lk, dh)
    o = pallas_attention(q, k, v)
    o = o.reshape(B, HEADS, Lq, dh).transpose(0, 2, 1, 3).reshape(B * Lq, E)
    return pallas_dense(o, p["o"]["w"], p["o"]["b"]).reshape(B, Lq, E)


def pwff(p, x):
    B, L, E = x.shape
    h = pallas_dense(x.reshape(B * L, E), p["ff_in"]["w"], p["ff_in"]["b"],
                     activation="tanh")
    h = pallas_dense(h, p["ff_out"]["w"], p["ff_out"]["b"])
    return h.reshape(B, L, E)


@jax.jit
def transformer_encoder_block(p, x):
    a = multihead_attention(p["mha"], x, x)
    x = pallas_add_layernorm(a, x, p["mh_norm"]["g"], p["mh_norm"]["b"])
    f = pwff(p, x)
    x = pallas_add_layernorm(f, x, p["ff_norm"]["g"], p["ff_norm"]["b"])
    return x


@jax.jit
def transformer_decoder_block(p, latents, encoding):
    a = multihead_attention(p["self_mha"], latents, latents)
    x = pallas_add_layernorm(a, latents, p["self_norm"]["g"], p["self_norm"]["b"])
    c = multihead_attention(p["cross_mha"], x, encoding)
    x = pallas_add_layernorm(c, x, p["cross_norm"]["g"], p["cross_norm"]["b"])
    f = pwff(p, x)
    x = pallas_add_layernorm(f, x, p["ff_norm"]["g"], p["ff_norm"]["b"])
    return x


def transformer_forward(p, in_seq):
    B = in_seq.shape[0]
    x = in_seq + p["in_pe"][None]
    for enc in p["encoders"]:
        x = transformer_encoder_block(enc, x)
    encoding = x
    out_array = jnp.tile(p["out_pe"][None], (B, 1, 1))
    for entry_no in range(OUT_SEQ_LEN):
        entry_out = out_array
        for dec in p["decoders"]:
            entry_out = transformer_decoder_block(dec, entry_out, encoding)
        decode_out = entry_out.reshape(B, OUT_SEQ_LEN * DIMS)
        latent = pallas_dense(decode_out, p["lin"]["w"], p["lin"]["b"])
        out_array = out_array.at[:, entry_no, :].add(latent)
    return out_array


@jax.jit
def image_encoder(p, x):
    # x: [B, 12, 128, 128] -> [B*12, 1, 1, DIMS] (NHWC, bf16 activations)
    h = x.reshape(-1, IMG, IMG, 1).astype(jnp.bfloat16)
    n = len(p)
    for i, layer in enumerate(p):
        act = "tanh" if i != n - 1 else "none"
        h = conv2d_nhwc(h, layer["w"], layer["b"], 3, 3, 2, act,
                        out_dtype=jnp.bfloat16)
    return h


@jax.jit
def image_decoder128(weights, x):
    # x: [B*OUT_SEQ, 1, 1, DIMS] bf16 -> [B*OUT_SEQ, 64, 64, 1] f32
    h = x
    last = len(DEC_SPECS) - 1
    for i, ((cin, cout, k, s, act), w) in enumerate(zip(DEC_SPECS, weights)):
        if i == last:
            # fuse sigmoid*RANGE and compute only the 64x64 center crop
            h = conv_transpose2d_nhwc(h, w, k, s, activation="sigmoid_scale",
                                      out_scale=RANGE, crop=(CROP_LO, CROP_HI),
                                      out_dtype=jnp.float32)
        else:
            h = conv_transpose2d_nhwc(h, w, k, s, activation=act,
                                      out_dtype=jnp.bfloat16)
    return h


def attention_conv_forward(params, in_val):
    B = in_val.shape[0]
    x = in_val / RANGE
    enc = image_encoder(params["encoder"], x)               # [B*12, 1, 1, DIMS]
    x = enc.reshape(B, SEQ_LEN, DIMS).astype(jnp.float32)
    x = transformer_forward(params["transformer"], x)       # [B, OUT_SEQ, DIMS]
    lat = x.reshape(B * OUT_SEQ_LEN, 1, 1, DIMS).astype(jnp.bfloat16)
    dec = image_decoder128(params["decoder"], lat)          # [B*OUT_SEQ, 64, 64, 1]
    # crop + sigmoid*RANGE already fused into the last conv epilogue
    return dec.reshape(B, OUT_SEQ_LEN, 64, 64)


# ------------------------------ parameter init ------------------------------
def _linear_init(key, fin, fout):
    s = 1.0 / math.sqrt(fin)
    kw_, kb_ = jax.random.split(key)
    w = jax.random.uniform(kw_, (fin, fout), jnp.float32, -s, s)
    b = jax.random.uniform(kb_, (fout,), jnp.float32, -s, s)
    return {"w": w.astype(jnp.bfloat16), "b": b}


def _ln_init(d):
    return {"g": jnp.ones((d,), jnp.float32), "b": jnp.zeros((d,), jnp.float32)}


def _mha_init(key, dims):
    ks = jax.random.split(key, 4)
    return {"q": _linear_init(ks[0], dims, dims),
            "k": _linear_init(ks[1], dims, dims),
            "v": _linear_init(ks[2], dims, dims),
            "o": _linear_init(ks[3], dims, dims)}


def _enc_block_init(key):
    k1, k2, k3 = jax.random.split(key, 3)
    return {"mha": _mha_init(k1, DIMS), "mh_norm": _ln_init(DIMS),
            "ff_in": _linear_init(k2, DIMS, FF_WIDTH),
            "ff_out": _linear_init(k3, FF_WIDTH, DIMS),
            "ff_norm": _ln_init(DIMS)}


def _dec_block_init(key):
    k1, k2, k3, k4 = jax.random.split(key, 4)
    return {"self_mha": _mha_init(k1, DIMS), "self_norm": _ln_init(DIMS),
            "cross_mha": _mha_init(k2, DIMS), "cross_norm": _ln_init(DIMS),
            "ff_in": _linear_init(k3, DIMS, FF_WIDTH),
            "ff_out": _linear_init(k4, FF_WIDTH, DIMS),
            "ff_norm": _ln_init(DIMS)}


def _generate_pe(seq_len, dims):
    rows = []
    for s in range(seq_len):
        row = []
        for d in range(dims):
            if d % 2 == 0:
                row.append(math.sin(s / 10000.0 ** (d / float(dims))))
            else:
                row.append(math.cos(s / 10000.0 ** ((d - 1) / float(dims))))
        rows.append(row)
    return jnp.array(rows, jnp.float32)


def init_params(key):
    k_enc, k_tr, k_dec = jax.random.split(key, 3)

    # encoder convs (Conv2d bias=True), weights stored as [9*Cin, Cout] bf16
    enc_layers = []
    eks = jax.random.split(k_enc, len(ENC_CHANNELS) - 1)
    for i in range(len(ENC_CHANNELS) - 1):
        cin, cout = ENC_CHANNELS[i], ENC_CHANNELS[i + 1]
        enc_layers.append(_linear_init(eks[i], 9 * cin, cout))

    # transformer
    tks = jax.random.split(k_tr, 2 * ENCODE_BLOCKS + 1)
    transformer = {
        "encoders": [_enc_block_init(tks[i]) for i in range(ENCODE_BLOCKS)],
        "decoders": [_dec_block_init(tks[ENCODE_BLOCKS + i])
                     for i in range(ENCODE_BLOCKS)],
        "lin": _linear_init(tks[-1], OUT_SEQ_LEN * DIMS, DIMS),
        "in_pe": _generate_pe(SEQ_LEN, DIMS),
        "out_pe": _generate_pe(OUT_SEQ_LEN, DIMS),
    }

    # decoder conv-transposes (bias=False), stored as the equivalent stride-1
    # conv kernel in im2col layout [k*k*Cin, Cout] bf16
    dec_layers = []
    dks = jax.random.split(k_dec, len(DEC_SPECS))
    for i, (cin, cout, k, s, act) in enumerate(DEC_SPECS):
        scale = 1.0 / math.sqrt(cin * k * k)
        w = jax.random.uniform(dks[i], (k * k * cin, cout), jnp.float32,
                               -scale, scale)
        dec_layers.append(w.astype(jnp.bfloat16))

    return {"encoder": enc_layers, "transformer": transformer,
            "decoder": dec_layers}


# ---------------------------------- main ------------------------------------
if __name__ == "__main__":
    root = jax.random.PRNGKey(0)
    pkey, xkey = jax.random.split(root)
    params = init_params(pkey)
    # input: batch of 12 grayscale 128x128 frames with values in [0, RANGE)
    in_val = jax.random.uniform(xkey, (BATCH, SEQ_LEN, IMG, IMG),
                                jnp.float32, 0.0, RANGE)
    out = attention_conv_forward(params, in_val)
    out = jax.block_until_ready(out)
    assert out.shape == (BATCH, OUT_SEQ_LEN, 64, 64), out.shape
    assert bool(jnp.all(jnp.isfinite(out)))
    print("KERNEL_OK")
</pallas_src>

<mosaic_0001>
module attributes {stable_mosaic.version = 11 : i64} {
  func.func @_matmul_kernel(%arg0: i32, %arg1: i32, %arg2: i32, %arg3: memref<2048x9xbf16, #tpu.memory_space<vmem>>, %arg4: memref<9x8xbf16, #tpu.memory_space<vmem>>, %arg5: memref<1x8xf32, #tpu.memory_space<vmem>>, %arg6: memref<2048x8xbf16, #tpu.memory_space<vmem>>, %arg7: memref<2048x8xf32, #tpu.memory_space<vmem>>) attributes {dimension_semantics = [#tpu.dimension_semantics<parallel>, #tpu.dimension_semantics<parallel>, #tpu.dimension_semantics<arbitrary>], iteration_bounds = array<i64: 24, 1, 1>, scalar_prefetch = 0 : i64, scratch_operands = 1 : i64, tpu.core_type = #tpu.core_type<tc>, window_params = [{transform_indices = @transform_0, window_bounds = array<i64: 2048, 9>}, {transform_indices = @transform_1, window_bounds = array<i64: 9, 8>}, {transform_indices = @transform_2, window_bounds = array<i64: 1, 8>}, {transform_indices = @transform_3, window_bounds = array<i64: 2048, 8>}]} {
    %c0_i32 = arith.constant 0 : i32
    %0 = arith.cmpi eq, %arg2, %c0_i32 : i32
    %1 = arith.extui %0 : i1 to i32
    %c0_i32_0 = arith.constant 0 : i32
    %2 = arith.cmpi ne, %1, %c0_i32_0 : i32
    scf.if %2 {
      %cst_10 = arith.constant 0.000000e+00 : f32
      %12 = vector.broadcast %cst_10 : f32 to vector<2048x8xf32>
      %c0_11 = arith.constant 0 : index
      %c0_12 = arith.constant 0 : index
      %13 = vector.load %arg7[%c0_11, %c0_12] : memref<2048x8xf32, #tpu.memory_space<vmem>>, vector<2048x8xf32>
      tpu.vector_store %arg7[%c0_11, %c0_12], %12 {strides = array<i32>} : memref<2048x8xf32, #tpu.memory_space<vmem>>, vector<2048x8xf32>,
    } else {
    }
    %c0 = arith.constant 0 : index
    %c0_1 = arith.constant 0 : index
    %3 = vector.load %arg7[%c0, %c0_1] : memref<2048x8xf32, #tpu.memory_space<vmem>>, vector<2048x8xf32>
    %c0_2 = arith.constant 0 : index
    %c0_3 = arith.constant 0 : index
    %4 = vector.load %arg3[%c0_2, %c0_3] : memref<2048x9xbf16, #tpu.memory_space<vmem>>, vector<2048x9xbf16>
    %c0_4 = arith.constant 0 : index
    %c0_5 = arith.constant 0 : index
    %5 = vector.load %arg4[%c0_4, %c0_5] : memref<9x8xbf16, #tpu.memory_space<vmem>>, vector<9x8xbf16>
    %cst = arith.constant dense<0.000000e+00> : vector<2048x8xf32>
    %6 = tpu.matmul %4, %5, %cst {dimension_numbers = #tpu.dot_dimension_numbers<[1], [0], [0], [1], [0, 0, 1, 1], [], []>} : vector<2048x9xbf16>, vector<9x8xbf16>, vector<2048x8xf32> -> vector<2048x8xf32>
    %7 = arith.addf %3, %6 : vector<2048x8xf32>
    %c0_6 = arith.constant 0 : index
    %c0_7 = arith.constant 0 : index
    %8 = vector.load %arg7[%c0_6, %c0_7] : memref<2048x8xf32, #tpu.memory_space<vmem>>, vector<2048x8xf32>
    tpu.vector_store %arg7[%c0_6, %c0_7], %7 {strides = array<i32>} : memref<2048x8xf32, #tpu.memory_space<vmem>>, vector<2048x8xf32>,
    %c0_i32_8 = arith.constant 0 : i32
    %9 = arith.cmpi eq, %arg2, %c0_i32_8 : i32
    %10 = arith.extui %9 : i1 to i32
    %c0_i32_9 = arith.constant 0 : i32
    %11 = arith.cmpi ne, %10, %c0_i32_9 : i32
    scf.if %11 {
      %c0_10 = arith.constant 0 : index
      %c0_11 = arith.constant 0 : index
      %12 = vector.load %arg7[%c0_10, %c0_11] : memref<2048x8xf32, #tpu.memory_space<vmem>>, vector<2048x8xf32>
      %c0_12 = arith.constant 0 : index
      %c0_13 = arith.constant 0 : index
      %13 = vector.load %arg5[%c0_12, %c0_13] : memref<1x8xf32, #tpu.memory_space<vmem>>, vector<1x8xf32>
      %14 = vector.broadcast %13 : vector<1x8xf32> to vector<2048x8xf32>
      %15 = arith.addf %12, %14 : vector<2048x8xf32>
      %16 = math.tanh %15 : vector<2048x8xf32>
      %17 = arith.truncf %16 : vector<2048x8xf32> to vector<2048x8xbf16>
      %c0_14 = arith.constant 0 : index
      %c0_15 = arith.constant 0 : index
      %18 = vector.load %arg6[%c0_14, %c0_15] : memref<2048x8xbf16, #tpu.memory_space<vmem>>, vector<2048x8xbf16>
      tpu.vector_store %arg6[%c0_14, %c0_15], %17 {strides = array<i32>} : memref<2048x8xbf16, #tpu.memory_space<vmem>>, vector<2048x8xbf16>,
    } else {
    }
    return
  }
  func.func @transform_0(%arg0: i32, %arg1: i32, %arg2: i32) -> (i32, i32) {
    %c0_i32 = arith.constant 0 : i32
    return %arg0, %arg2 : i32, i32
  }
  func.func @transform_1(%arg0: i32, %arg1: i32, %arg2: i32) -> (i32, i32) {
    %c0_i32 = arith.constant 0 : i32
    return %arg2, %arg1 : i32, i32
  }
  func.func @transform_2(%arg0: i32, %arg1: i32, %arg2: i32) -> (i32, i32) {
    %c0_i32 = arith.constant 0 : i32
    %c0_i32_0 = arith.constant 0 : i32
    return %c0_i32, %arg1 : i32, i32
  }
  func.func @transform_3(%arg0: i32, %arg1: i32, %arg2: i32) -> (i32, i32) {
    %c0_i32 = arith.constant 0 : i32
    return %arg0, %arg1 : i32, i32
  }
}

</mosaic_0001>

<bundles_post_ra>
// kernel: pallas_dense.1
= control target key start
LH: loop header
LB: loop body
LE: loop exit
PB: predicated region body
PF: predicated region fallthrough
CT: control target
= control target key end

     0   :  { %s6477_s12 = smov 0   ;;  %s6479_s13 = smov 0   ;;  %s9114_s0 = inlined_call_operand.vmem [shape: bf16[47628,9], index: 0, kind: input, shape index: {}]   ;;  %s9115_s1 = inlined_call_operand.vmem [shape: bf16[9,8], index: 1, kind: input, shape index: {}]   ;;  %s9116_s2 = inlined_call_operand.vmem [shape: f32[1,8], index: 2, kind: input, shape index: {}]   ;;  %s9117_s3 = inlined_call_operand.vmem [shape: bf16[47628,8], index: 3, kind: output, shape index: {}]  }
   0x1   :  { %s6481_s14 = smov 0   ;;  %s6483_s15 = smov 0  }
   0x2   :  { %s6485_s16 = smov 0  }
   0x3 LB: > { %s4921_s17 = sadd.s32 4294967295, %s6421_s16   ;;  %s32_s18 = sadd.s32 1, %s6417_s15  ;;  %s6421_s16 = sphi %s6485_s16, %s13_s16   ;;  %s6417_s15 = sphi %s6483_s15, %s9127_s15   ;;  %s6413_s14 = sphi %s6481_s14, %s9126_s14   ;;  %s6409_s13 = sphi %s6479_s13, %s9125_s13   ;;  %s6405_s12 = sphi %s6477_s12, %s9124_s12  }
   0x4   : > { %p34_p0 = scmp.ge.s32.totalorder %s32_s18, 24  ;;  %s123_s19 = sadd.s32 1, %s6409_s13 }
   0x5   : > { %p133_p1 = scmp.ne.s32.totalorder %s6409_s13, %s6405_s12  ;;  %p134_p2 = scmp.eq.s32.totalorder %s4921_s17, 23 }
   0x6   : > { %s9129_s18 = smov (%p34_p0, %s32_s18), 0  ;;  %p4927_p4 = scmp.ge.s32.totalorder %s6421_s16, 1 }
   0x7   : > { %p6509_p3 = por %p134_p2, %p133_p1  ;;  %s118_s21 = ssub.s32 %s6417_s15, %s9129_s18 }
   0x8   : > { %p196_p5 = scmp.lt.s32.totalorder %s6421_s16, 25  ;;  %p121_p6 = scmp.eq.s32.totalorder %s118_s21, 0 }
   0xa   : > { %p197_p7 = pnand %p4927_p4, %p196_p5 }
   0xb   : > { %s6518_s22 = scalar_select %p121_p6, %s6409_s13, %s123_s19  }
   0xc   : > { %200 = sbr.rel (%p197_p7) target bundleno = 864 (0x360), region = 32  ;;  %s6527_s27 = sshll.u32 (!%p197_p7), %s6413_s14, 8 }
   0xd   : > { %p242_p8 = scmp.lt.s32.totalorder (!%p197_p7), %s6527_s27, 5953  ;;  %s234_s8 = sand.u32 (!%p197_p7), 1, %s6405_s12  }
   0xe   : > { %s4928_s9 = sshll.u32 (!%p197_p7), %s234_s8, 10 }
   0xf   : > { %s6736_s10 = scalar_lea.vmem (!%p197_p7), [#allocation3], %s4928_s9  }
  0x11   : > { %v5445_v0 = vld [vmem:[%s9115_s1] sm:$0xf]  ;;  %v5720_v1 = vld [vmem:[%s9115_s1] sm:$0x10]  ;;  %vm2077_vm0 = vcmask 1043456   ;;  %vm2078_vm1 = vcmask 1044480  }
  0x12   : > { %v5446_v2 = vor.u32 %v5720_v1, %v5445_v0  ;;  %v6455_v3 = vmov 65535   ;;  %s243_s28 = scalar_select %p242_p8, %s6527_s27, 5953  ;;  %vm1692_vm2 = vcmask 72704   ;;  %vm276_vm3 = vcmask 64512   ;;  %v6702_v43 = vld [vmem:[%s9116_s2] ss:$0 sm:$0xff] }
  0x13   : > { %v2079_v4 = vsel %vm2077_vm0, 4294967295, %v6455_v3  ;;  %v6456_v31 = vmov 0.0   ;;  %vm4277_vm4 = vcmask 60416   ;;  %s5721_s30 = sshll.u32 (%p6509_p3), %s6413_s14, 10 }
  0x14   : > { %v2080_v5 = vsel %vm2078_vm1, %v2079_v4, 0  ;;  %s4930_s29 = sshll.u32 %s243_s28, 2  ;;  %277 = vst.msk [vmem:[#allocation2] sm:$0xff] %vm276_vm3, %v6456_v31  ;;  %s8974_s6 = scalar_lea.vmem (%p6509_p3), %s9117_s3, %s5721_s30  }
  0x15   : > { %v2082_v6 = vand.u32 %v5446_v2, %v2080_v5  ;;  %s6534_s5 = scalar_lea.vmem %s9114_s0, %s4930_s29  ;;  %278 = vst.msk [vmem:[#allocation2 + $0x8] sm:$0xff] %vm276_vm3, %v6456_v31  ;;  %s4542_s29 = ssub.s32 (%p6509_p3), 5954, %s6527_s27 }
  0x16   : > { %v5592_v7 = vld [vmem:[%s6534_s5] sm:$0xff]  ;;  %v5593_v11 = vld [vmem:[%s6534_s5 + $0x8] sm:$0xff]  ;;  %v5594_v15 = vld [vmem:[%s6534_s5 + $0x10] sm:$0xff]  ;;  %279 = vst.msk [vmem:[#allocation2 + $0x10] sm:$0xff] %vm276_vm3, %v6456_v31  ;;  %p4543_p9 = scmp.lt.s32.totalorder (%p6509_p3), %s4542_s29, 256 }
  0x17   : > { %2091 = vmatpush.bf16.msra.mxu0 %v2082_v6  ;;  %5724 = vmatpush.bf16.msra.mxu1 %v2082_v6  ;;  %v5624_v8 = vld [vmem:[%s6534_s5 + $0x100] sm:$0xff]  ;;  %v5625_v12 = vld [vmem:[%s6534_s5 + $0x108] sm:$0xff]  ;;  %v5626_v16 = vld [vmem:[%s6534_s5 + $0x110] sm:$0xff]  ;;  %280 = vst.msk [vmem:[#allocation2 + $0x18] sm:$0xff] %vm276_vm3, %v6456_v31 }
  0x18   : > { %5725 = vmatpush.bf16.msra.mxu2 %v2082_v6  ;;  %5726 = vmatpush.bf16.msra.mxu3 %v2082_v6  ;;  %v5656_v9 = vld [vmem:[%s6534_s5 + $0x200] sm:$0xff]  ;;  %v5657_v13 = vld [vmem:[%s6534_s5 + $0x208] sm:$0xff]  ;;  %v5658_v17 = vld [vmem:[%s6534_s5 + $0x210] sm:$0xff]  ;;  %281 = vst.msk [vmem:[#allocation2 + $0x20] sm:$0xff] %vm276_vm3, %v6456_v31 }
  0x19   : > { %v5688_v10 = vld [vmem:[%s6534_s5 + $0x300] sm:$0xff]  ;;  %v5689_v14 = vld [vmem:[%s6534_s5 + $0x308] sm:$0xff]  ;;  %v5690_v18 = vld [vmem:[%s6534_s5 + $0x310] sm:$0xff]  ;;  %282 = vst.msk [vmem:[#allocation2 + $0x28] sm:$0xff] %vm276_vm3, %v6456_v31 }
  0x1a   : > { %5447 = vmatmul.msk.bf16.vlgmr.msra.gmra.mxu0 %vm1692_vm2, %v5592_v7  ;;  %5479 = vmatmul.msk.bf16.vlgmr.msra.gmra.mxu1 %vm1692_vm2, %v5624_v8  ;;  %v5595_v19 = vld [vmem:[%s6534_s5 + $0x18] sm:$0xff]  ;;  %v5596_v23 = vld [vmem:[%s6534_s5 + $0x20] sm:$0xff]  ;;  %v5597_v27 = vld [vmem:[%s6534_s5 + $0x28] sm:$0xff]  ;;  %283 = vst.msk [vmem:[#allocation2 + $0x30] sm:$0xff] %vm276_vm3, %v6456_v31 }
  0x1b   : > { %5511 = vmatmul.msk.bf16.vlgmr.msra.gmra.mxu2 %vm1692_vm2, %v5656_v9  ;;  %5543 = vmatmul.msk.bf16.vlgmr.msra.gmra.mxu3 %vm1692_vm2, %v5688_v10  ;;  %v5627_v20 = vld [vmem:[%s6534_s5 + $0x118] sm:$0xff]  ;;  %v5628_v24 = vld [vmem:[%s6534_s5 + $0x120] sm:$0xff]  ;;  %v5629_v28 = vld [vmem:[%s6534_s5 + $0x128] sm:$0xff]  ;;  %284 = vst.msk [vmem:[#allocation2 + $0x38] sm:$0xff] %vm276_vm3, %v6456_v31 }
  0x1c   : > { %v5659_v21 = vld [vmem:[%s6534_s5 + $0x218] sm:$0xff]  ;;  %v5660_v25 = vld [vmem:[%s6534_s5 + $0x220] sm:$0xff]  ;;  %v5661_v29 = vld [vmem:[%s6534_s5 + $0x228] sm:$0xff]  ;;  %285 = vst.msk [vmem:[#allocation2 + $0x40] sm:$0xff] %vm276_vm3, %v6456_v31 }
  0x1d   : > { %v5691_v22 = vld [vmem:[%s6534_s5 + $0x318] sm:$0xff]  ;;  %v5692_v26 = vld [vmem:[%s6534_s5 + $0x320] sm:$0xff]  ;;  %v5693_v30 = vld [vmem:[%s6534_s5 + $0x328] sm:$0xff]  ;;  %286 = vst.msk [vmem:[#allocation2 + $0x48] sm:$0xff] %vm276_vm3, %v6456_v31 }
  0x1e   : > { %v5598_v32 = vld [vmem:[%s6534_s5 + $0x30] sm:$0xff]  ;;  %287 = vst.msk [vmem:[#allocation2 + $0x50] sm:$0xff] %vm276_vm3, %v6456_v31  ;;  %v5599_v36 = vld [vmem:[%s6534_s5 + $0x38] sm:$0xff]  ;;  %v533_v40 = vld [vmem:[#allocation2] sm:$0xff] }
  0x1f   : > { %v5630_v33 = vld [vmem:[%s6534_s5 + $0x130] sm:$0xff]  ;;  %288 = vst.msk [vmem:[#allocation2 + $0x58] sm:$0xff] %vm276_vm3, %v6456_v31  ;;  %v5631_v37 = vld [vmem:[%s6534_s5 + $0x138] sm:$0xff]  ;;  %v5600_v49 = vld [vmem:[%s6534_s5 + $0x40] sm:$0xff] }
  0x20   : > { %v5662_v34 = vld [vmem:[%s6534_s5 + $0x230] sm:$0xff]  ;;  %289 = vst.msk [vmem:[#allocation2 + $0x60] sm:$0xff] %vm276_vm3, %v6456_v31  ;;  %v5663_v38 = vld [vmem:[%s6534_s5 + $0x238] sm:$0xff]  ;;  %v5632_v50 = vld [vmem:[%s6534_s5 + $0x140] sm:$0xff] }
  0x21   : > { %v5694_v35 = vld [vmem:[%s6534_s5 + $0x330] sm:$0xff]  ;;  %290 = vst.msk [vmem:[#allocation2 + $0x68] sm:$0xff] %vm276_vm3, %v6456_v31  ;;  %v5695_v39 = vld [vmem:[%s6534_s5 + $0x338] sm:$0xff]  ;;  %v5664_v51 = vld [vmem:[%s6534_s5 + $0x240] sm:$0xff] }
  0x22   : > { %291 = vst.msk [vmem:[#allocation2 + $0x70] sm:$0xff] %vm276_vm3, %v6456_v31  ;;  %v5696_v52 = vld [vmem:[%s6534_s5 + $0x340] sm:$0xff]  ;;  %v5601_v61 = vld [vmem:[%s6534_s5 + $0x48] sm:$0xff] }
  0x23   : > { %292 = vst.msk [vmem:[#allocation2 + $0x78] sm:$0xff] %vm276_vm3, %v6456_v31  ;;  %v5633_v62 = vld [vmem:[%s6534_s5 + $0x148] sm:$0xff] }
  0x24   : > { %293 = vst.msk [vmem:[#allocation2 + $0x80] sm:$0xff] %vm276_vm3, %v6456_v31  ;;  %v5665_v63 = vld [vmem:[%s6534_s5 + $0x248] sm:$0xff] }
  0x25   : > { %294 = vst.msk [vmem:[#allocation2 + $0x88] sm:$0xff] %vm276_vm3, %v6456_v31  ;;  %v5697_v0 = vld [vmem:[%s6534_s5 + $0x348] sm:$0xff] }
  0x26   : > { %295 = vst.msk [vmem:[#allocation2 + $0x90] sm:$0xff] %vm276_vm3, %v6456_v31 }
  0x27   : > { %296 = vst.msk [vmem:[#allocation2 + $0x98] sm:$0xff] %vm276_vm3, %v6456_v31 }
  0x28   : > { %297 = vst.msk [vmem:[#allocation2 + $0xa0] sm:$0xff] %vm276_vm3, %v6456_v31 }
  0x29   : > { %298 = vst.msk [vmem:[#allocation2 + $0xa8] sm:$0xff] %vm276_vm3, %v6456_v31 }
  0x2a   : > { %5448 = vmatmul.msk.bf16.gmra.mxu0 %vm1692_vm2, %v5593_v11  ;;  %5480 = vmatmul.msk.bf16.gmra.mxu1 %vm1692_vm2, %v5625_v12  ;;  %299 = vst.msk [vmem:[#allocation2 + $0xb0] sm:$0xff] %vm276_vm3, %v6456_v31  ;;  %v5602_v11 = vld [vmem:[%s6534_s5 + $0x50] sm:$0xff] }
  0x2b   : > { %5512 = vmatmul.msk.bf16.gmra.mxu2 %vm1692_vm2, %v5657_v13  ;;  %5544 = vmatmul.msk.bf16.gmra.mxu3 %vm1692_vm2, %v5689_v14  ;;  %300 = vst.msk [vmem:[#allocation2 + $0xb8] sm:$0xff] %vm276_vm3, %v6456_v31  ;;  %v5634_v12 = vld [vmem:[%s6534_s5 + $0x150] sm:$0xff] }
  0x2c   : > { %301 = vst.msk [vmem:[#allocation2 + $0xc0] sm:$0xff] %vm276_vm3, %v6456_v31  ;;  %v5666_v13 = vld [vmem:[%s6534_s5 + $0x250] sm:$0xff] }
  0x2d   : > { %302 = vst.msk [vmem:[#allocation2 + $0xc8] sm:$0xff] %vm276_vm3, %v6456_v31 }
  0x2e   : > { %303 = vst.msk [vmem:[#allocation2 + $0xd0] sm:$0xff] %vm276_vm3, %v6456_v31 }
  0x2f   : > { %304 = vst.msk [vmem:[#allocation2 + $0xd8] sm:$0xff] %vm276_vm3, %v6456_v31 }
  0x30   : > { %305 = vst.msk [vmem:[#allocation2 + $0xe0] sm:$0xff] %vm276_vm3, %v6456_v31 }
  0x31   : > { %306 = vst.msk [vmem:[#allocation2 + $0xe8] sm:$0xff] %vm276_vm3, %v6456_v31 }
  0x32   : > { %307 = vst.msk [vmem:[#allocation2 + $0xf0] sm:$0xff] %vm276_vm3, %v6456_v31 }
  0x33   : > { %308 = vst.msk [vmem:[#allocation2 + $0xf8] sm:$0xff] %vm276_vm3, %v6456_v31 }
  0x34   : > { %309 = vst.msk [vmem:[#allocation2 + $0x100] sm:$0xff] %vm276_vm3, %v6456_v31 }
  0x35   : > { %310 = vst.msk [vmem:[#allocation2 + $0x108] sm:$0xff] %vm276_vm3, %v6456_v31 }
  0x36   : > { %311 = vst.msk [vmem:[#allocation2 + $0x110] sm:$0xff] %vm276_vm3, %v6456_v31 }
  0x37   : > { %312 = vst.msk [vmem:[#allocation2 + $0x118] sm:$0xff] %vm276_vm3, %v6456_v31 }
  0x38   : > { %313 = vst.msk [vmem:[#allocation2 + $0x120] sm:$0xff] %vm276_vm3, %v6456_v31 }
  0x39   : > { %314 = vst.msk [vmem:[#allocation2 + $0x128] sm:$0xff] %vm276_vm3, %v6456_v31 }
  0x3a   : > { %5449 = vmatmul.msk.bf16.gmra.mxu0 %vm1692_vm2, %v5594_v15  ;;  %5481 = vmatmul.msk.bf16.gmra.mxu1 %vm1692_vm2, %v5626_v16  ;;  %315 = vst.msk [vmem:[#allocation2 + $0x130] sm:$0xff] %vm276_vm3, %v6456_v31  ;;  %v5698_v15 = vld [vmem:[%s6534_s5 + $0x350] sm:$0xff] }
  0x3b   : > { %5513 = vmatmul.msk.bf16.gmra.mxu2 %vm1692_vm2, %v5658_v17  ;;  %5545 = vmatmul.msk.bf16.gmra.mxu3 %vm1692_vm2, %v5690_v18  ;;  %316 = vst.msk [vmem:[#allocation2 + $0x138] sm:$0xff] %vm276_vm3, %v6456_v31  ;;  %v534_v17 = vld [vmem:[#allocation2 + $0x8] sm:$0xff] }
  0x3c   : > { %317 = vst.msk [vmem:[#allocation2 + $0x140] sm:$0xff] %vm276_vm3, %v6456_v31 }
  0x3d   : > { %318 = vst.msk [vmem:[#allocation2 + $0x148] sm:$0xff] %vm276_vm3, %v6456_v31 }
  0x3e   : > { %319 = vst.msk [vmem:[#allocation2 + $0x150] sm:$0xff] %vm276_vm3, %v6456_v31 }
  0x3f   : > { %320 = vst.msk [vmem:[#allocation2 + $0x158] sm:$0xff] %vm276_vm3, %v6456_v31 }
  0x40   : > { %321 = vst.msk [vmem:[#allocation2 + $0x160] sm:$0xff] %vm276_vm3, %v6456_v31 }
  0x41   : > { %322 = vst.msk [vmem:[#allocation2 + $0x168] sm:$0xff] %vm276_vm3, %v6456_v31 }
  0x42   : > { %323 = vst.msk [vmem:[#allocation2 + $0x170] sm:$0xff] %vm276_vm3, %v6456_v31 }
  0x43   : > { %324 = vst.msk [vmem:[#allocation2 + $0x178] sm:$0xff] %vm276_vm3, %v6456_v31 }
  0x44   : > { %325 = vst.msk [vmem:[#allocation2 + $0x180] sm:$0xff] %vm276_vm3, %v6456_v31 }
  0x45   : > { %326 = vst.msk [vmem:[#allocation2 + $0x188] sm:$0xff] %vm276_vm3, %v6456_v31 }
  0x46   : > { %327 = vst.msk [vmem:[#allocation2 + $0x190] sm:$0xff] %vm276_vm3, %v6456_v31 }
  0x47   : > { %328 = vst.msk [vmem:[#allocation2 + $0x198] sm:$0xff] %vm276_vm3, %v6456_v31 }
  0x48   : > { %329 = vst.msk [vmem:[#allocation2 + $0x1a0] sm:$0xff] %vm276_vm3, %v6456_v31 }
  0x49   : > { %330 = vst.msk [vmem:[#allocation2 + $0x1a8] sm:$0xff] %vm276_vm3, %v6456_v31 }
  0x4a   : > { %5450 = vmatmul.msk.bf16.gmra.mxu0 %vm1692_vm2, %v5595_v19  ;;  %5482 = vmatmul.msk.bf16.gmra.mxu1 %vm1692_vm2, %v5627_v20  ;;  %331 = vst.msk [vmem:[#allocation2 + $0x1b0] sm:$0xff] %vm276_vm3, %v6456_v31 }
  0x4b   : > { %5514 = vmatmul.msk.bf16.gmra.mxu2 %vm1692_vm2, %v5659_v21  ;;  %5546 = vmatmul.msk.bf16.gmra.mxu3 %vm1692_vm2, %v5691_v22  ;;  %332 = vst.msk [vmem:[#allocation2 + $0x1b8] sm:$0xff] %vm276_vm3, %v6456_v31 }
  0x4c   : > { %333 = vst.msk [vmem:[#allocation2 + $0x1c0] sm:$0xff] %vm276_vm3, %v6456_v31 }
  0x4d   : > { %334 = vst.msk [vmem:[#allocation2 + $0x1c8] sm:$0xff] %vm276_vm3, %v6456_v31 }
  0x4e   : > { %335 = vst.msk [vmem:[#allocation2 + $0x1d0] sm:$0xff] %vm276_vm3, %v6456_v31 }
  0x4f   : > { %336 = vst.msk [vmem:[#allocation2 + $0x1d8] sm:$0xff] %vm276_vm3, %v6456_v31 }
  0x50   : > { %337 = vst.msk [vmem:[#allocation2 + $0x1e0] sm:$0xff] %vm276_vm3, %v6456_v31 }
  0x51   : > { %338 = vst.msk [vmem:[#allocation2 + $0x1e8] sm:$0xff] %vm276_vm3, %v6456_v31 }
  0x52   : > { %339 = vst.msk [vmem:[#allocation2 + $0x1f0] sm:$0xff] %vm276_vm3, %v6456_v31 }
  0x53   : > { %340 = vst.msk [vmem:[#allocation2 + $0x1f8] sm:$0xff] %vm276_vm3, %v6456_v31 }
  0x54   : > { %341 = vst.msk [vmem:[#allocation2 + $0x200] sm:$0xff] %vm276_vm3, %v6456_v31 }
  0x55   : > { %342 = vst.msk [vmem:[#allocation2 + $0x208] sm:$0xff] %vm276_vm3, %v6456_v31 }
  0x56   : > { %343 = vst.msk [vmem:[#allocation2 + $0x210] sm:$0xff] %vm276_vm3, %v6456_v31 }
  0x57   : > { %344 = vst.msk [vmem:[#allocation2 + $0x218] sm:$0xff] %vm276_vm3, %v6456_v31 }
  0x58   : > { %345 = vst.msk [vmem:[#allocation2 + $0x220] sm:$0xff] %vm276_vm3, %v6456_v31 }
  0x59   : > { %346 = vst.msk [vmem:[#allocation2 + $0x228] sm:$0xff] %vm276_vm3, %v6456_v31 }
  0x5a   : > { %5451 = vmatmul.msk.bf16.gmra.mxu0 %vm1692_vm2, %v5596_v23  ;;  %5483 = vmatmul.msk.bf16.gmra.mxu1 %vm1692_vm2, %v5628_v24  ;;  %347 = vst.msk [vmem:[#allocation2 + $0x230] sm:$0xff] %vm276_vm3, %v6456_v31 }
  0x5b   : > { %5515 = vmatmul.msk.bf16.gmra.mxu2 %vm1692_vm2, %v5660_v25  ;;  %5547 = vmatmul.msk.bf16.gmra.mxu3 %vm1692_vm2, %v5692_v26  ;;  %348 = vst.msk [vmem:[#allocation2 + $0x238] sm:$0xff] %vm276_vm3, %v6456_v31  ;;  %v597_v7 = vld [vmem:[#allocation2 + $0x200] sm:$0xff]  ;;  %v535_v25 = vld [vmem:[#allocation2 + $0x10] sm:$0xff] }
  0x5c   : > { %349 = vst.msk [vmem:[#allocation2 + $0x240] sm:$0xff] %vm276_vm3, %v6456_v31  ;;  %v598_v19 = vld [vmem:[#allocation2 + $0x208] sm:$0xff] }
  0x5d   : > { %350 = vst.msk [vmem:[#allocation2 + $0x248] sm:$0xff] %vm276_vm3, %v6456_v31 }
  0x5e   : > { %351 = vst.msk [vmem:[#allocation2 + $0x250] sm:$0xff] %vm276_vm3, %v6456_v31 }
  0x5f   : > { %352 = vst.msk [vmem:[#allocation2 + $0x258] sm:$0xff] %vm276_vm3, %v6456_v31 }
  0x60   : > { %353 = vst.msk [vmem:[#allocation2 + $0x260] sm:$0xff] %vm276_vm3, %v6456_v31 }
  0x61   : > { %354 = vst.msk [vmem:[#allocation2 + $0x268] sm:$0xff] %vm276_vm3, %v6456_v31 }
  0x62   : > { %355 = vst.msk [vmem:[#allocation2 + $0x270] sm:$0xff] %vm276_vm3, %v6456_v31 }
  0x63   : > { %356 = vst.msk [vmem:[#allocation2 + $0x278] sm:$0xff] %vm276_vm3, %v6456_v31 }
  0x64   : > { %357 = vst.msk [vmem:[#allocation2 + $0x280] sm:$0xff] %vm276_vm3, %v6456_v31 }
  0x65   : > { %358 = vst.msk [vmem:[#allocation2 + $0x288] sm:$0xff] %vm276_vm3, %v6456_v31 }
  0x66   : > { %359 = vst.msk [vmem:[#allocation2 + $0x290] sm:$0xff] %vm276_vm3, %v6456_v31 }
  0x67   : > { %360 = vst.msk [vmem:[#allocation2 + $0x298] sm:$0xff] %vm276_vm3, %v6456_v31 }
  0x68   : > { %361 = vst.msk [vmem:[#allocation2 + $0x2a0] sm:$0xff] %vm276_vm3, %v6456_v31 }
  0x69   : > { %362 = vst.msk [vmem:[#allocation2 + $0x2a8] sm:$0xff] %vm276_vm3, %v6456_v31 }
  0x6a   : > { %5452 = vmatmul.msk.bf16.gmra.mxu0 %vm1692_vm2, %v5597_v27  ;;  %5484 = vmatmul.msk.bf16.gmra.mxu1 %vm1692_vm2, %v5629_v28  ;;  %363 = vst.msk [vmem:[#allocation2 + $0x2b0] sm:$0xff] %vm276_vm3, %v6456_v31 }
  0x6b   : > { %5516 = vmatmul.msk.bf16.gmra.mxu2 %vm1692_vm2, %v5661_v29  ;;  %5548 = vmatmul.msk.bf16.gmra.mxu3 %vm1692_vm2, %v5693_v30  ;;  %364 = vst.msk [vmem:[#allocation2 + $0x2b8] sm:$0xff] %vm276_vm3, %v6456_v31  ;;  %v599_v29 = vld [vmem:[#allocation2 + $0x210] sm:$0xff] }
  0x6c   : > { %365 = vst.msk [vmem:[#allocation2 + $0x2c0] sm:$0xff] %vm276_vm3, %v6456_v31 }
  0x6d   : > { %366 = vst.msk [vmem:[#allocation2 + $0x2c8] sm:$0xff] %vm276_vm3, %v6456_v31 }
  0x6e   : > { %367 = vst.msk [vmem:[#allocation2 + $0x2d0] sm:$0xff] %vm276_vm3, %v6456_v31 }
  0x6f   : > { %368 = vst.msk [vmem:[#allocation2 + $0x2d8] sm:$0xff] %vm276_vm3, %v6456_v31 }
  0x70   : > { %369 = vst.msk [vmem:[#allocation2 + $0x2e0] sm:$0xff] %vm276_vm3, %v6456_v31 }
  0x71   : > { %370 = vst.msk [vmem:[#allocation2 + $0x2e8] sm:$0xff] %vm276_vm3, %v6456_v31 }
  0x72   : > { %371 = vst.msk [vmem:[#allocation2 + $0x2f0] sm:$0xff] %vm276_vm3, %v6456_v31 }
  0x73   : > { %372 = vst.msk [vmem:[#allocation2 + $0x2f8] sm:$0xff] %vm276_vm3, %v6456_v31 }
  0x74   : > { %373 = vst.msk [vmem:[#allocation2 + $0x300] sm:$0xff] %vm276_vm3, %v6456_v31 }
  0x75   : > { %374 = vst.msk [vmem:[#allocation2 + $0x308] sm:$0xff] %vm276_vm3, %v6456_v31 }
  0x76   : > { %375 = vst.msk [vmem:[#allocation2 + $0x310] sm:$0xff] %vm276_vm3, %v6456_v31 }
  0x77   : > { %376 = vst.msk [vmem:[#allocation2 + $0x318] sm:$0xff] %vm276_vm3, %v6456_v31 }
  0x78   : > { %377 = vst.msk [vmem:[#allocation2 + $0x320] sm:$0xff] %vm276_vm3, %v6456_v31 }
  0x79   : > { %378 = vst.msk [vmem:[#allocation2 + $0x328] sm:$0xff] %vm276_vm3, %v6456_v31 }
  0x7a   : > { %5453 = vmatmul.msk.bf16.gmra.mxu0 %vm1692_vm2, %v5598_v32  ;;  %5485 = vmatmul.msk.bf16.gmra.mxu1 %vm1692_vm2, %v5630_v33  ;;  %379 = vst.msk [vmem:[#allocation2 + $0x330] sm:$0xff] %vm276_vm3, %v6456_v31 }
  0x7b   : > { %5517 = vmatmul.msk.bf16.gmra.mxu2 %vm1692_vm2, %v5662_v34  ;;  %5549 = vmatmul.msk.bf16.gmra.mxu3 %vm1692_vm2, %v5694_v35  ;;  %380 = vst.msk [vmem:[#allocation2 + $0x338] sm:$0xff] %vm276_vm3, %v6456_v31 }
  0x7c   : > { %381 = vst.msk [vmem:[#allocation2 + $0x340] sm:$0xff] %vm276_vm3, %v6456_v31 }
  0x7d   : > { %382 = vst.msk [vmem:[#allocation2 + $0x348] sm:$0xff] %vm276_vm3, %v6456_v31 }
  0x7e   : > { %383 = vst.msk [vmem:[#allocation2 + $0x350] sm:$0xff] %vm276_vm3, %v6456_v31 }
  0x7f   : > { %384 = vst.msk [vmem:[#allocation2 + $0x358] sm:$0xff] %vm276_vm3, %v6456_v31 }
  0x80   : > { %385 = vst.msk [vmem:[#allocation2 + $0x360] sm:$0xff] %vm276_vm3, %v6456_v31 }
  0x81   : > { %386 = vst.msk [vmem:[#allocation2 + $0x368] sm:$0xff] %vm276_vm3, %v6456_v31 }
  0x82   : > { %387 = vst.msk [vmem:[#allocation2 + $0x370] sm:$0xff] %vm276_vm3, %v6456_v31 }
  0x83   : > { %388 = vst.msk [vmem:[#allocation2 + $0x378] sm:$0xff] %vm276_vm3, %v6456_v31 }
  0x84   : > { %389 = vst.msk [vmem:[#allocation2 + $0x380] sm:$0xff] %vm276_vm3, %v6456_v31 }
  0x85   : > { %390 = vst.msk [vmem:[#allocation2 + $0x388] sm:$0xff] %vm276_vm3, %v6456_v31 }
  0x86   : > { %391 = vst.msk [vmem:[#allocation2 + $0x390] sm:$0xff] %vm276_vm3, %v6456_v31 }
  0x87   : > { %392 = vst.msk [vmem:[#allocation2 + $0x398] sm:$0xff] %vm276_vm3, %v6456_v31 }
  0x88   : > { %393 = vst.msk [vmem:[#allocation2 + $0x3a0] sm:$0xff] %vm276_vm3, %v6456_v31 }
  0x89   : > { %394 = vst.msk [vmem:[#allocation2 + $0x3a8] sm:$0xff] %vm276_vm3, %v6456_v31 }
  0x8a   : > { %5454 = vmatmul.msk.bf16.gmra.mxu0 %vm1692_vm2, %v5599_v36  ;;  %5486 = vmatmul.msk.bf16.gmra.mxu1 %vm1692_vm2, %v5631_v37  ;;  %395 = vst.msk [vmem:[#allocation2 + $0x3b0] sm:$0xff] %vm276_vm3, %v6456_v31  ;;  %v536_v37 = vld [vmem:[#allocation2 + $0x18] sm:$0xff] }
  0x8b   : > { %5518 = vmatmul.msk.bf16.gmra.mxu2 %vm1692_vm2, %v5663_v38  ;;  %5550 = vmatmul.msk.bf16.gmra.mxu3 %vm1692_vm2, %v5695_v39  ;;  %396 = vst.msk [vmem:[#allocation2 + $0x3b8] sm:$0xff] %vm276_vm3, %v6456_v31  ;;  %v600_v39 = vld [vmem:[#allocation2 + $0x218] sm:$0xff] }
  0x8c   : > { %397 = vst.msk [vmem:[#allocation2 + $0x3c0] sm:$0xff] %vm276_vm3, %v6456_v31 }
  0x8d   : > { %398 = vst.msk [vmem:[#allocation2 + $0x3c8] sm:$0xff] %vm276_vm3, %v6456_v31 }
  0x8e   : > { %399 = vst.msk [vmem:[#allocation2 + $0x3d0] sm:$0xff] %vm276_vm3, %v6456_v31 }
  0x8f   : > { %400 = vst.msk [vmem:[#allocation2 + $0x3d8] sm:$0xff] %vm276_vm3, %v6456_v31 }
  0x90   : > { %401 = vst.msk [vmem:[#allocation2 + $0x3e0] sm:$0xff] %vm276_vm3, %v6456_v31 }
  0x91   : > { %402 = vst.msk [vmem:[#allocation2 + $0x3e8] sm:$0xff] %vm276_vm3, %v6456_v31 }
  0x92   : > { %403 = vst.msk [vmem:[#allocation2 + $0x3f0] sm:$0xff] %vm276_vm3, %v6456_v31 }
  0x93   : > { %404 = vst.msk [vmem:[#allocation2 + $0x3f8] sm:$0xff] %vm276_vm3, %v6456_v31 }
  0x94   : > { %405 = vst.msk [vmem:[#allocation2 + $0x400] sm:$0xff] %vm276_vm3, %v6456_v31 }
  0x95   : > { %406 = vst.msk [vmem:[#allocation2 + $0x408] sm:$0xff] %vm276_vm3, %v6456_v31 }
  0x96   : > { %407 = vst.msk [vmem:[#allocation2 + $0x410] sm:$0xff] %vm276_vm3, %v6456_v31 }
  0x97   : > { %v2093_v41 = vpop.f32.mrf.mxu0  ;;  %408 = vst.msk [vmem:[#allocation2 + $0x418] sm:$0xff] %vm276_vm3, %v6456_v31  ;;  %v7044_v48 = vpop.f32.mrf.mxu1 }
  0x98   : > { %v2733_v42 = vadd.f32 %v2093_v41, %v533_v40  ;;  %409 = vst.msk [vmem:[#allocation2 + $0x420] sm:$0xff] %vm276_vm3, %v6456_v31  ;;  %v2797_v16 = vadd.f32 %v7044_v48, %v597_v7 }
  0x99   : > { %410 = vst.msk [vmem:[#allocation2 + $0x428] sm:$0xff] %vm276_vm3, %v6456_v31 }
  0x9a   : > { %2990 = vst.msk [vmem:[#allocation2] sm:$0xff] %vm276_vm3, %v2733_v42  ;;  %5455 = vmatmul.msk.bf16.gmra.mxu0 %vm1692_vm2, %v5600_v49  ;;  %5487 = vmatmul.msk.bf16.gmra.mxu1 %vm1692_vm2, %v5632_v50  ;;  %v537_v49 = vld [vmem:[#allocation2 + $0x20] sm:$0xff] }
  0x9b   : > { %411 = vst.msk [vmem:[#allocation2 + $0x430] sm:$0xff] %vm276_vm3, %v6456_v31  ;;  %5519 = vmatmul.msk.bf16.gmra.mxu2 %vm1692_vm2, %v5664_v51  ;;  %5551 = vmatmul.msk.bf16.gmra.mxu3 %vm1692_vm2, %v5696_v52  ;;  %v661_v8 = vld [vmem:[#allocation2 + $0x400] sm:$0xff] }
  0x9c   : > { %412 = vst.msk [vmem:[#allocation2 + $0x438] sm:$0xff] %vm276_vm3, %v6456_v31  ;;  %v662_v21 = vld [vmem:[#allocation2 + $0x408] sm:$0xff] }
  0x9d   : > { %413 = vst.msk [vmem:[#allocation2 + $0x440] sm:$0xff] %vm276_vm3, %v6456_v31 }
  0x9e   : > { %414 = vst.msk [vmem:[#allocation2 + $0x448] sm:$0xff] %vm276_vm3, %v6456_v31  ;;  %v7066_v53 = vpop.f32.mrf.mxu2  ;;  %v7070_v54 = vpop.f32.mrf.mxu3  ;;  %v664_v41 = vld [vmem:[#allocation2 + $0x418] sm:$0xff] }
  0x9f   : > { %415 = vst.msk [vmem:[#allocation2 + $0x450] sm:$0xff] %vm276_vm3, %v6456_v31  ;;  %v7078_v55 = vpop.f32.mrf.mxu0  ;;  %v7080_v56 = vpop.f32.mrf.mxu1  ;;  %v2861_v18 = vadd.f32 %v7066_v53, %v661_v8  ;;  %v601_v53 = vld [vmem:[#allocation2 + $0x220] sm:$0xff]  ;;  %v5603_v8 = vld [vmem:[%s6534_s5 + $0x58] sm:$0xff] }
  0xa0   : > { %416 = vst.msk [vmem:[#allocation2 + $0x458] sm:$0xff] %vm276_vm3, %v6456_v31  ;;  %v2734_v22 = vadd.f32 %v7078_v55, %v534_v17  ;;  %v2798_v24 = vadd.f32 %v7080_v56, %v598_v19 }
  0xa1   : > { %v3249_v44 = vld [vmem:[#allocation2] sm:$0xff]  ;;  %417 = vst.msk [vmem:[#allocation2 + $0x460] sm:$0xff] %vm276_vm3, %v6456_v31 }
  0xa2   : > { %v3509_v45 = vadd.f32 %v6702_v43, %v3249_v44  ;;  %418 = vst.msk [vmem:[#allocation2 + $0x468] sm:$0xff] %vm276_vm3, %v6456_v31 }
  0xa3   : > { %419 = vst.msk [vmem:[#allocation2 + $0x470] sm:$0xff] %vm276_vm3, %v6456_v31 }
  0xa4   : > { %5834 = vtanh.f32 %v3509_v45  ;;  %420 = vst.msk [vmem:[#allocation2 + $0x478] sm:$0xff] %vm276_vm3, %v6456_v31 }
  0xa5   : > { %421 = vst.msk [vmem:[#allocation2 + $0x480] sm:$0xff] %vm276_vm3, %v6456_v31 }
  0xa6   : > { %422 = vst.msk [vmem:[#allocation2 + $0x488] sm:$0xff] %vm276_vm3, %v6456_v31  ;;  %v7094_v57 = vpop.f32.mrf.mxu2  ;;  %v7096_v58 = vpop.f32.mrf.mxu3 }
  0xa7   : > { %423 = vst.msk [vmem:[#allocation2 + $0x490] sm:$0xff] %vm276_vm3, %v6456_v31  ;;  %v7102_v59 = vpop.f32.mrf.mxu0  ;;  %v7104_v60 = vpop.f32.mrf.mxu1  ;;  %v2862_v28 = vadd.f32 %v7094_v57, %v662_v21  ;;  %v665_v57 = vld [vmem:[#allocation2 + $0x420] sm:$0xff] }
  0xa8   : > { %424 = vst.msk [vmem:[#allocation2 + $0x498] sm:$0xff] %vm276_vm3, %v6456_v31  ;;  %v2735_v33 = vadd.f32 %v7102_v59, %v535_v25  ;;  %v2799_v36 = vadd.f32 %v7104_v60, %v599_v29 }
  0xa9   : > { %425 = vst.msk [vmem:[#allocation2 + $0x4a0] sm:$0xff] %vm276_vm3, %v6456_v31 }
  0xaa   : > { %v5835_v46 = vpop.eup %5834  ;;  %426 = vst.msk [vmem:[#allocation2 + $0x4a8] sm:$0xff] %vm276_vm3, %v6456_v31  ;;  %5456 = vmatmul.msk.bf16.gmra.mxu0 %vm1692_vm2, %v5601_v61  ;;  %5488 = vmatmul.msk.bf16.gmra.mxu1 %vm1692_vm2, %v5633_v62 }
  0xab   : > { %v4021_v47 = vpack.c.bf16 %v5835_v46, %v5835_v46  ;;  %427 = vst.msk [vmem:[#allocation2 + $0x4b0] sm:$0xff] %vm276_vm3, %v6456_v31  ;;  %5520 = vmatmul.msk.bf16.gmra.mxu2 %vm1692_vm2, %v5665_v63  ;;  %5552 = vmatmul.msk.bf16.gmra.mxu3 %vm1692_vm2, %v5697_v0 }
  0xac   : > { %428 = vst.msk [vmem:[#allocation2 + $0x4b8] sm:$0xff] %vm276_vm3, %v6456_v31 }
  0xad   : > { %4278 = vst.msk [vmem:[%s6736_s10] sm:$0xf] %vm4277_vm4, %v4021_v47 }
  0xae   : > { %429 = vst.msk [vmem:[#allocation2 + $0x4c0] sm:$0xff] %vm276_vm3, %v6456_v31  ;;  %v7126_v1 = vpop.f32.mrf.mxu2  ;;  %v7128_v2 = vpop.f32.mrf.mxu3 }
  0xaf   : > { %430 = vst.msk [vmem:[#allocation2 + $0x4c8] sm:$0xff] %vm276_vm3, %v6456_v31  ;;  %v7134_v3 = vpop.f32.mrf.mxu0  ;;  %v7136_v4 = vpop.f32.mrf.mxu1 }
  0xb0   : > { %431 = vst.msk [vmem:[#allocation2 + $0x4d0] sm:$0xff] %vm276_vm3, %v6456_v31  ;;  %v2736_v44 = vadd.f32 %v7134_v3, %v536_v37  ;;  %v2800_v48 = vadd.f32 %v7136_v4, %v600_v39 }
  0xb1   : > { %432 = vst.msk [vmem:[#allocation2 + $0x4d8] sm:$0xff] %vm276_vm3, %v6456_v31 }
  0xb2   : > { %433 = vst.msk [vmem:[#allocation2 + $0x4e0] sm:$0xff] %vm276_vm3, %v6456_v31 }
  0xb3   : > { %434 = vst.msk [vmem:[#allocation2 + $0x4e8] sm:$0xff] %vm276_vm3, %v6456_v31 }
  0xb4   : > { %435 = vst.msk [vmem:[#allocation2 + $0x4f0] sm:$0xff] %vm276_vm3, %v6456_v31 }
  0xb5   : > { %436 = vst.msk [vmem:[#allocation2 + $0x4f8] sm:$0xff] %vm276_vm3, %v6456_v31 }
  0xb6   : > { %437 = vst.msk [vmem:[#allocation2 + $0x500] sm:$0xff] %vm276_vm3, %v6456_v31  ;;  %v7150_v5 = vpop.f32.mrf.mxu2  ;;  %v7152_v6 = vpop.f32.mrf.mxu3 }
  0xb7   : > { %438 = vst.msk [vmem:[#allocation2 + $0x508] sm:$0xff] %vm276_vm3, %v6456_v31  ;;  %v7158_v9 = vpop.f32.mrf.mxu0  ;;  %v7160_v10 = vpop.f32.mrf.mxu1  ;;  %v2864_v52 = vadd.f32 %v7150_v5, %v664_v41 }
  0xb8   : > { %439 = vst.msk [vmem:[#allocation2 + $0x510] sm:$0xff] %vm276_vm3, %v6456_v31  ;;  %v2737_v62 = vadd.f32 %v7158_v9, %v537_v49  ;;  %v5635_v9 = vld [vmem:[%s6534_s5 + $0x158] sm:$0xff] }
  0xb9   : > { %440 = vst.msk [vmem:[#allocation2 + $0x518] sm:$0xff] %vm276_vm3, %v6456_v31 }
  0xba   : > { %441 = vst.msk [vmem:[#allocation2 + $0x520] sm:$0xff] %vm276_vm3, %v6456_v31  ;;  %5457 = vmatmul.msk.bf16.gmra.mxu0 %vm1692_vm2, %v5602_v11  ;;  %5489 = vmatmul.msk.bf16.gmra.mxu1 %vm1692_vm2, %v5634_v12 }
  0xbb   : > { %442 = vst.msk [vmem:[#allocation2 + $0x528] sm:$0xff] %vm276_vm3, %v6456_v31  ;;  %5521 = vmatmul.msk.bf16.gmra.mxu2 %vm1692_vm2, %v5666_v13  ;;  %5553 = vmatmul.msk.bf16.gmra.mxu3 %vm1692_vm2, %v5698_v15  ;;  %v5667_v13 = vld [vmem:[%s6534_s5 + $0x258] sm:$0xff] }
  0xbc   : > { %443 = vst.msk [vmem:[#allocation2 + $0x530] sm:$0xff] %vm276_vm3, %v6456_v31 }
  0xbd   : > { %444 = vst.msk [vmem:[#allocation2 + $0x538] sm:$0xff] %vm276_vm3, %v6456_v31 }
  0xbe   : > { %445 = vst.msk [vmem:[#allocation2 + $0x540] sm:$0xff] %vm276_vm3, %v6456_v31  ;;  %v2423_v26 = vpop.f32.mrf.mxu2  ;;  %v7188_v27 = vpop.f32.mrf.mxu3 }
  0xbf   : > { %446 = vst.msk [vmem:[#allocation2 + $0x548] sm:$0xff] %vm276_vm3, %v6456_v31  ;;  %v7194_v32 = vpop.f32.mrf.mxu0  ;;  %v7198_v35 = vpop.f32.mrf.mxu1  ;;  %v2865_v7 = vadd.f32 %v2423_v26, %v665_v57 }
  0xc0   : > { %447 = vst.msk [vmem:[#allocation2 + $0x550] sm:$0xff] %vm276_vm3, %v6456_v31 }
  0xc1   : > { %448 = vst.msk [vmem:[#allocation2 + $0x558] sm:$0xff] %vm276_vm3, %v6456_v31 }
  0xc2   : > { %449 = vst.msk [vmem:[#allocation2 + $0x560] sm:$0xff] %vm276_vm3, %v6456_v31 }
  0xc3   : > { %450 = vst.msk [vmem:[#allocation2 + $0x568] sm:$0xff] %vm276_vm3, %v6456_v31 }
  0xc4   : > { %451 = vst.msk [vmem:[#allocation2 + $0x570] sm:$0xff] %vm276_vm3, %v6456_v31 }
  0xc5   : > { %452 = vst.msk [vmem:[#allocation2 + $0x578] sm:$0xff] %vm276_vm3, %v6456_v31 }
  0xc6   : > { %453 = vst.msk [vmem:[#allocation2 + $0x580] sm:$0xff] %vm276_vm3, %v6456_v31  ;;  %v7219_v59 = vpop.f32.mrf.mxu3 }
  0xc7   : > { %454 = vst.msk [vmem:[#allocation2 + $0x588] sm:$0xff] %vm276_vm3, %v6456_v31  ;;  %v7227_v3 = vpop.f32.mrf.mxu0  ;;  %v7229_v4 = vpop.f32.mrf.mxu1 }
  0xc8   : > { %455 = vst.msk [vmem:[#allocation2 + $0x590] sm:$0xff] %vm276_vm3, %v6456_v31 }
  0xc9   : > { %456 = vst.msk [vmem:[#allocation2 + $0x598] sm:$0xff] %vm276_vm3, %v6456_v31 }
  0xca   : > { %457 = vst.msk [vmem:[#allocation2 + $0x5a0] sm:$0xff] %vm276_vm3, %v6456_v31  ;;  %5458 = vmatmul.msk.bf16.gmra.mxu0 %vm1692_vm2, %v5603_v8  ;;  %5490 = vmatmul.msk.bf16.gmra.mxu1 %vm1692_vm2, %v5635_v9 }
  0xcb   : > { %458 = vst.msk [vmem:[#allocation2 + $0x5a8] sm:$0xff] %vm276_vm3, %v6456_v31  ;;  %5522 = vmatmul.msk.bf16.gmra.mxu2 %vm1692_vm2, %v5667_v13 }
  0xcc   : > { %459 = vst.msk [vmem:[#allocation2 + $0x5b0] sm:$0xff] %vm276_vm3, %v6456_v31 }
  0xcd   : > { %460 = vst.msk [vmem:[#allocation2 + $0x5b8] sm:$0xff] %vm276_vm3, %v6456_v31 }
  0xce   : > { %461 = vst.msk [vmem:[#allocation2 + $0x5c0] sm:$0xff] %vm276_vm3, %v6456_v31  ;;  %v7254_v29 = vpop.f32.mrf.mxu3 }
  0xcf   : > { %462 = vst.msk [vmem:[#allocation2 + $0x5c8] sm:$0xff] %vm276_vm3, %v6456_v31  ;;  %v7264_v41 = vpop.f32.mrf.mxu1 }
  0xd0   : > { %463 = vst.msk [vmem:[#allocation2 + $0x5d0] sm:$0xff] %vm276_vm3, %v6456_v31 }
  0xd1   : > { %464 = vst.msk [vmem:[#allocation2 + $0x5d8] sm:$0xff] %vm276_vm3, %v6456_v31 }
  0xd2   : > { %465 = vst.msk [vmem:[#allocation2 + $0x5e0] sm:$0xff] %vm276_vm3, %v6456_v31 }
  0xd3   : > { %466 = vst.msk [vmem:[#allocation2 + $0x5e8] sm:$0xff] %vm276_vm3, %v6456_v31 }
  0xd4   : > { %467 = vst.msk [vmem:[#allocation2 + $0x5f0] sm:$0xff] %vm276_vm3, %v6456_v31 }
  0xd5   : > { %468 = vst.msk [vmem:[#allocation2 + $0x5f8] sm:$0xff] %vm276_vm3, %v6456_v31 }
  0xd6   : > { %469 = vst.msk [vmem:[#allocation2 + $0x600] sm:$0xff] %vm276_vm3, %v6456_v31 }
  0xd7   : > { %470 = vst.msk [vmem:[#allocation2 + $0x608] sm:$0xff] %vm276_vm3, %v6456_v31  ;;  %v7294_v13 = vpop.f32.mrf.mxu1 }
  0xd8   : > { %471 = vst.msk [vmem:[#allocation2 + $0x610] sm:$0xff] %vm276_vm3, %v6456_v31 }
  0xd9   : > { %472 = vst.msk [vmem:[#allocation2 + $0x618] sm:$0xff] %vm276_vm3, %v6456_v31 }
  0xda   : > { %473 = vst.msk [vmem:[#allocation2 + $0x620] sm:$0xff] %vm276_vm3, %v6456_v31 }
  0xdb   : > { %474 = vst.msk [vmem:[#allocation2 + $0x628] sm:$0xff] %vm276_vm3, %v6456_v31 }
  0xdc   : > { %475 = vst.msk [vmem:[#allocation2 + $0x630] sm:$0xff] %vm276_vm3, %v6456_v31 }
  0xdd   : > { %476 = vst.msk [vmem:[#allocation2 + $0x638] sm:$0xff] %vm276_vm3, %v6456_v31  ;;  %v725_v14 = vld [vmem:[#allocation2 + $0x600] sm:$0xff] }
  0xde   : > { %477 = vst.msk [vmem:[#allocation2 + $0x640] sm:$0xff] %vm276_vm3, %v6456_v31  ;;  %v2925_v20 = vadd.f32 %v7070_v54, %v725_v14  ;;  %v726_v23 = vld [vmem:[#allocation2 + $0x608] sm:$0xff]  ;;  %v5699_v14 = vld [vmem:[%s6534_s5 + $0x358] sm:$0xff] }
  0xdf   : > { %478 = vst.msk [vmem:[#allocation2 + $0x648] sm:$0xff] %vm276_vm3, %v6456_v31  ;;  %v2926_v30 = vadd.f32 %v7096_v58, %v726_v23  ;;  %v727_v34 = vld [vmem:[#allocation2 + $0x610] sm:$0xff]  ;;  %v7217_v58 = vpop.f32.mrf.mxu2  ;;  %5554 = vmatmul.msk.bf16.gmra.mxu3 %vm1692_vm2, %v5699_v14 }
  0xe0   : > { %479 = vst.msk [vmem:[#allocation2 + $0x650] sm:$0xff] %vm276_vm3, %v6456_v31  ;;  %v2927_v40 = vadd.f32 %v7128_v2, %v727_v34  ;;  %v728_v45 = vld [vmem:[#allocation2 + $0x618] sm:$0xff]  ;;  %v2801_v2 = vadd.f32 %v7160_v10, %v601_v53 }
  0xe1   : > { %480 = vst.msk [vmem:[#allocation2 + $0x658] sm:$0xff] %vm276_vm3, %v6456_v31  ;;  %v2928_v56 = vadd.f32 %v7152_v6, %v728_v45  ;;  %v729_v63 = vld [vmem:[#allocation2 + $0x620] sm:$0xff] }
  0xe2   : > { %481 = vst.msk [vmem:[#allocation2 + $0x660] sm:$0xff] %vm276_vm3, %v6456_v31  ;;  %v2929_v10 = vadd.f32 %v7188_v27, %v729_v63 }
  0xe3   : > { %482 = vst.msk [vmem:[#allocation2 + $0x668] sm:$0xff] %vm276_vm3, %v6456_v31 }
  0xe4   : > { %483 = vst.msk [vmem:[#allocation2 + $0x670] sm:$0xff] %vm276_vm3, %v6456_v31 }
  0xe5   : > { %484 = vst.msk [vmem:[#allocation2 + $0x678] sm:$0xff] %vm276_vm3, %v6456_v31 }
  0xe6   : > { %485 = vst.msk [vmem:[#allocation2 + $0x680] sm:$0xff] %vm276_vm3, %v6456_v31 }
  0xe7   : > { %486 = vst.msk [vmem:[#allocation2 + $0x688] sm:$0xff] %vm276_vm3, %v6456_v31 }
  0xe8   : > { %487 = vst.msk [vmem:[#allocation2 + $0x690] sm:$0xff] %vm276_vm3, %v6456_v31 }
  0xe9   : > { %488 = vst.msk [vmem:[#allocation2 + $0x698] sm:$0xff] %vm276_vm3, %v6456_v31 }
  0xea   : > { %489 = vst.msk [vmem:[#allocation2 + $0x6a0] sm:$0xff] %vm276_vm3, %v6456_v31 }
  0xeb   : > { %490 = vst.msk [vmem:[#allocation2 + $0x6a8] sm:$0xff] %vm276_vm3, %v6456_v31 }
  0xec   : > { %491 = vst.msk [vmem:[#allocation2 + $0x6b0] sm:$0xff] %vm276_vm3, %v6456_v31 }
  0xed   : > { %492 = vst.msk [vmem:[#allocation2 + $0x6b8] sm:$0xff] %vm276_vm3, %v6456_v31 }
  0xee   : > { %493 = vst.msk [vmem:[#allocation2 + $0x6c0] sm:$0xff] %vm276_vm3, %v6456_v31 }
  0xef   : > { %494 = vst.msk [vmem:[#allocation2 + $0x6c8] sm:$0xff] %vm276_vm3, %v6456_v31 }
  0xf0   : > { %495 = vst.msk [vmem:[#allocation2 + $0x6d0] sm:$0xff] %vm276_vm3, %v6456_v31 }
  0xf1   : > { %496 = vst.msk [vmem:[#allocation2 + $0x6d8] sm:$0xff] %vm276_vm3, %v6456_v31 }
  0xf2   : > { %497 = vst.msk [vmem:[#allocation2 + $0x6e0] sm:$0xff] %vm276_vm3, %v6456_v31 }
  0xf3   : > { %498 = vst.msk [vmem:[#allocation2 + $0x6e8] sm:$0xff] %vm276_vm3, %v6456_v31 }
  0xf4   : > { %499 = vst.msk [vmem:[#allocation2 + $0x6f0] sm:$0xff] %vm276_vm3, %v6456_v31 }
  0xf5   : > { %500 = vst.msk [vmem:[#allocation2 + $0x6f8] sm:$0xff] %vm276_vm3, %v6456_v31 }
  0xf6   : > { %501 = vst.msk [vmem:[#allocation2 + $0x700] sm:$0xff] %vm276_vm3, %v6456_v31 }
  0xf7   : > { %502 = vst.msk [vmem:[#allocation2 + $0x708] sm:$0xff] %vm276_vm3, %v6456_v31 }
  0xf8   : > { %503 = vst.msk [vmem:[#allocation2 + $0x710] sm:$0xff] %vm276_vm3, %v6456_v31 }
  0xf9   : > { %504 = vst.msk [vmem:[#allocation2 + $0x718] sm:$0xff] %vm276_vm3, %v6456_v31 }
  0xfa   : > { %505 = vst.msk [vmem:[#allocation2 + $0x720] sm:$0xff] %vm276_vm3, %v6456_v31 }
  0xfb   : > { %506 = vst.msk [vmem:[#allocation2 + $0x728] sm:$0xff] %vm276_vm3, %v6456_v31 }
  0xfc   : > { %507 = vst.msk [vmem:[#allocation2 + $0x730] sm:$0xff] %vm276_vm3, %v6456_v31 }
  0xfd   : > { %508 = vst.msk [vmem:[#allocation2 + $0x738] sm:$0xff] %vm276_vm3, %v6456_v31 }
  0xfe   : > { %509 = vst.msk [vmem:[#allocation2 + $0x740] sm:$0xff] %vm276_vm3, %v6456_v31 }
  0xff   : > { %510 = vst.msk [vmem:[#allocation2 + $0x748] sm:$0xff] %vm276_vm3, %v6456_v31 }
 0x100   : > { %511 = vst.msk [vmem:[#allocation2 + $0x750] sm:$0xff] %vm276_vm3, %v6456_v31 }
 0x101   : > { %512 = vst.msk [vmem:[#allocation2 + $0x758] sm:$0xff] %vm276_vm3, %v6456_v31 }
 0x102   : > { %513 = vst.msk [vmem:[#allocation2 + $0x760] sm:$0xff] %vm276_vm3, %v6456_v31 }
 0x103   : > { %514 = vst.msk [vmem:[#allocation2 + $0x768] sm:$0xff] %vm276_vm3, %v6456_v31 }
 0x104   : > { %515 = vst.msk [vmem:[#allocation2 + $0x770] sm:$0xff] %vm276_vm3, %v6456_v31 }
 0x105   : > { %516 = vst.msk [vmem:[#allocation2 + $0x778] sm:$0xff] %vm276_vm3, %v6456_v31 }
 0x106   : > { %517 = vst.msk [vmem:[#allocation2 + $0x780] sm:$0xff] %vm276_vm3, %v6456_v31 }
 0x107   : > { %518 = vst.msk [vmem:[#allocation2 + $0x788] sm:$0xff] %vm276_vm3, %v6456_v31 }
 0x108   : > { %519 = vst.msk [vmem:[#allocation2 + $0x790] sm:$0xff] %vm276_vm3, %v6456_v31 }
 0x109   : > { %520 = vst.msk [vmem:[#allocation2 + $0x798] sm:$0xff] %vm276_vm3, %v6456_v31 }
 0x10a   : > { %521 = vst.msk [vmem:[#allocation2 + $0x7a0] sm:$0xff] %vm276_vm3, %v6456_v31 }
 0x10b   : > { %522 = vst.msk [vmem:[#allocation2 + $0x7a8] sm:$0xff] %vm276_vm3, %v6456_v31 }
 0x10c   : > { %523 = vst.msk [vmem:[#allocation2 + $0x7b0] sm:$0xff] %vm276_vm3, %v6456_v31 }
 0x10d   : > { %524 = vst.msk [vmem:[#allocation2 + $0x7b8] sm:$0xff] %vm276_vm3, %v6456_v31 }
 0x10e   : > { %525 = vst.msk [vmem:[#allocation2 + $0x7c0] sm:$0xff] %vm276_vm3, %v6456_v31 }
 0x10f   : > { %526 = vst.msk [vmem:[#allocation2 + $0x7c8] sm:$0xff] %vm276_vm3, %v6456_v31 }
 0x110   : > { %527 = vst.msk [vmem:[#allocation2 + $0x7d0] sm:$0xff] %vm276_vm3, %v6456_v31 }
 0x111   : > { %528 = vst.msk [vmem:[#allocation2 + $0x7d8] sm:$0xff] %vm276_vm3, %v6456_v31 }
 0x112   : > { %529 = vst.msk [vmem:[#allocation2 + $0x7e0] sm:$0xff] %vm276_vm3, %v6456_v31 }
 0x113   : > { %530 = vst.msk [vmem:[#allocation2 + $0x7e8] sm:$0xff] %vm276_vm3, %v6456_v31 }
 0x114   : > { %531 = vst.msk [vmem:[#allocation2 + $0x7f0] sm:$0xff] %vm276_vm3, %v6456_v31 }
 0x115   : > { %532 = vst.msk [vmem:[#allocation2 + $0x7f8] sm:$0xff] %vm276_vm3, %v6456_v31  ;;  %v663_v31 = vld [vmem:[#allocation2 + $0x410] sm:$0xff] }
 0x116   : > { %3054 = vst.msk [vmem:[#allocation2 + $0x200] sm:$0xff] %vm276_vm3, %v2797_v16  ;;  %v2863_v38 = vadd.f32 %v7126_v1, %v663_v31 }
 0x117   : > { %3118 = vst.msk [vmem:[#allocation2 + $0x400] sm:$0xff] %vm276_vm3, %v2861_v18 }
 0x118   : > { %3182 = vst.msk [vmem:[#allocation2 + $0x600] sm:$0xff] %vm276_vm3, %v2925_v20 }
 0x119   : > { %2991 = vst.msk [vmem:[#allocation2 + $0x8] sm:$0xff] %vm276_vm3, %v2734_v22 }
 0x11a   : > { %3055 = vst.msk [vmem:[#allocation2 + $0x208] sm:$0xff] %vm276_vm3, %v2798_v24 }
 0x11b   : > { %3119 = vst.msk [vmem:[#allocation2 + $0x408] sm:$0xff] %vm276_vm3, %v2862_v28  ;;  %v7252_v28 = vpop.f32.mrf.mxu2 }
 0x11c   : > { %3183 = vst.msk [vmem:[#allocation2 + $0x608] sm:$0xff] %vm276_vm3, %v2926_v30 }
 0x11d   : > { %v3313_v42 = vld [vmem:[#allocation2 + $0x200] sm:$0xff]  ;;  %2992 = vst.msk [vmem:[#allocation2 + $0x10] sm:$0xff] %vm276_vm3, %v2735_v33 }
 0x11e   : > { %v3573_v46 = vadd.f32 %v6702_v43, %v3313_v42  ;;  %v3377_v47 = vld [vmem:[#allocation2 + $0x400] sm:$0xff]  ;;  %3056 = vst.msk [vmem:[#allocation2 + $0x210] sm:$0xff] %vm276_vm3, %v2799_v36 }
 0x11f   : > { %v3637_v50 = vadd.f32 %v6702_v43, %v3377_v47  ;;  %v3441_v51 = vld [vmem:[#allocation2 + $0x600] sm:$0xff]  ;;  %3120 = vst.msk [vmem:[#allocation2 + $0x410] sm:$0xff] %vm276_vm3, %v2863_v38 }
 0x120   : > { %5836 = vtanh.f32 %v3573_v46  ;;  %v3701_v54 = vadd.f32 %v6702_v43, %v3441_v51  ;;  %v3250_v55 = vld [vmem:[#allocation2 + $0x8] sm:$0xff]  ;;  %3184 = vst.msk [vmem:[#allocation2 + $0x610] sm:$0xff] %vm276_vm3, %v2927_v40  ;;  %v7262_v40 = vpop.f32.mrf.mxu0 }
 0x121   : > { %5838 = vtanh.f32 %v3637_v50  ;;  %v3510_v60 = vadd.f32 %v6702_v43, %v3250_v55  ;;  %v3314_v61 = vld [vmem:[#allocation2 + $0x208] sm:$0xff]  ;;  %2993 = vst.msk [vmem:[#allocation2 + $0x18] sm:$0xff] %vm276_vm3, %v2736_v44 }
 0x122   : > { %5840 = vtanh.f32 %v3701_v54  ;;  %v3574_v0 = vadd.f32 %v6702_v43, %v3314_v61  ;;  %v3378_v1 = vld [vmem:[#allocation2 + $0x408] sm:$0xff]  ;;  %3057 = vst.msk [vmem:[#allocation2 + $0x218] sm:$0xff] %vm276_vm3, %v2800_v48 }
 0x123   : > { %5842 = vtanh.f32 %v3510_v60  ;;  %v3638_v5 = vadd.f32 %v6702_v43, %v3378_v1  ;;  %v3442_v6 = vld [vmem:[#allocation2 + $0x608] sm:$0xff]  ;;  %3121 = vst.msk [vmem:[#allocation2 + $0x418] sm:$0xff] %vm276_vm3, %v2864_v52 }
 0x124   : > { %5844 = vtanh.f32 %v3574_v0  ;;  %v3702_v11 = vadd.f32 %v6702_v43, %v3442_v6  ;;  %v3251_v12 = vld [vmem:[#allocation2 + $0x10] sm:$0xff]  ;;  %3185 = vst.msk [vmem:[#allocation2 + $0x618] sm:$0xff] %vm276_vm3, %v2928_v56  ;;  %v7284_v6 = vpop.f32.mrf.mxu2 }
 0x125   : > { %5846 = vtanh.f32 %v3638_v5  ;;  %v3511_v15 = vadd.f32 %v6702_v43, %v3251_v12  ;;  %v3315_v16 = vld [vmem:[#allocation2 + $0x210] sm:$0xff]  ;;  %2994 = vst.msk [vmem:[#allocation2 + $0x20] sm:$0xff] %vm276_vm3, %v2737_v62 }
 0x126   : > { %v5837_v17 = vpop.eup %5836  ;;  %5848 = vtanh.f32 %v3702_v11  ;;  %v3575_v18 = vadd.f32 %v6702_v43, %v3315_v16  ;;  %v3379_v19 = vld [vmem:[#allocation2 + $0x410] sm:$0xff]  ;;  %3058 = vst.msk [vmem:[#allocation2 + $0x220] sm:$0xff] %vm276_vm3, %v2801_v2  ;;  %v5604_v16 = vld [vmem:[%s6534_s5 + $0x60] sm:$0xff] }
 0x127   : > { %v5839_v20 = vpop.eup %5838  ;;  %v4085_v21 = vpack.c.bf16 %v5837_v17, %v5837_v17  ;;  %5850 = vtanh.f32 %v3511_v15  ;;  %v3639_v22 = vadd.f32 %v6702_v43, %v3379_v19  ;;  %v3443_v23 = vld [vmem:[#allocation2 + $0x610] sm:$0xff]  ;;  %3122 = vst.msk [vmem:[#allocation2 + $0x420] sm:$0xff] %vm276_vm3, %v2865_v7  ;;  %v7286_v7 = vpop.f32.mrf.mxu3  ;;  %v5636_v17 = vld [vmem:[%s6534_s5 + $0x160] sm:$0xff]  ;;  %5459 = vmatmul.msk.bf16.gmra.mxu0 %vm1692_vm2, %v5604_v16 }
 0x128   : > { %v5841_v24 = vpop.eup %5840  ;;  %v4149_v25 = vpack.c.bf16 %v5839_v20, %v5839_v20  ;;  %5852 = vtanh.f32 %v3575_v18  ;;  %v3703_v26 = vadd.f32 %v6702_v43, %v3443_v23  ;;  %v3252_v27 = vld [vmem:[#allocation2 + $0x18] sm:$0xff]  ;;  %3186 = vst.msk [vmem:[#allocation2 + $0x620] sm:$0xff] %vm276_vm3, %v2929_v10  ;;  %v7292_v10 = vpop.f32.mrf.mxu0  ;;  %v5668_v18 = vld [vmem:[%s6534_s5 + $0x260] sm:$0xff]  ;;  %5491 = vmatmul.msk.bf16.gmra.mxu1 %vm1692_vm2, %v5636_v17 }
 0x129   : > { %v5843_v30 = vpop.eup %5842  ;;  %4342 = vst.msk [vmem:[%s6736_s10 + $0x100] sm:$0xf] %vm4277_vm4, %v4085_v21  ;;  %v4213_v31 = vpack.c.bf16 %v5841_v24, %v5841_v24  ;;  %5854 = vtanh.f32 %v3639_v22  ;;  %v3512_v33 = vadd.f32 %v6702_v43, %v3252_v27  ;;  %v3316_v34 = vld [vmem:[#allocation2 + $0x218] sm:$0xff]  ;;  %v5700_v21 = vld [vmem:[%s6534_s5 + $0x360] sm:$0xff]  ;;  %v538_v24 = vld [vmem:[#allocation2 + $0x28] sm:$0xff]  ;;  %5523 = vmatmul.msk.bf16.gmra.mxu2 %vm1692_vm2, %v5668_v18 }
 0x12a   : > { %v5845_v36 = vpop.eup %5844  ;;  %4406 = vst.msk [vmem:[%s6736_s10 + $0x200] sm:$0xf] %vm4277_vm4, %v4149_v25  ;;  %v4022_v37 = vpack.c.bf16 %v5843_v30, %v5843_v30  ;;  %5856 = vtanh.f32 %v3703_v26  ;;  %v3576_v38 = vadd.f32 %v6702_v43, %v3316_v34  ;;  %v3380_v39 = vld [vmem:[#allocation2 + $0x418] sm:$0xff]  ;;  %v602_v27 = vld [vmem:[#allocation2 + $0x228] sm:$0xff]  ;;  %5555 = vmatmul.msk.bf16.gmra.mxu3 %vm1692_vm2, %v5700_v21 }
 0x12b   : > { %v5847_v42 = vpop.eup %5846  ;;  %4470 = vst.msk [vmem:[%s6736_s10 + $0x300] sm:$0xf] %vm4277_vm4, %v4213_v31  ;;  %v4086_v44 = vpack.c.bf16 %v5845_v36, %v5845_v36  ;;  %5858 = vtanh.f32 %v3512_v33  ;;  %v3640_v45 = vadd.f32 %v6702_v43, %v3380_v39  ;;  %v3444_v46 = vld [vmem:[#allocation2 + $0x618] sm:$0xff]  ;;  %v666_v33 = vld [vmem:[#allocation2 + $0x428] sm:$0xff] }
 0x12c   : > { %v5849_v47 = vpop.eup %5848  ;;  %4279 = vst.msk [vmem:[%s6736_s10 + $0x4] sm:$0xf] %vm4277_vm4, %v4022_v37  ;;  %v4150_v48 = vpack.c.bf16 %v5847_v42, %v5847_v42  ;;  %5860 = vtanh.f32 %v3576_v38  ;;  %v3704_v49 = vadd.f32 %v6702_v43, %v3444_v46  ;;  %v3253_v50 = vld [vmem:[#allocation2 + $0x20] sm:$0xff]  ;;  %v2738_v37 = vadd.f32 %v7194_v32, %v538_v24  ;;  %v730_v38 = vld [vmem:[#allocation2 + $0x628] sm:$0xff]  ;;  %v7317_v39 = vpop.f32.mrf.mxu2  ;;  %v539_v46 = vld [vmem:[#allocation2 + $0x30] sm:$0xff] }
 0x12d   : > { %v5851_v51 = vpop.eup %5850  ;;  %4343 = vst.msk [vmem:[%s6736_s10 + $0x104] sm:$0xf] %vm4277_vm4, %v4086_v44  ;;  %v4214_v52 = vpack.c.bf16 %v5849_v47, %v5849_v47  ;;  %5862 = vtanh.f32 %v3640_v45  ;;  %v3513_v53 = vadd.f32 %v6702_v43, %v3253_v50  ;;  %v3317_v54 = vld [vmem:[#allocation2 + $0x220] sm:$0xff]  ;;  %v2802_v45 = vadd.f32 %v7198_v35, %v602_v27  ;;  %v7329_v50 = vpop.f32.mrf.mxu1  ;;  %v731_v35 = vld [vmem:[#allocation2 + $0x630] sm:$0xff] }
 0x12e   : > { %v5853_v55 = vpop.eup %5852  ;;  %4407 = vst.msk [vmem:[%s6736_s10 + $0x204] sm:$0xf] %vm4277_vm4, %v4150_v48  ;;  %v4023_v56 = vpack.c.bf16 %v5851_v51, %v5851_v51  ;;  %5864 = vtanh.f32 %v3704_v49  ;;  %v3577_v57 = vadd.f32 %v6702_v43, %v3317_v54  ;;  %v3381_v60 = vld [vmem:[#allocation2 + $0x420] sm:$0xff]  ;;  %v2866_v47 = vadd.f32 %v7217_v58, %v666_v33  ;;  %v603_v48 = vld [vmem:[#allocation2 + $0x230] sm:$0xff]  ;;  %v540_v58 = vld [vmem:[#allocation2 + $0x38] sm:$0xff] }
 0x12f   : > { %v5855_v61 = vpop.eup %5854  ;;  %4471 = vst.msk [vmem:[%s6736_s10 + $0x304] sm:$0xf] %vm4277_vm4, %v4214_v52  ;;  %v4087_v62 = vpack.c.bf16 %v5853_v55, %v5853_v55  ;;  %5866 = vtanh.f32 %v3513_v53  ;;  %v3641_v63 = vadd.f32 %v6702_v43, %v3381_v60  ;;  %v3445_v0 = vld [vmem:[#allocation2 + $0x620] sm:$0xff]  ;;  %v7319_v42 = vpop.f32.mrf.mxu3  ;;  %v2930_v32 = vadd.f32 %v7219_v59, %v730_v38  ;;  %v667_v51 = vld [vmem:[#allocation2 + $0x430] sm:$0xff]  ;;  %v604_v55 = vld [vmem:[#allocation2 + $0x238] sm:$0xff] }
 0x130   : > { %v5857_v1 = vpop.eup %5856  ;;  %4280 = vst.msk [vmem:[%s6736_s10 + $0x8] sm:$0xf] %vm4277_vm4, %v4023_v56  ;;  %v4151_v2 = vpack.c.bf16 %v5855_v61, %v5855_v61  ;;  %5868 = vtanh.f32 %v3577_v57  ;;  %v3705_v5 = vadd.f32 %v6702_v43, %v3445_v0  ;;  %v7327_v49 = vpop.f32.mrf.mxu0  ;;  %v2739_v52 = vadd.f32 %v7227_v3, %v539_v46  ;;  %v668_v56 = vld [vmem:[#allocation2 + $0x438] sm:$0xff]  ;;  %v541_v61 = vld [vmem:[#allocation2 + $0x40] sm:$0xff] }
 0x131   : > { %v5859_v8 = vpop.eup %5858  ;;  %4344 = vst.msk [vmem:[%s6736_s10 + $0x108] sm:$0xf] %vm4277_vm4, %v4087_v62  ;;  %v4215_v9 = vpack.c.bf16 %v5857_v1, %v5857_v1  ;;  %5870 = vtanh.f32 %v3641_v63  ;;  %v2803_v53 = vadd.f32 %v7229_v4, %v603_v48  ;;  %v2867_v54 = vadd.f32 %v7252_v28, %v667_v51  ;;  %v732_v57 = vld [vmem:[#allocation2 + $0x638] sm:$0xff]  ;;  %v605_v62 = vld [vmem:[#allocation2 + $0x240] sm:$0xff] }
 0x132   : > { %v5861_v11 = vpop.eup %5860  ;;  %4408 = vst.msk [vmem:[%s6736_s10 + $0x208] sm:$0xf] %vm4277_vm4, %v4151_v2  ;;  %v4024_v12 = vpack.c.bf16 %v5859_v8, %v5859_v8  ;;  %5872 = vtanh.f32 %v3705_v5  ;;  %v2931_v59 = vadd.f32 %v7254_v29, %v731_v35  ;;  %v2740_v3 = vadd.f32 %v7262_v40, %v540_v58  ;;  %v669_v63 = vld [vmem:[#allocation2 + $0x440] sm:$0xff]  ;;  %v5637_v8 = vld [vmem:[%s6534_s5 + $0x168] sm:$0xff] }
 0x133   : > { %v5863_v14 = vpop.eup %5862  ;;  %4472 = vst.msk [vmem:[%s6736_s10 + $0x308] sm:$0xf] %vm4277_vm4, %v4215_v9  ;;  %v4088_v15 = vpack.c.bf16 %v5861_v11, %v5861_v11  ;;  %v2804_v28 = vadd.f32 %v7264_v41, %v604_v55  ;;  %v2868_v29 = vadd.f32 %v7284_v6, %v668_v56  ;;  %v733_v40 = vld [vmem:[#allocation2 + $0x640] sm:$0xff]  ;;  %v2932_v5 = vadd.f32 %v7286_v7, %v732_v57  ;;  %v5605_v41 = vld [vmem:[%s6534_s5 + $0x68] sm:$0xff] }
 0x134   : > { %v5865_v19 = vpop.eup %5864  ;;  %4281 = vst.msk [vmem:[%s6736_s10 + $0xc] sm:$0xf] %vm4277_vm4, %v4024_v12  ;;  %v4152_v20 = vpack.c.bf16 %v5863_v14, %v5863_v14  ;;  %v2435_v60 = vpop.f32.mrf.mxu2  ;;  %v2741_v6 = vadd.f32 %v7292_v10, %v541_v61  ;;  %v5669_v12 = vld [vmem:[%s6534_s5 + $0x268] sm:$0xff]  ;;  %v2805_v7 = vadd.f32 %v7294_v13, %v605_v62 }
 0x135   : > { %v5867_v22 = vpop.eup %5866  ;;  %4345 = vst.msk [vmem:[%s6736_s10 + $0x10c] sm:$0xf] %vm4277_vm4, %v4088_v15  ;;  %v4216_v23 = vpack.c.bf16 %v5865_v19, %v5865_v19  ;;  %v7352_v1 = vpop.f32.mrf.mxu1  ;;  %v5701_v14 = vld [vmem:[%s6534_s5 + $0x368] sm:$0xff]  ;;  %v7366_v15 = vld [vmem:[%s9116_s2] ss:$0 sm:$0xff]  ;;  %v2869_v19 = vadd.f32 %v7317_v39, %v669_v63 }
 0x136   : > { %v5869_v25 = vpop.eup %5868  ;;  %4409 = vst.msk [vmem:[%s6736_s10 + $0x20c] sm:$0xf] %vm4277_vm4, %v4152_v20  ;;  %v4025_v26 = vpack.c.bf16 %v5867_v22, %v5867_v22  ;;  %v606_v20 = vld [vmem:[#allocation2 + $0x248] sm:$0xff]  ;;  %v2933_v22 = vadd.f32 %v7319_v42, %v733_v40 }
 0x137   : > { %v5871_v30 = vpop.eup %5870  ;;  %4473 = vst.msk [vmem:[%s6736_s10 + $0x30c] sm:$0xf] %vm4277_vm4, %v4216_v23  ;;  %v4089_v31 = vpack.c.bf16 %v5869_v25, %v5869_v25  ;;  %v7344_v4 = vpop.f32.mrf.mxu3  ;;  %5460 = vmatmul.msk.bf16.gmra.mxu0 %vm1692_vm2, %v5605_v41  ;;  %v670_v23 = vld [vmem:[#allocation2 + $0x448] sm:$0xff] }
 0x138   : > { %v5873_v34 = vpop.eup %5872  ;;  %4282 = vst.msk [vmem:[%s6736_s10 + $0x10] sm:$0xf] %vm4277_vm4, %v4025_v26  ;;  %v4153_v36 = vpack.c.bf16 %v5871_v30, %v5871_v30  ;;  %v7350_v0 = vpop.f32.mrf.mxu0  ;;  %5492 = vmatmul.msk.bf16.gmra.mxu1 %vm1692_vm2, %v5637_v8  ;;  %v2870_v38 = vadd.f32 %v2435_v60, %v670_v23 }
 0x139   : > { %4346 = vst.msk [vmem:[%s6736_s10 + $0x110] sm:$0xf] %vm4277_vm4, %v4089_v31  ;;  %v4217_v44 = vpack.c.bf16 %v5873_v34, %v5873_v34  ;;  %5524 = vmatmul.msk.bf16.gmra.mxu2 %vm1692_vm2, %v5669_v12  ;;  %v2806_v34 = vadd.f32 %v7329_v50, %v606_v20 }
 0x13a   : > { %4410 = vst.msk [vmem:[%s6736_s10 + $0x210] sm:$0xf] %vm4277_vm4, %v4153_v36  ;;  %5556 = vmatmul.msk.bf16.gmra.mxu3 %vm1692_vm2, %v5701_v14 }
 0x13b   : > { %4474 = vst.msk [vmem:[%s6736_s10 + $0x310] sm:$0xf] %vm4277_vm4, %v4217_v44 }
 0x13c   : > { %2995 = vst.msk [vmem:[#allocation2 + $0x28] sm:$0xff] %vm276_vm3, %v2738_v37  ;;  %v7384_v27 = vpop.f32.mrf.mxu2 }
 0x13d   : > { %3059 = vst.msk [vmem:[#allocation2 + $0x228] sm:$0xff] %vm276_vm3, %v2802_v45  ;;  %v7395_v42 = vpop.f32.mrf.mxu1 }
 0x13e   : > { %3123 = vst.msk [vmem:[#allocation2 + $0x428] sm:$0xff] %vm276_vm3, %v2866_v47 }
 0x13f   : > { %3187 = vst.msk [vmem:[#allocation2 + $0x628] sm:$0xff] %vm276_vm3, %v2930_v32  ;;  %v7386_v30 = vpop.f32.mrf.mxu3 }
 0x140   : > { %2996 = vst.msk [vmem:[#allocation2 + $0x30] sm:$0xff] %vm276_vm3, %v2739_v52  ;;  %v7393_v39 = vpop.f32.mrf.mxu0 }
 0x141   : > { %3060 = vst.msk [vmem:[#allocation2 + $0x230] sm:$0xff] %vm276_vm3, %v2803_v53 }
 0x142   : > { %3124 = vst.msk [vmem:[#allocation2 + $0x430] sm:$0xff] %vm276_vm3, %v2867_v54 }
 0x143   : > { %v3254_v2 = vld [vmem:[#allocation2 + $0x28] sm:$0xff]  ;;  %3188 = vst.msk [vmem:[#allocation2 + $0x630] sm:$0xff] %vm276_vm3, %v2931_v59 }
 0x144   : > { %v3514_v9 = vadd.f32 %v6702_v43, %v3254_v2  ;;  %v3318_v11 = vld [vmem:[#allocation2 + $0x228] sm:$0xff]  ;;  %2997 = vst.msk [vmem:[#allocation2 + $0x38] sm:$0xff] %vm276_vm3, %v2740_v3  ;;  %v7411_v61 = vpop.f32.mrf.mxu2 }
 0x145   : > { %v3578_v16 = vadd.f32 %v7366_v15, %v3318_v11  ;;  %v3382_v17 = vld [vmem:[#allocation2 + $0x428] sm:$0xff]  ;;  %3061 = vst.msk [vmem:[#allocation2 + $0x238] sm:$0xff] %vm276_vm3, %v2804_v28 }
 0x146   : > { %v542_v43 = vld [vmem:[#allocation2 + $0x48] sm:$0xff]  ;;  %5874 = vtanh.f32 %v3514_v9  ;;  %v3642_v10 = vadd.f32 %v7366_v15, %v3382_v17  ;;  %3125 = vst.msk [vmem:[#allocation2 + $0x438] sm:$0xff] %vm276_vm3, %v2868_v29 }
 0x147   : > { %v3446_v18 = vld [vmem:[#allocation2 + $0x628] sm:$0xff]  ;;  %5876 = vtanh.f32 %v3578_v16  ;;  %v3255_v21 = vld [vmem:[#allocation2 + $0x30] sm:$0xff]  ;;  %3189 = vst.msk [vmem:[#allocation2 + $0x638] sm:$0xff] %vm276_vm3, %v2932_v5  ;;  %v2742_v26 = vadd.f32 %v7327_v49, %v542_v43  ;;  %v7413_v29 = vpop.f32.mrf.mxu3 }
 0x148   : > { %v3706_v13 = vadd.f32 %v7366_v15, %v3446_v18  ;;  %5878 = vtanh.f32 %v3642_v10  ;;  %v3515_v24 = vadd.f32 %v7366_v15, %v3255_v21  ;;  %v3319_v25 = vld [vmem:[#allocation2 + $0x230] sm:$0xff]  ;;  %2998 = vst.msk [vmem:[#allocation2 + $0x40] sm:$0xff] %vm276_vm3, %v2741_v6  ;;  %v7421_v11 = vpop.f32.mrf.mxu0  ;;  %v7423_v6 = vpop.f32.mrf.mxu1 }
 0x149   : > { %v3579_v31 = vadd.f32 %v7366_v15, %v3319_v25  ;;  %v3383_v33 = vld [vmem:[#allocation2 + $0x430] sm:$0xff]  ;;  %3062 = vst.msk [vmem:[#allocation2 + $0x240] sm:$0xff] %vm276_vm3, %v2805_v7 }
 0x14a   : > { %5880 = vtanh.f32 %v3706_v13  ;;  %v3643_v36 = vadd.f32 %v7366_v15, %v3383_v33  ;;  %v3447_v37 = vld [vmem:[#allocation2 + $0x630] sm:$0xff]  ;;  %3126 = vst.msk [vmem:[#allocation2 + $0x440] sm:$0xff] %vm276_vm3, %v2869_v19 }
 0x14b   : > { %5882 = vtanh.f32 %v3515_v24  ;;  %v3707_v44 = vadd.f32 %v7366_v15, %v3447_v37  ;;  %v3256_v45 = vld [vmem:[#allocation2 + $0x38] sm:$0xff]  ;;  %3190 = vst.msk [vmem:[#allocation2 + $0x640] sm:$0xff] %vm276_vm3, %v2933_v22  ;;  %v5606_v7 = vld [vmem:[%s6534_s5 + $0x70] sm:$0xff] }
 0x14c   : > { %5884 = vtanh.f32 %v3579_v31  ;;  %v5875_v46 = vpop.eup %5874  ;;  %v3516_v47 = vadd.f32 %v7366_v15, %v3256_v45  ;;  %v3320_v48 = vld [vmem:[#allocation2 + $0x238] sm:$0xff]  ;;  %2999 = vst.msk [vmem:[#allocation2 + $0x48] sm:$0xff] %vm276_vm3, %v2742_v26  ;;  %v5638_v43 = vld [vmem:[%s6534_s5 + $0x170] sm:$0xff]  ;;  %5461 = vmatmul.msk.bf16.gmra.mxu0 %vm1692_vm2, %v5606_v7 }
 0x14d   : > { %5886 = vtanh.f32 %v3643_v36  ;;  %v5877_v49 = vpop.eup %5876  ;;  %v4026_v50 = vpack.c.bf16 %v5875_v46, %v5875_v46  ;;  %v3580_v32 = vadd.f32 %v7366_v15, %v3320_v48  ;;  %v3384_v51 = vld [vmem:[#allocation2 + $0x438] sm:$0xff]  ;;  %3063 = vst.msk [vmem:[#allocation2 + $0x248] sm:$0xff] %vm276_vm3, %v2806_v34  ;;  %v5670_v13 = vld [vmem:[%s6534_s5 + $0x270] sm:$0xff]  ;;  %5493 = vmatmul.msk.bf16.gmra.mxu1 %vm1692_vm2, %v5638_v43 }
 0x14e   : > { %5888 = vtanh.f32 %v3707_v44  ;;  %v5879_v52 = vpop.eup %5878  ;;  %v4090_v35 = vpack.c.bf16 %v5877_v49, %v5877_v49  ;;  %v3644_v53 = vadd.f32 %v7366_v15, %v3384_v51  ;;  %v3448_v58 = vld [vmem:[#allocation2 + $0x638] sm:$0xff]  ;;  %3127 = vst.msk [vmem:[#allocation2 + $0x448] sm:$0xff] %vm276_vm3, %v2870_v38  ;;  %v5702_v21 = vld [vmem:[%s6534_s5 + $0x370] sm:$0xff]  ;;  %5525 = vmatmul.msk.bf16.gmra.mxu2 %vm1692_vm2, %v5670_v13  ;;  %v7449_v44 = vpop.f32.mrf.mxu2  ;;  %v673_v13 = vld [vmem:[#allocation2 + $0x460] sm:$0xff] }
 0x14f   : > { %5890 = vtanh.f32 %v3516_v47  ;;  %4283 = vst.msk [vmem:[%s6736_s10 + $0x14] sm:$0xf] %vm4277_vm4, %v4026_v50  ;;  %v4154_v55 = vpack.c.bf16 %v5879_v52, %v5879_v52  ;;  %v3708_v59 = vadd.f32 %v7366_v15, %v3448_v58  ;;  %v3257_v56 = vld [vmem:[#allocation2 + $0x40] sm:$0xff]  ;;  %5557 = vmatmul.msk.bf16.gmra.mxu3 %vm1692_vm2, %v5702_v21  ;;  %v7451_v45 = vpop.f32.mrf.mxu3  ;;  %v5607_v7 = vld [vmem:[%s6534_s5 + $0x78] sm:$0xff] }
 0x150   : > { %v5881_v54 = vpop.eup %5880  ;;  %5892 = vtanh.f32 %v3580_v32  ;;  %4347 = vst.msk [vmem:[%s6736_s10 + $0x114] sm:$0xf] %vm4277_vm4, %v4090_v35  ;;  %v3517_v60 = vadd.f32 %v7366_v15, %v3257_v56  ;;  %v3321_v28 = vld [vmem:[#allocation2 + $0x240] sm:$0xff]  ;;  %v7457_v50 = vpop.f32.mrf.mxu0  ;;  %v734_v35 = vld [vmem:[#allocation2 + $0x648] sm:$0xff]  ;;  %v607_v56 = vld [vmem:[#allocation2 + $0x250] sm:$0xff] }
 0x151   : > { %v5883_v3 = vpop.eup %5882  ;;  %v4218_v57 = vpack.c.bf16 %v5881_v54, %v5881_v54  ;;  %5894 = vtanh.f32 %v3644_v53  ;;  %4411 = vst.msk [vmem:[%s6736_s10 + $0x214] sm:$0xf] %vm4277_vm4, %v4154_v55  ;;  %v3581_v40 = vadd.f32 %v7366_v15, %v3321_v28  ;;  %v3385_v2 = vld [vmem:[#allocation2 + $0x440] sm:$0xff]  ;;  %v7459_v32 = vpop.f32.mrf.mxu1  ;;  %v543_v54 = vld [vmem:[#allocation2 + $0x50] sm:$0xff]  ;;  %v5639_v43 = vld [vmem:[%s6534_s5 + $0x178] sm:$0xff] }
 0x152   : > { %v5885_v62 = vpop.eup %5884  ;;  %v4027_v63 = vpack.c.bf16 %v5883_v3, %v5883_v3  ;;  %5896 = vtanh.f32 %v3708_v59  ;;  %v3645_v8 = vadd.f32 %v7366_v15, %v3385_v2  ;;  %v3449_v9 = vld [vmem:[#allocation2 + $0x640] sm:$0xff]  ;;  %v671_v28 = vld [vmem:[#allocation2 + $0x450] sm:$0xff]  ;;  %v2807_v2 = vadd.f32 %v7352_v1, %v607_v56 }
 0x153   : > { %v5887_v5 = vpop.eup %5886  ;;  %4475 = vst.msk [vmem:[%s6736_s10 + $0x314] sm:$0xf] %vm4277_vm4, %v4218_v57  ;;  %v4091_v41 = vpack.c.bf16 %v5885_v62, %v5885_v62  ;;  %5898 = vtanh.f32 %v3517_v60  ;;  %v3709_v16 = vadd.f32 %v7366_v15, %v3449_v9  ;;  %v3258_v17 = vld [vmem:[#allocation2 + $0x48] sm:$0xff]  ;;  %v2934_v60 = vadd.f32 %v7344_v4, %v734_v35  ;;  %v608_v9 = vld [vmem:[#allocation2 + $0x258] sm:$0xff]  ;;  %v737_v21 = vld [vmem:[#allocation2 + $0x660] sm:$0xff] }
 0x154   : > { %v5889_v12 = vpop.eup %5888  ;;  %4284 = vst.msk [vmem:[%s6736_s10 + $0x18] sm:$0xf] %vm4277_vm4, %v4027_v63  ;;  %v4155_v14 = vpack.c.bf16 %v5887_v5, %v5887_v5  ;;  %5900 = vtanh.f32 %v3581_v40  ;;  %v3518_v19 = vadd.f32 %v7366_v15, %v3258_v17  ;;  %v3322_v20 = vld [vmem:[#allocation2 + $0x248] sm:$0xff]  ;;  %v2743_v63 = vadd.f32 %v7350_v0, %v543_v54  ;;  %v735_v40 = vld [vmem:[#allocation2 + $0x650] sm:$0xff]  ;;  %v544_v5 = vld [vmem:[#allocation2 + $0x58] sm:$0xff] }
 0x155   : > { %v5891_v10 = vpop.eup %5890  ;;  %4348 = vst.msk [vmem:[%s6736_s10 + $0x118] sm:$0xf] %vm4277_vm4, %v4091_v41  ;;  %v4219_v18 = vpack.c.bf16 %v5889_v12, %v5889_v12  ;;  %5902 = vtanh.f32 %v3645_v8  ;;  %v3582_v24 = vadd.f32 %v7366_v15, %v3322_v20  ;;  %v3386_v25 = vld [vmem:[#allocation2 + $0x448] sm:$0xff]  ;;  %v2871_v4 = vadd.f32 %v7384_v27, %v671_v28  ;;  %v672_v12 = vld [vmem:[#allocation2 + $0x458] sm:$0xff]  ;;  %v609_v20 = vld [vmem:[#allocation2 + $0x260] sm:$0xff] }
 0x156   : > { %v5893_v22 = vpop.eup %5892  ;;  %4412 = vst.msk [vmem:[%s6736_s10 + $0x218] sm:$0xf] %vm4277_vm4, %v4155_v14  ;;  %v4028_v23 = vpack.c.bf16 %v5891_v10, %v5891_v10  ;;  %5904 = vtanh.f32 %v3709_v16  ;;  %v3646_v33 = vadd.f32 %v7366_v15, %v3386_v25  ;;  %v7476_v41 = vpop.f32.mrf.mxu2  ;;  %v2935_v0 = vadd.f32 %v7386_v30, %v735_v40  ;;  %v736_v14 = vld [vmem:[#allocation2 + $0x658] sm:$0xff] }
 0x157   : > { %v5895_v26 = vpop.eup %5894  ;;  %4476 = vst.msk [vmem:[%s6736_s10 + $0x318] sm:$0xf] %vm4277_vm4, %v4219_v18  ;;  %v4092_v31 = vpack.c.bf16 %v5893_v22, %v5893_v22  ;;  %5906 = vtanh.f32 %v3518_v19  ;;  %v7478_v8 = vpop.f32.mrf.mxu3  ;;  %v2744_v17 = vadd.f32 %v7393_v39, %v544_v5  ;;  %v5671_v10 = vld [vmem:[%s6534_s5 + $0x278] sm:$0xff]  ;;  %v2808_v27 = vadd.f32 %v7395_v42, %v608_v9  ;;  %v545_v18 = vld [vmem:[#allocation2 + $0x60] sm:$0xff]  ;;  %v546_v22 = vld [vmem:[#allocation2 + $0x68] sm:$0xff] }
 0x158   : > { %v5897_v34 = vpop.eup %5896  ;;  %4285 = vst.msk [vmem:[%s6736_s10 + $0x1c] sm:$0xf] %vm4277_vm4, %v4028_v23  ;;  %v4156_v36 = vpack.c.bf16 %v5895_v26, %v5895_v26  ;;  %5908 = vtanh.f32 %v3582_v24  ;;  %v7485_v1 = vpop.f32.mrf.mxu0  ;;  %v5703_v19 = vld [vmem:[%s6534_s5 + $0x378] sm:$0xff]  ;;  %v2872_v30 = vadd.f32 %v7411_v61, %v672_v12  ;;  %v2936_v39 = vadd.f32 %v7413_v29, %v736_v14  ;;  %v610_v26 = vld [vmem:[#allocation2 + $0x268] sm:$0xff]  ;;  %v5608_v14 = vld [vmem:[%s6534_s5 + $0x80] sm:$0xff] }
 0x159   : > { %v5899_v37 = vpop.eup %5898  ;;  %4349 = vst.msk [vmem:[%s6736_s10 + $0x11c] sm:$0xf] %vm4277_vm4, %v4092_v31  ;;  %v4220_v38 = vpack.c.bf16 %v5897_v34, %v5897_v34  ;;  %5910 = vtanh.f32 %v3646_v33  ;;  %v7487_v16 = vpop.f32.mrf.mxu1  ;;  %v2745_v42 = vadd.f32 %v7421_v11, %v545_v18  ;;  %v2809_v61 = vadd.f32 %v7423_v6, %v609_v20  ;;  %v674_v34 = vld [vmem:[#allocation2 + $0x468] sm:$0xff] }
 0x15a   : > { %v5901_v46 = vpop.eup %5900  ;;  %4413 = vst.msk [vmem:[%s6736_s10 + $0x21c] sm:$0xf] %vm4277_vm4, %v4156_v36  ;;  %v4029_v47 = vpack.c.bf16 %v5899_v37, %v5899_v37  ;;  %v2873_v25 = vadd.f32 %v7449_v44, %v673_v13  ;;  %v2937_v11 = vadd.f32 %v7451_v45, %v737_v21  ;;  %v2746_v44 = vadd.f32 %v7457_v50, %v546_v22 }
 0x15b   : > { %v5903_v48 = vpop.eup %5902  ;;  %4477 = vst.msk [vmem:[%s6736_s10 + $0x31c] sm:$0xf] %vm4277_vm4, %v4220_v38  ;;  %v4093_v49 = vpack.c.bf16 %v5901_v46, %v5901_v46  ;;  %v738_v46 = vld [vmem:[#allocation2 + $0x668] sm:$0xff]  ;;  %v2810_v45 = vadd.f32 %v7459_v32, %v610_v26  ;;  %v2874_v35 = vadd.f32 %v7476_v41, %v674_v34 }
 0x15c   : > { %v5905_v51 = vpop.eup %5904  ;;  %4286 = vst.msk [vmem:[%s6736_s10 + $0x20] sm:$0xf] %vm4277_vm4, %v4029_v47  ;;  %v4157_v52 = vpack.c.bf16 %v5903_v48, %v5903_v48  ;;  %5462 = vmatmul.msk.bf16.gmra.mxu0 %vm1692_vm2, %v5607_v7  ;;  %v2938_v54 = vadd.f32 %v7478_v8, %v738_v46 }
 0x15d   : > { %v5907_v53 = vpop.eup %5906  ;;  %4350 = vst.msk [vmem:[%s6736_s10 + $0x120] sm:$0xf] %vm4277_vm4, %v4093_v49  ;;  %v4221_v58 = vpack.c.bf16 %v5905_v51, %v5905_v51  ;;  %5494 = vmatmul.msk.bf16.gmra.mxu1 %vm1692_vm2, %v5639_v43  ;;  %v547_v49 = vld [vmem:[#allocation2 + $0x70] sm:$0xff] }
 0x15e   : > { %v5909_v55 = vpop.eup %5908  ;;  %4414 = vst.msk [vmem:[%s6736_s10 + $0x220] sm:$0xf] %vm4277_vm4, %v4157_v52  ;;  %v4030_v59 = vpack.c.bf16 %v5907_v53, %v5907_v53  ;;  %5526 = vmatmul.msk.bf16.gmra.mxu2 %vm1692_vm2, %v5671_v10  ;;  %v7509_v23 = vpop.f32.mrf.mxu2  ;;  %v611_v53 = vld [vmem:[#allocation2 + $0x270] sm:$0xff]  ;;  %v5672_v10 = vld [vmem:[%s6534_s5 + $0x280] sm:$0xff] }
 0x15f   : > { %v5911_v3 = vpop.eup %5910  ;;  %4478 = vst.msk [vmem:[%s6736_s10 + $0x320] sm:$0xf] %vm4277_vm4, %v4221_v58  ;;  %v4094_v57 = vpack.c.bf16 %v5909_v55, %v5909_v55  ;;  %5558 = vmatmul.msk.bf16.gmra.mxu3 %vm1692_vm2, %v5703_v19  ;;  %v7511_v24 = vpop.f32.mrf.mxu3 }
 0x160   : > { %4287 = vst.msk [vmem:[%s6736_s10 + $0x24] sm:$0xf] %vm4277_vm4, %v4030_v59  ;;  %v4158_v62 = vpack.c.bf16 %v5911_v3, %v5911_v3  ;;  %v7518_v6 = vpop.f32.mrf.mxu0  ;;  %v2747_v59 = vadd.f32 %v7485_v1, %v547_v49  ;;  %v5640_v1 = vld [vmem:[%s6534_s5 + $0x180] sm:$0xff] }
 0x161   : > { %4351 = vst.msk [vmem:[%s6736_s10 + $0x124] sm:$0xf] %vm4277_vm4, %v4094_v57  ;;  %v7520_v36 = vpop.f32.mrf.mxu1  ;;  %v2811_v57 = vadd.f32 %v7487_v16, %v611_v53 }
 0x162   : > { %4415 = vst.msk [vmem:[%s6736_s10 + $0x224] sm:$0xf] %vm4277_vm4, %v4158_v62 }
 0x163   : > { %3191 = vst.msk [vmem:[#allocation2 + $0x648] sm:$0xff] %vm276_vm3, %v2934_v60 }
 0x164   : > { %3000 = vst.msk [vmem:[#allocation2 + $0x50] sm:$0xff] %vm276_vm3, %v2743_v63 }
 0x165   : > { %3064 = vst.msk [vmem:[#allocation2 + $0x250] sm:$0xff] %vm276_vm3, %v2807_v2 }
 0x166   : > { %3128 = vst.msk [vmem:[#allocation2 + $0x450] sm:$0xff] %vm276_vm3, %v2871_v4  ;;  %v7540_v60 = vpop.f32.mrf.mxu2 }
 0x167   : > { %3192 = vst.msk [vmem:[#allocation2 + $0x650] sm:$0xff] %vm276_vm3, %v2935_v0  ;;  %v7542_v28 = vpop.f32.mrf.mxu3 }
 0x168   : > { %3001 = vst.msk [vmem:[#allocation2 + $0x58] sm:$0xff] %vm276_vm3, %v2744_v17  ;;  %v7548_v41 = vpop.f32.mrf.mxu0 }
 0x169   : > { %3065 = vst.msk [vmem:[#allocation2 + $0x258] sm:$0xff] %vm276_vm3, %v2808_v27  ;;  %v7550_v8 = vpop.f32.mrf.mxu1  ;;  %v5704_v27 = vld [vmem:[%s6534_s5 + $0x380] sm:$0xff] }
 0x16a   : > { %v3450_v29 = vld [vmem:[#allocation2 + $0x648] sm:$0xff]  ;;  %3129 = vst.msk [vmem:[#allocation2 + $0x458] sm:$0xff] %vm276_vm3, %v2872_v30 }
 0x16b   : > { %v3710_v31 = vadd.f32 %v7366_v15, %v3450_v29  ;;  %v3259_v33 = vld [vmem:[#allocation2 + $0x50] sm:$0xff]  ;;  %3193 = vst.msk [vmem:[#allocation2 + $0x658] sm:$0xff] %vm276_vm3, %v2936_v39 }
 0x16c   : > { %v3519_v37 = vadd.f32 %v7366_v15, %v3259_v33  ;;  %v3323_v38 = vld [vmem:[#allocation2 + $0x250] sm:$0xff]  ;;  %3002 = vst.msk [vmem:[#allocation2 + $0x60] sm:$0xff] %vm276_vm3, %v2745_v42  ;;  %5463 = vmatmul.msk.bf16.gmra.mxu0 %vm1692_vm2, %v5608_v14 }
 0x16d   : > { %5912 = vtanh.f32 %v3710_v31  ;;  %v3583_v47 = vadd.f32 %v7366_v15, %v3323_v38  ;;  %v3387_v48 = vld [vmem:[#allocation2 + $0x450] sm:$0xff]  ;;  %3066 = vst.msk [vmem:[#allocation2 + $0x260] sm:$0xff] %vm276_vm3, %v2809_v61  ;;  %5495 = vmatmul.msk.bf16.gmra.mxu1 %vm1692_vm2, %v5640_v1 }
 0x16e   : > { %5914 = vtanh.f32 %v3519_v37  ;;  %v3647_v51 = vadd.f32 %v7366_v15, %v3387_v48  ;;  %v3451_v52 = vld [vmem:[#allocation2 + $0x650] sm:$0xff]  ;;  %3130 = vst.msk [vmem:[#allocation2 + $0x460] sm:$0xff] %vm276_vm3, %v2873_v25  ;;  %5527 = vmatmul.msk.bf16.gmra.mxu2 %vm1692_vm2, %v5672_v10  ;;  %v7576_v34 = vpop.f32.mrf.mxu2 }
 0x16f   : > { %5916 = vtanh.f32 %v3583_v47  ;;  %v3711_v50 = vadd.f32 %v7366_v15, %v3451_v52  ;;  %v3260_v58 = vld [vmem:[#allocation2 + $0x58] sm:$0xff]  ;;  %3194 = vst.msk [vmem:[#allocation2 + $0x660] sm:$0xff] %vm276_vm3, %v2937_v11  ;;  %5559 = vmatmul.msk.bf16.gmra.mxu3 %vm1692_vm2, %v5704_v27  ;;  %v7578_v37 = vpop.f32.mrf.mxu3  ;;  %v675_v14 = vld [vmem:[#allocation2 + $0x470] sm:$0xff] }
 0x170   : > { %5918 = vtanh.f32 %v3647_v51  ;;  %v3520_v32 = vadd.f32 %v7366_v15, %v3260_v58  ;;  %v3324_v55 = vld [vmem:[#allocation2 + $0x258] sm:$0xff]  ;;  %3003 = vst.msk [vmem:[#allocation2 + $0x68] sm:$0xff] %vm276_vm3, %v2746_v44  ;;  %v7586_v52 = vpop.f32.mrf.mxu0 }
 0x171   : > { %5920 = vtanh.f32 %v3711_v50  ;;  %v3584_v56 = vadd.f32 %v7366_v15, %v3324_v55  ;;  %v3388_v3 = vld [vmem:[#allocation2 + $0x458] sm:$0xff]  ;;  %3067 = vst.msk [vmem:[#allocation2 + $0x268] sm:$0xff] %vm276_vm3, %v2810_v45 }
 0x172   : > { %5922 = vtanh.f32 %v3520_v32  ;;  %v3648_v62 = vadd.f32 %v7366_v15, %v3388_v3  ;;  %v3452_v63 = vld [vmem:[#allocation2 + $0x658] sm:$0xff]  ;;  %3131 = vst.msk [vmem:[#allocation2 + $0x468] sm:$0xff] %vm276_vm3, %v2874_v35  ;;  %v7588_v35 = vpop.f32.mrf.mxu1 }
 0x173   : > { %v5913_v40 = vpop.eup %5912  ;;  %5924 = vtanh.f32 %v3584_v56  ;;  %v3712_v2 = vadd.f32 %v7366_v15, %v3452_v63  ;;  %v3261_v5 = vld [vmem:[#allocation2 + $0x60] sm:$0xff]  ;;  %3195 = vst.msk [vmem:[#allocation2 + $0x668] sm:$0xff] %vm276_vm3, %v2938_v54 }
 0x174   : > { %v5915_v4 = vpop.eup %5914  ;;  %v4222_v9 = vpack.c.bf16 %v5913_v40, %v5913_v40  ;;  %5926 = vtanh.f32 %v3648_v62  ;;  %v3521_v0 = vadd.f32 %v7366_v15, %v3261_v5  ;;  %v3325_v12 = vld [vmem:[#allocation2 + $0x260] sm:$0xff]  ;;  %3004 = vst.msk [vmem:[#allocation2 + $0x70] sm:$0xff] %vm276_vm3, %v2747_v59 }
 0x175   : > { %v5917_v16 = vpop.eup %5916  ;;  %v4031_v17 = vpack.c.bf16 %v5915_v4, %v5915_v4  ;;  %5928 = vtanh.f32 %v3712_v2  ;;  %v3585_v7 = vadd.f32 %v7366_v15, %v3325_v12  ;;  %v3389_v43 = vld [vmem:[#allocation2 + $0x460] sm:$0xff]  ;;  %3068 = vst.msk [vmem:[#allocation2 + $0x270] sm:$0xff] %vm276_vm3, %v2811_v57 }
 0x176   : > { %v5919_v18 = vpop.eup %5918  ;;  %4479 = vst.msk [vmem:[%s6736_s10 + $0x324] sm:$0xf] %vm4277_vm4, %v4222_v9  ;;  %v4095_v19 = vpack.c.bf16 %v5917_v16, %v5917_v16  ;;  %5930 = vtanh.f32 %v3521_v0  ;;  %v3649_v30 = vadd.f32 %v7366_v15, %v3389_v43  ;;  %v3453_v20 = vld [vmem:[#allocation2 + $0x660] sm:$0xff]  ;;  %v7604_v4 = vpop.f32.mrf.mxu2 }
 0x177   : > { %v5921_v39 = vpop.eup %5920  ;;  %4288 = vst.msk [vmem:[%s6736_s10 + $0x28] sm:$0xf] %vm4277_vm4, %v4031_v17  ;;  %v4159_v13 = vpack.c.bf16 %v5919_v18, %v5919_v18  ;;  %5932 = vtanh.f32 %v3585_v7  ;;  %v3713_v42 = vadd.f32 %v7366_v15, %v3453_v20  ;;  %v3262_v21 = vld [vmem:[#allocation2 + $0x68] sm:$0xff]  ;;  %v7606_v9 = vpop.f32.mrf.mxu3  ;;  %v739_v17 = vld [vmem:[#allocation2 + $0x670] sm:$0xff]  ;;  %v548_v7 = vld [vmem:[#allocation2 + $0x78] sm:$0xff] }
 0x178   : > { %v5923_v61 = vpop.eup %5922  ;;  %4352 = vst.msk [vmem:[%s6736_s10 + $0x128] sm:$0xf] %vm4277_vm4, %v4095_v19  ;;  %v4223_v22 = vpack.c.bf16 %v5921_v39, %v5921_v39  ;;  %5934 = vtanh.f32 %v3649_v30  ;;  %v3522_v29 = vadd.f32 %v7366_v15, %v3262_v21  ;;  %v3326_v25 = vld [vmem:[#allocation2 + $0x268] sm:$0xff]  ;;  %v7612_v43 = vpop.f32.mrf.mxu0  ;;  %v612_v21 = vld [vmem:[#allocation2 + $0x278] sm:$0xff] }
 0x179   : > { %v5925_v26 = vpop.eup %5924  ;;  %4416 = vst.msk [vmem:[%s6736_s10 + $0x228] sm:$0xf] %vm4277_vm4, %v4159_v13  ;;  %v4032_v31 = vpack.c.bf16 %v5923_v61, %v5923_v61  ;;  %5936 = vtanh.f32 %v3713_v42  ;;  %v3586_v33 = vadd.f32 %v7366_v15, %v3326_v25  ;;  %v3390_v11 = vld [vmem:[#allocation2 + $0x468] sm:$0xff]  ;;  %v2875_v42 = vadd.f32 %v7509_v23, %v675_v14  ;;  %v676_v25 = vld [vmem:[#allocation2 + $0x478] sm:$0xff] }
 0x17a   : > { %v5927_v38 = vpop.eup %5926  ;;  %4480 = vst.msk [vmem:[%s6736_s10 + $0x328] sm:$0xf] %vm4277_vm4, %v4223_v22  ;;  %v4096_v44 = vpack.c.bf16 %v5925_v26, %v5925_v26  ;;  %5938 = vtanh.f32 %v3522_v29  ;;  %v3650_v46 = vadd.f32 %v7366_v15, %v3390_v11  ;;  %v3454_v47 = vld [vmem:[#allocation2 + $0x668] sm:$0xff]  ;;  %v7614_v10 = vpop.f32.mrf.mxu1  ;;  %v2939_v29 = vadd.f32 %v7511_v24, %v739_v17  ;;  %v613_v11 = vld [vmem:[#allocation2 + $0x280] sm:$0xff] }
 0x17b   : > { %v5929_v48 = vpop.eup %5928  ;;  %4289 = vst.msk [vmem:[%s6736_s10 + $0x2c] sm:$0xf] %vm4277_vm4, %v4032_v31  ;;  %v4160_v45 = vpack.c.bf16 %v5927_v38, %v5927_v38  ;;  %5940 = vtanh.f32 %v3586_v33  ;;  %v3714_v49 = vadd.f32 %v7366_v15, %v3454_v47  ;;  %v3263_v51 = vld [vmem:[#allocation2 + $0x70] sm:$0xff]  ;;  %v5609_v19 = vld [vmem:[%s6534_s5 + $0x88] sm:$0xff]  ;;  %v2748_v26 = vadd.f32 %v7518_v6, %v548_v7  ;;  %v740_v31 = vld [vmem:[#allocation2 + $0x678] sm:$0xff] }
 0x17c   : > { %v5931_v53 = vpop.eup %5930  ;;  %4353 = vst.msk [vmem:[%s6736_s10 + $0x12c] sm:$0xf] %vm4277_vm4, %v4096_v44  ;;  %v4224_v50 = vpack.c.bf16 %v5929_v48, %v5929_v48  ;;  %5942 = vtanh.f32 %v3650_v46  ;;  %v3523_v58 = vadd.f32 %v7366_v15, %v3263_v51  ;;  %v3327_v54 = vld [vmem:[#allocation2 + $0x270] sm:$0xff]  ;;  %v5641_v30 = vld [vmem:[%s6534_s5 + $0x188] sm:$0xff]  ;;  %5464 = vmatmul.msk.bf16.gmra.mxu0 %vm1692_vm2, %v5609_v19  ;;  %v2812_v23 = vadd.f32 %v7520_v36, %v612_v21  ;;  %v549_v33 = vld [vmem:[#allocation2 + $0x80] sm:$0xff] }
 0x17d   : > { %v5933_v32 = vpop.eup %5932  ;;  %4417 = vst.msk [vmem:[%s6736_s10 + $0x22c] sm:$0xf] %vm4277_vm4, %v4160_v45  ;;  %v4033_v55 = vpack.c.bf16 %v5931_v53, %v5931_v53  ;;  %5944 = vtanh.f32 %v3714_v49  ;;  %v3587_v59 = vadd.f32 %v7366_v15, %v3327_v54  ;;  %v5673_v20 = vld [vmem:[%s6534_s5 + $0x288] sm:$0xff]  ;;  %5496 = vmatmul.msk.bf16.gmra.mxu1 %vm1692_vm2, %v5641_v30  ;;  %v2876_v24 = vadd.f32 %v7540_v60, %v676_v25  ;;  %v677_v46 = vld [vmem:[#allocation2 + $0x480] sm:$0xff]  ;;  %v5674_v30 = vld [vmem:[%s6534_s5 + $0x290] sm:$0xff] }
 0x17e   : > { %v5935_v56 = vpop.eup %5934  ;;  %4481 = vst.msk [vmem:[%s6736_s10 + $0x32c] sm:$0xf] %vm4277_vm4, %v4224_v50  ;;  %v4097_v3 = vpack.c.bf16 %v5933_v32, %v5933_v32  ;;  %5946 = vtanh.f32 %v3523_v58  ;;  %v5705_v61 = vld [vmem:[%s6534_s5 + $0x388] sm:$0xff]  ;;  %5528 = vmatmul.msk.bf16.gmra.mxu2 %vm1692_vm2, %v5673_v20  ;;  %v2458_v38 = vpop.f32.mrf.mxu2  ;;  %v2940_v6 = vadd.f32 %v7542_v28, %v740_v31  ;;  %v2749_v47 = vadd.f32 %v7548_v41, %v549_v33  ;;  %v741_v48 = vld [vmem:[#allocation2 + $0x680] sm:$0xff]  ;;  %v551_v32 = vld [vmem:[#allocation2 + $0x90] sm:$0xff] }
 0x17f   : > { %v5937_v57 = vpop.eup %5936  ;;  %4290 = vst.msk [vmem:[%s6736_s10 + $0x30] sm:$0xf] %vm4277_vm4, %v4033_v55  ;;  %v4161_v62 = vpack.c.bf16 %v5935_v56, %v5935_v56  ;;  %5948 = vtanh.f32 %v3587_v59  ;;  %5560 = vmatmul.msk.bf16.gmra.mxu3 %vm1692_vm2, %v5705_v61  ;;  %v2618_v44 = vpop.f32.mrf.mxu3  ;;  %v2813_v60 = vadd.f32 %v7550_v8, %v613_v11  ;;  %v550_v49 = vld [vmem:[#allocation2 + $0x88] sm:$0xff]  ;;  %v2877_v51 = vadd.f32 %v7576_v34, %v677_v46  ;;  %v5706_v20 = vld [vmem:[%s6534_s5 + $0x390] sm:$0xff] }
 0x180   : > { %v5939_v63 = vpop.eup %5938  ;;  %4354 = vst.msk [vmem:[%s6736_s10 + $0x130] sm:$0xf] %vm4277_vm4, %v4097_v3  ;;  %v4225_v40 = vpack.c.bf16 %v5937_v57, %v5937_v57  ;;  %v2140_v45 = vpop.f32.mrf.mxu0  ;;  %v614_v53 = vld [vmem:[#allocation2 + $0x288] sm:$0xff]  ;;  %v2941_v28 = vadd.f32 %v7578_v37, %v741_v48  ;;  %v2750_v41 = vadd.f32 %v7586_v52, %v550_v49  ;;  %v615_v37 = vld [vmem:[#allocation2 + $0x290] sm:$0xff] }
 0x181   : > { %v5941_v2 = vpop.eup %5940  ;;  %4418 = vst.msk [vmem:[%s6736_s10 + $0x230] sm:$0xf] %vm4277_vm4, %v4161_v62  ;;  %v4034_v5 = vpack.c.bf16 %v5939_v63, %v5939_v63  ;;  %v678_v50 = vld [vmem:[#allocation2 + $0x488] sm:$0xff]  ;;  %v2814_v8 = vadd.f32 %v7588_v35, %v614_v53  ;;  %v679_v57 = vld [vmem:[#allocation2 + $0x490] sm:$0xff] }
 0x182   : > { %v5943_v0 = vpop.eup %5942  ;;  %4482 = vst.msk [vmem:[%s6736_s10 + $0x330] sm:$0xf] %vm4277_vm4, %v4225_v40  ;;  %v4098_v12 = vpack.c.bf16 %v5941_v2, %v5941_v2  ;;  %v7644_v36 = vpop.f32.mrf.mxu1  ;;  %v742_v58 = vld [vmem:[#allocation2 + $0x688] sm:$0xff]  ;;  %v2878_v59 = vadd.f32 %v7604_v4, %v678_v50  ;;  %v2751_v2 = vadd.f32 %v7612_v43, %v551_v32  ;;  %v2879_v7 = vadd.f32 %v2458_v38, %v679_v57  ;;  %v5610_v43 = vld [vmem:[%s6534_s5 + $0x90] sm:$0xff] }
 0x183   : > { %v5945_v1 = vpop.eup %5944  ;;  %4291 = vst.msk [vmem:[%s6736_s10 + $0x34] sm:$0xf] %vm4277_vm4, %v4034_v5  ;;  %v4162_v16 = vpack.c.bf16 %v5943_v0, %v5943_v0  ;;  %v2942_v52 = vadd.f32 %v7606_v9, %v742_v58  ;;  %v743_v5 = vld [vmem:[#allocation2 + $0x690] sm:$0xff]  ;;  %v2815_v0 = vadd.f32 %v7614_v10, %v615_v37 }
 0x184   : > { %v5947_v27 = vpop.eup %5946  ;;  %4355 = vst.msk [vmem:[%s6736_s10 + $0x134] sm:$0xf] %vm4277_vm4, %v4098_v12  ;;  %v4226_v18 = vpack.c.bf16 %v5945_v1, %v5945_v1  ;;  %v552_v12 = vld [vmem:[#allocation2 + $0x98] sm:$0xff]  ;;  %v2943_v19 = vadd.f32 %v2618_v44, %v743_v5 }
 0x185   : > { %v5949_v39 = vpop.eup %5948  ;;  %4419 = vst.msk [vmem:[%s6736_s10 + $0x234] sm:$0xf] %vm4277_vm4, %v4162_v16  ;;  %v4035_v13 = vpack.c.bf16 %v5947_v27, %v5947_v27  ;;  %v5642_v27 = vld [vmem:[%s6534_s5 + $0x190] sm:$0xff] }
 0x186   : > { %4483 = vst.msk [vmem:[%s6736_s10 + $0x334] sm:$0xf] %vm4277_vm4, %v4226_v18  ;;  %v4099_v22 = vpack.c.bf16 %v5949_v39, %v5949_v39  ;;  %v7662_v62 = vpop.f32.mrf.mxu2 }
 0x187   : > { %4292 = vst.msk [vmem:[%s6736_s10 + $0x38] sm:$0xf] %vm4277_vm4, %v4035_v13  ;;  %v7664_v35 = vpop.f32.mrf.mxu3 }
 0x188   : > { %4356 = vst.msk [vmem:[%s6736_s10 + $0x138] sm:$0xf] %vm4277_vm4, %v4099_v22  ;;  %v7672_v14 = vpop.f32.mrf.mxu0 }
 0x189   : > { %3132 = vst.msk [vmem:[#allocation2 + $0x470] sm:$0xff] %vm276_vm3, %v2875_v42  ;;  %v2752_v42 = vadd.f32 %v2140_v45, %v552_v12 }
 0x18a   : > { %3196 = vst.msk [vmem:[#allocation2 + $0x670] sm:$0xff] %vm276_vm3, %v2939_v29  ;;  %v7674_v1 = vpop.f32.mrf.mxu1 }
 0x18b   : > { %3005 = vst.msk [vmem:[#allocation2 + $0x78] sm:$0xff] %vm276_vm3, %v2748_v26 }
 0x18c   : > { %3069 = vst.msk [vmem:[#allocation2 + $0x278] sm:$0xff] %vm276_vm3, %v2812_v23  ;;  %5465 = vmatmul.msk.bf16.gmra.mxu0 %vm1692_vm2, %v5610_v43 }
 0x18d   : > { %3133 = vst.msk [vmem:[#allocation2 + $0x478] sm:$0xff] %vm276_vm3, %v2876_v24  ;;  %5497 = vmatmul.msk.bf16.gmra.mxu1 %vm1692_vm2, %v5642_v27 }
 0x18e   : > { %3197 = vst.msk [vmem:[#allocation2 + $0x678] sm:$0xff] %vm276_vm3, %v2940_v6  ;;  %5529 = vmatmul.msk.bf16.gmra.mxu2 %vm1692_vm2, %v5674_v30  ;;  %v7696_v24 = vpop.f32.mrf.mxu2 }
 0x18f   : > { %3006 = vst.msk [vmem:[#allocation2 + $0x80] sm:$0xff] %vm276_vm3, %v2749_v47  ;;  %5561 = vmatmul.msk.bf16.gmra.mxu3 %vm1692_vm2, %v5706_v20  ;;  %v7698_v11 = vpop.f32.mrf.mxu3 }
 0x190   : > { %v3391_v54 = vld [vmem:[#allocation2 + $0x470] sm:$0xff]  ;;  %3070 = vst.msk [vmem:[#allocation2 + $0x280] sm:$0xff] %vm276_vm3, %v2813_v60  ;;  %v7705_v49 = vpop.f32.mrf.mxu0 }
 0x191   : > { %v3651_v55 = vadd.f32 %v7366_v15, %v3391_v54  ;;  %v3455_v34 = vld [vmem:[#allocation2 + $0x670] sm:$0xff]  ;;  %3134 = vst.msk [vmem:[#allocation2 + $0x480] sm:$0xff] %vm276_vm3, %v2877_v51 }
 0x192   : > { %v3715_v56 = vadd.f32 %v7366_v15, %v3455_v34  ;;  %v3264_v3 = vld [vmem:[#allocation2 + $0x78] sm:$0xff]  ;;  %3198 = vst.msk [vmem:[#allocation2 + $0x680] sm:$0xff] %vm276_vm3, %v2941_v28  ;;  %v7707_v51 = vpop.f32.mrf.mxu1 }
 0x193   : > { %5950 = vtanh.f32 %v3651_v55  ;;  %v3524_v63 = vadd.f32 %v7366_v15, %v3264_v3  ;;  %v3328_v40 = vld [vmem:[#allocation2 + $0x278] sm:$0xff]  ;;  %3007 = vst.msk [vmem:[#allocation2 + $0x88] sm:$0xff] %vm276_vm3, %v2750_v41 }
 0x194   : > { %5952 = vtanh.f32 %v3715_v56  ;;  %v3588_v4 = vadd.f32 %v7366_v15, %v3328_v40  ;;  %v3392_v9 = vld [vmem:[#allocation2 + $0x478] sm:$0xff]  ;;  %3071 = vst.msk [vmem:[#allocation2 + $0x288] sm:$0xff] %vm276_vm3, %v2814_v8 }
 0x195   : > { %5954 = vtanh.f32 %v3524_v63  ;;  %v3652_v16 = vadd.f32 %v7366_v15, %v3392_v9  ;;  %v3456_v17 = vld [vmem:[#allocation2 + $0x678] sm:$0xff]  ;;  %3135 = vst.msk [vmem:[#allocation2 + $0x488] sm:$0xff] %vm276_vm3, %v2878_v59 }
 0x196   : > { %5956 = vtanh.f32 %v3588_v4  ;;  %v3716_v18 = vadd.f32 %v7366_v15, %v3456_v17  ;;  %v3265_v10 = vld [vmem:[#allocation2 + $0x80] sm:$0xff]  ;;  %3199 = vst.msk [vmem:[#allocation2 + $0x688] sm:$0xff] %vm276_vm3, %v2942_v52 }
 0x197   : > { %5958 = vtanh.f32 %v3652_v16  ;;  %v3525_v39 = vadd.f32 %v7366_v15, %v3265_v10  ;;  %v3329_v13 = vld [vmem:[#allocation2 + $0x280] sm:$0xff]  ;;  %3008 = vst.msk [vmem:[#allocation2 + $0x90] sm:$0xff] %vm276_vm3, %v2751_v2  ;;  %v7732_v16 = vpop.f32.mrf.mxu2  ;;  %v7734_v17 = vpop.f32.mrf.mxu3 }
 0x198   : > { %5960 = vtanh.f32 %v3716_v18  ;;  %v3589_v21 = vadd.f32 %v7366_v15, %v3329_v13  ;;  %v3393_v61 = vld [vmem:[#allocation2 + $0x480] sm:$0xff]  ;;  %3072 = vst.msk [vmem:[#allocation2 + $0x290] sm:$0xff] %vm276_vm3, %v2815_v0  ;;  %v5611_v13 = vld [vmem:[%s6534_s5 + $0x98] sm:$0xff] }
 0x199   : > { %v5951_v22 = vpop.eup %5950  ;;  %5962 = vtanh.f32 %v3525_v39  ;;  %v3653_v29 = vadd.f32 %v7366_v15, %v3393_v61  ;;  %v3457_v25 = vld [vmem:[#allocation2 + $0x680] sm:$0xff]  ;;  %3136 = vst.msk [vmem:[#allocation2 + $0x490] sm:$0xff] %vm276_vm3, %v2879_v7 }
 0x19a   : > { %v5953_v26 = vpop.eup %5952  ;;  %v4163_v31 = vpack.c.bf16 %v5951_v22, %v5951_v22  ;;  %5964 = vtanh.f32 %v3589_v21  ;;  %v3717_v23 = vadd.f32 %v7366_v15, %v3457_v25  ;;  %v3266_v33 = vld [vmem:[#allocation2 + $0x88] sm:$0xff]  ;;  %3200 = vst.msk [vmem:[#allocation2 + $0x690] sm:$0xff] %vm276_vm3, %v2943_v19  ;;  %v7726_v2 = vld [vmem:[%s9116_s2] ss:$0 sm:$0xff]  ;;  %v7741_v19 = vpop.f32.mrf.mxu0  ;;  %v5675_v21 = vld [vmem:[%s6534_s5 + $0x298] sm:$0xff] }
 0x19b   : > { %v5955_v38 = vpop.eup %5954  ;;  %v4227_v44 = vpack.c.bf16 %v5953_v26, %v5953_v26  ;;  %5966 = vtanh.f32 %v3653_v29  ;;  %v3526_v6 = vadd.f32 %v7366_v15, %v3266_v33  ;;  %v3330_v46 = vld [vmem:[#allocation2 + $0x288] sm:$0xff]  ;;  %3009 = vst.msk [vmem:[#allocation2 + $0x98] sm:$0xff] %vm276_vm3, %v2752_v42  ;;  %v7743_v30 = vpop.f32.mrf.mxu1  ;;  %v5643_v42 = vld [vmem:[%s6534_s5 + $0x198] sm:$0xff] }
 0x19c   : > { %v5957_v47 = vpop.eup %5956  ;;  %4420 = vst.msk [vmem:[%s6736_s10 + $0x238] sm:$0xf] %vm4277_vm4, %v4163_v31  ;;  %v4036_v48 = vpack.c.bf16 %v5955_v38, %v5955_v38  ;;  %5968 = vtanh.f32 %v3717_v23  ;;  %v3590_v45 = vadd.f32 %v7366_v15, %v3330_v46  ;;  %v3394_v60 = vld [vmem:[#allocation2 + $0x488] sm:$0xff]  ;;  %v5707_v29 = vld [vmem:[%s6534_s5 + $0x398] sm:$0xff]  ;;  %5466 = vmatmul.msk.bf16.gmra.mxu0 %vm1692_vm2, %v5611_v13 }
 0x19d   : > { %v5959_v53 = vpop.eup %5958  ;;  %4484 = vst.msk [vmem:[%s6736_s10 + $0x338] sm:$0xf] %vm4277_vm4, %v4227_v44  ;;  %v4100_v28 = vpack.c.bf16 %v5957_v47, %v5957_v47  ;;  %5970 = vtanh.f32 %v3526_v6  ;;  %v3654_v50 = vadd.f32 %v7366_v15, %v3394_v60  ;;  %v3458_v41 = vld [vmem:[#allocation2 + $0x688] sm:$0xff]  ;;  %5498 = vmatmul.msk.bf16.gmra.mxu1 %vm1692_vm2, %v5643_v42  ;;  %v616_v33 = vld [vmem:[#allocation2 + $0x298] sm:$0xff] }
 0x19e   : > { %v5961_v58 = vpop.eup %5960  ;;  %4293 = vst.msk [vmem:[%s6736_s10 + $0x3c] sm:$0xf] %vm4277_vm4, %v4036_v48  ;;  %v4164_v54 = vpack.c.bf16 %v5959_v53, %v5959_v53  ;;  %5972 = vtanh.f32 %v3590_v45  ;;  %v3718_v8 = vadd.f32 %v7366_v15, %v3458_v41  ;;  %v3267_v32 = vld [vmem:[#allocation2 + $0x90] sm:$0xff]  ;;  %5530 = vmatmul.msk.bf16.gmra.mxu2 %vm1692_vm2, %v5675_v21  ;;  %v680_v6 = vld [vmem:[#allocation2 + $0x498] sm:$0xff]  ;;  %v553_v41 = vld [vmem:[#allocation2 + $0xa0] sm:$0xff] }
 0x19f   : > { %v5963_v55 = vpop.eup %5962  ;;  %4357 = vst.msk [vmem:[%s6736_s10 + $0x13c] sm:$0xf] %vm4277_vm4, %v4100_v28  ;;  %v4228_v34 = vpack.c.bf16 %v5961_v58, %v5961_v58  ;;  %5974 = vtanh.f32 %v3654_v50  ;;  %v3527_v59 = vadd.f32 %v7366_v15, %v3267_v32  ;;  %v3331_v37 = vld [vmem:[#allocation2 + $0x290] sm:$0xff]  ;;  %5562 = vmatmul.msk.bf16.gmra.mxu3 %vm1692_vm2, %v5707_v29  ;;  %v744_v48 = vld [vmem:[#allocation2 + $0x698] sm:$0xff]  ;;  %v2468_v45 = vpop.f32.mrf.mxu2  ;;  %v2816_v50 = vadd.f32 %v7644_v36, %v616_v33 }
 0x1a0   : > { %v5965_v56 = vpop.eup %5964  ;;  %4421 = vst.msk [vmem:[%s6736_s10 + $0x23c] sm:$0xf] %vm4277_vm4, %v4164_v54  ;;  %v4037_v3 = vpack.c.bf16 %v5963_v55, %v5963_v55  ;;  %5976 = vtanh.f32 %v3718_v8  ;;  %v3591_v52 = vadd.f32 %v7366_v15, %v3331_v37  ;;  %v3395_v57 = vld [vmem:[#allocation2 + $0x490] sm:$0xff]  ;;  %v7765_v60 = vpop.f32.mrf.mxu3  ;;  %v2880_v54 = vadd.f32 %v7662_v62, %v680_v6  ;;  %v617_v8 = vld [vmem:[#allocation2 + $0x2a0] sm:$0xff]  ;;  %v554_v62 = vld [vmem:[#allocation2 + $0xa8] sm:$0xff] }
 0x1a1   : > { %v5967_v63 = vpop.eup %5966  ;;  %4485 = vst.msk [vmem:[%s6736_s10 + $0x33c] sm:$0xf] %vm4277_vm4, %v4228_v34  ;;  %v4101_v40 = vpack.c.bf16 %v5965_v56, %v5965_v56  ;;  %5978 = vtanh.f32 %v3527_v59  ;;  %v3655_v5 = vadd.f32 %v7726_v2, %v3395_v57  ;;  %v3459_v4 = vld [vmem:[#allocation2 + $0x690] sm:$0xff]  ;;  %v2944_v34 = vadd.f32 %v7664_v35, %v744_v48  ;;  %v681_v59 = vld [vmem:[#allocation2 + $0x4a0] sm:$0xff]  ;;  %v682_v57 = vld [vmem:[#allocation2 + $0x4a8] sm:$0xff] }
 0x1a2   : > { %v5969_v9 = vpop.eup %5968  ;;  %4294 = vst.msk [vmem:[%s6736_s10 + $0x40] sm:$0xf] %vm4277_vm4, %v4037_v3  ;;  %v4165_v15 = vpack.c.bf16 %v5967_v63, %v5967_v63  ;;  %5980 = vtanh.f32 %v3591_v52  ;;  %v3719_v0 = vadd.f32 %v7726_v2, %v3459_v4  ;;  %v3268_v12 = vld [vmem:[#allocation2 + $0x98] sm:$0xff]  ;;  %v7773_v32 = vpop.f32.mrf.mxu0  ;;  %v2753_v36 = vadd.f32 %v7672_v14, %v553_v41  ;;  %v745_v37 = vld [vmem:[#allocation2 + $0x6a0] sm:$0xff]  ;;  %v618_v52 = vld [vmem:[#allocation2 + $0x2a8] sm:$0xff] }
 0x1a3   : > { %v5971_v7 = vpop.eup %5970  ;;  %4358 = vst.msk [vmem:[%s6736_s10 + $0x140] sm:$0xf] %vm4277_vm4, %v4101_v40  ;;  %v4229_v43 = vpack.c.bf16 %v5969_v9, %v5969_v9  ;;  %5982 = vtanh.f32 %v3655_v5  ;;  %v3528_v27 = vadd.f32 %v7726_v2, %v3268_v12  ;;  %v7775_v55 = vpop.f32.mrf.mxu1  ;;  %v2817_v56 = vadd.f32 %v7674_v1, %v617_v8  ;;  %v746_v63 = vld [vmem:[#allocation2 + $0x6a8] sm:$0xff]  ;;  %v555_v5 = vld [vmem:[#allocation2 + $0xb0] sm:$0xff]  ;;  %v5612_v12 = vld [vmem:[%s6534_s5 + $0xa0] sm:$0xff] }
 0x1a4   : > { %v5973_v18 = vpop.eup %5972  ;;  %4422 = vst.msk [vmem:[%s6736_s10 + $0x240] sm:$0xf] %vm4277_vm4, %v4165_v15  ;;  %v4038_v10 = vpack.c.bf16 %v5971_v7, %v5971_v7  ;;  %5984 = vtanh.f32 %v3719_v0  ;;  %v2881_v3 = vadd.f32 %v7696_v24, %v681_v59  ;;  %v2945_v35 = vadd.f32 %v7698_v11, %v745_v37  ;;  %v619_v4 = vld [vmem:[#allocation2 + $0x2b0] sm:$0xff]  ;;  %v5644_v7 = vld [vmem:[%s6534_s5 + $0x1a0] sm:$0xff]  ;;  %v556_v13 = vld [vmem:[#allocation2 + $0xb8] sm:$0xff] }
 0x1a5   : > { %v5975_v20 = vpop.eup %5974  ;;  %4486 = vst.msk [vmem:[%s6736_s10 + $0x340] sm:$0xf] %vm4277_vm4, %v4229_v43  ;;  %v4102_v39 = vpack.c.bf16 %v5973_v18, %v5973_v18  ;;  %5986 = vtanh.f32 %v3528_v27  ;;  %v2754_v14 = vadd.f32 %v7705_v49, %v554_v62  ;;  %v2818_v24 = vadd.f32 %v7707_v51, %v618_v52  ;;  %v683_v9 = vld [vmem:[#allocation2 + $0x4b0] sm:$0xff]  ;;  %v5676_v43 = vld [vmem:[%s6534_s5 + $0x2a0] sm:$0xff]  ;;  %v620_v21 = vld [vmem:[#allocation2 + $0x2b8] sm:$0xff] }
 0x1a6   : > { %v5977_v61 = vpop.eup %5976  ;;  %4295 = vst.msk [vmem:[%s6736_s10 + $0x44] sm:$0xf] %vm4277_vm4, %v4038_v10  ;;  %v4166_v22 = vpack.c.bf16 %v5975_v20, %v5975_v20  ;;  %v2882_v11 = vadd.f32 %v7732_v16, %v682_v57  ;;  %v2946_v0 = vadd.f32 %v7734_v17, %v746_v63  ;;  %v2755_v27 = vadd.f32 %v7741_v19, %v555_v5  ;;  %v747_v18 = vld [vmem:[#allocation2 + $0x6b0] sm:$0xff]  ;;  %v5708_v16 = vld [vmem:[%s6534_s5 + $0x3a0] sm:$0xff]  ;;  %v684_v29 = vld [vmem:[#allocation2 + $0x4b8] sm:$0xff] }
 0x1a7   : > { %v5979_v25 = vpop.eup %5978  ;;  %4359 = vst.msk [vmem:[%s6736_s10 + $0x144] sm:$0xf] %vm4277_vm4, %v4102_v39  ;;  %v4230_v26 = vpack.c.bf16 %v5977_v61, %v5977_v61  ;;  %v2470_v1 = vpop.f32.mrf.mxu2  ;;  %v2819_v39 = vadd.f32 %v7743_v30, %v619_v4  ;;  %v2883_v19 = vadd.f32 %v2468_v45, %v683_v9 }
 0x1a8   : > { %v5981_v31 = vpop.eup %5980  ;;  %4423 = vst.msk [vmem:[%s6736_s10 + $0x244] sm:$0xf] %vm4277_vm4, %v4166_v22  ;;  %v4039_v23 = vpack.c.bf16 %v5979_v25, %v5979_v25  ;;  %v7791_v40 = vpop.f32.mrf.mxu3  ;;  %v2947_v22 = vadd.f32 %v7765_v60, %v747_v18  ;;  %v2884_v45 = vadd.f32 %v2470_v1, %v684_v29 }
 0x1a9   : > { %v5983_v38 = vpop.eup %5982  ;;  %4487 = vst.msk [vmem:[%s6736_s10 + $0x344] sm:$0xf] %vm4277_vm4, %v4230_v26  ;;  %v4103_v44 = vpack.c.bf16 %v5981_v31, %v5981_v31  ;;  %v2756_v31 = vadd.f32 %v7773_v32, %v556_v13 }
 0x1aa   : > { %v5985_v46 = vpop.eup %5984  ;;  %4296 = vst.msk [vmem:[%s6736_s10 + $0x48] sm:$0xf] %vm4277_vm4, %v4039_v23  ;;  %v4167_v47 = vpack.c.bf16 %v5983_v38, %v5983_v38  ;;  %v7797_v15 = vpop.f32.mrf.mxu0  ;;  %v748_v23 = vld [vmem:[#allocation2 + $0x6b8] sm:$0xff] }
 0x1ab   : > { %v5987_v53 = vpop.eup %5986  ;;  %4360 = vst.msk [vmem:[%s6736_s10 + $0x148] sm:$0xf] %vm4277_vm4, %v4103_v44  ;;  %v4231_v28 = vpack.c.bf16 %v5985_v46, %v5985_v46  ;;  %v7799_v49 = vpop.f32.mrf.mxu1  ;;  %v2820_v46 = vadd.f32 %v7775_v55, %v620_v21  ;;  %v2948_v41 = vadd.f32 %v7791_v40, %v748_v23  ;;  %v5677_v21 = vld [vmem:[%s6534_s5 + $0x2a8] sm:$0xff] }
 0x1ac   : > { %4424 = vst.msk [vmem:[%s6736_s10 + $0x248] sm:$0xf] %vm4277_vm4, %v4167_v47  ;;  %v4040_v58 = vpack.c.bf16 %v5987_v53, %v5987_v53  ;;  %5467 = vmatmul.msk.bf16.gmra.mxu0 %vm1692_vm2, %v5612_v12 }
 0x1ad   : > { %4488 = vst.msk [vmem:[%s6736_s10 + $0x348] sm:$0xf] %vm4277_vm4, %v4231_v28  ;;  %5499 = vmatmul.msk.bf16.gmra.mxu1 %vm1692_vm2, %v5644_v7 }
 0x1ae   : > { %4297 = vst.msk [vmem:[%s6736_s10 + $0x4c] sm:$0xf] %vm4277_vm4, %v4040_v58  ;;  %5531 = vmatmul.msk.bf16.gmra.mxu2 %vm1692_vm2, %v5676_v43 }
 0x1af   : > { %3073 = vst.msk [vmem:[#allocation2 + $0x298] sm:$0xff] %vm276_vm3, %v2816_v50  ;;  %5563 = vmatmul.msk.bf16.gmra.mxu3 %vm1692_vm2, %v5708_v16  ;;  %v7824_v33 = vpop.f32.mrf.mxu2 }
 0x1b0   : > { %3137 = vst.msk [vmem:[#allocation2 + $0x498] sm:$0xff] %vm276_vm3, %v2880_v54  ;;  %v7826_v38 = vpop.f32.mrf.mxu3 }
 0x1b1   : > { %3201 = vst.msk [vmem:[#allocation2 + $0x698] sm:$0xff] %vm276_vm3, %v2944_v34 }
 0x1b2   : > { %3010 = vst.msk [vmem:[#allocation2 + $0xa0] sm:$0xff] %vm276_vm3, %v2753_v36  ;;  %v7833_v60 = vpop.f32.mrf.mxu0 }
 0x1b3   : > { %3074 = vst.msk [vmem:[#allocation2 + $0x2a0] sm:$0xff] %vm276_vm3, %v2817_v56  ;;  %v7835_v53 = vpop.f32.mrf.mxu1 }
 0x1b4   : > { %3138 = vst.msk [vmem:[#allocation2 + $0x4a0] sm:$0xff] %vm276_vm3, %v2881_v3 }
 0x1b5   : > { %3202 = vst.msk [vmem:[#allocation2 + $0x6a0] sm:$0xff] %vm276_vm3, %v2945_v35 }
 0x1b6   : > { %v3332_v51 = vld [vmem:[#allocation2 + $0x298] sm:$0xff]  ;;  %3011 = vst.msk [vmem:[#allocation2 + $0xa8] sm:$0xff] %vm276_vm3, %v2754_v14 }
 0x1b7   : > { %v3592_v10 = vadd.f32 %v7726_v2, %v3332_v51  ;;  %v3396_v20 = vld [vmem:[#allocation2 + $0x498] sm:$0xff]  ;;  %3075 = vst.msk [vmem:[#allocation2 + $0x2a8] sm:$0xff] %vm276_vm3, %v2818_v24  ;;  %v7851_v1 = vpop.f32.mrf.mxu2 }
 0x1b8   : > { %v3656_v17 = vadd.f32 %v7726_v2, %v3396_v20  ;;  %v3460_v42 = vld [vmem:[#allocation2 + $0x698] sm:$0xff]  ;;  %3139 = vst.msk [vmem:[#allocation2 + $0x4a8] sm:$0xff] %vm276_vm3, %v2882_v11  ;;  %v7853_v40 = vpop.f32.mrf.mxu3  ;;  %v5613_v20 = vld [vmem:[%s6534_s5 + $0xa8] sm:$0xff] }
 0x1b9   : > { %5988 = vtanh.f32 %v3592_v10  ;;  %v3720_v61 = vadd.f32 %v7726_v2, %v3460_v42  ;;  %v3269_v30 = vld [vmem:[#allocation2 + $0xa0] sm:$0xff]  ;;  %3203 = vst.msk [vmem:[#allocation2 + $0x6a8] sm:$0xff] %vm276_vm3, %v2946_v0 }
 0x1ba   : > { %5990 = vtanh.f32 %v3656_v17  ;;  %v3529_v25 = vadd.f32 %v7726_v2, %v3269_v30  ;;  %v3333_v26 = vld [vmem:[#allocation2 + $0x2a0] sm:$0xff]  ;;  %3012 = vst.msk [vmem:[#allocation2 + $0xb0] sm:$0xff] %vm276_vm3, %v2755_v27  ;;  %v7861_v43 = vpop.f32.mrf.mxu0 }
 0x1bb   : > { %5992 = vtanh.f32 %v3720_v61  ;;  %v3593_v44 = vadd.f32 %v7726_v2, %v3333_v26  ;;  %v3397_v6 = vld [vmem:[#allocation2 + $0x4a0] sm:$0xff]  ;;  %3076 = vst.msk [vmem:[#allocation2 + $0x2b0] sm:$0xff] %vm276_vm3, %v2819_v39  ;;  %v7863_v51 = vpop.f32.mrf.mxu1  ;;  %v5645_v39 = vld [vmem:[%s6534_s5 + $0x1a8] sm:$0xff] }
 0x1bc   : > { %5994 = vtanh.f32 %v3529_v25  ;;  %v3657_v47 = vadd.f32 %v7726_v2, %v3397_v6  ;;  %v3461_v48 = vld [vmem:[#allocation2 + $0x6a0] sm:$0xff]  ;;  %3140 = vst.msk [vmem:[#allocation2 + $0x4b0] sm:$0xff] %vm276_vm3, %v2883_v19  ;;  %v5709_v61 = vld [vmem:[%s6534_s5 + $0x3a8] sm:$0xff]  ;;  %5468 = vmatmul.msk.bf16.gmra.mxu0 %vm1692_vm2, %v5613_v20 }
 0x1bd   : > { %5996 = vtanh.f32 %v3593_v44  ;;  %v3721_v28 = vadd.f32 %v7726_v2, %v3461_v48  ;;  %v3270_v50 = vld [vmem:[#allocation2 + $0xa8] sm:$0xff]  ;;  %3204 = vst.msk [vmem:[#allocation2 + $0x6b0] sm:$0xff] %vm276_vm3, %v2947_v22  ;;  %5500 = vmatmul.msk.bf16.gmra.mxu1 %vm1692_vm2, %v5645_v39 }
 0x1be   : > { %5998 = vtanh.f32 %v3657_v47  ;;  %v3530_v58 = vadd.f32 %v7726_v2, %v3270_v50  ;;  %v3334_v54 = vld [vmem:[#allocation2 + $0x2a8] sm:$0xff]  ;;  %3013 = vst.msk [vmem:[#allocation2 + $0xb8] sm:$0xff] %vm276_vm3, %v2756_v31  ;;  %5532 = vmatmul.msk.bf16.gmra.mxu2 %vm1692_vm2, %v5677_v21  ;;  %v5710_v21 = vld [vmem:[%s6534_s5 + $0x3b0] sm:$0xff] }
 0x1bf   : > { %v5989_v8 = vpop.eup %5988  ;;  %6000 = vtanh.f32 %v3721_v28  ;;  %v3594_v32 = vadd.f32 %v7726_v2, %v3334_v54  ;;  %v3398_v55 = vld [vmem:[#allocation2 + $0x4a8] sm:$0xff]  ;;  %3077 = vst.msk [vmem:[#allocation2 + $0x2b8] sm:$0xff] %vm276_vm3, %v2820_v46  ;;  %5564 = vmatmul.msk.bf16.gmra.mxu3 %vm1692_vm2, %v5709_v61  ;;  %v7890_v28 = vpop.f32.mrf.mxu2  ;;  %v623_v61 = vld [vmem:[#allocation2 + $0x2d0] sm:$0xff] }
 0x1c0   : > { %v5991_v34 = vpop.eup %5990  ;;  %v4104_v59 = vpack.c.bf16 %v5989_v8, %v5989_v8  ;;  %6002 = vtanh.f32 %v3530_v58  ;;  %v3658_v36 = vadd.f32 %v7726_v2, %v3398_v55  ;;  %v3462_v37 = vld [vmem:[#allocation2 + $0x6a8] sm:$0xff]  ;;  %3141 = vst.msk [vmem:[#allocation2 + $0x4b8] sm:$0xff] %vm276_vm3, %v2884_v45  ;;  %v7892_v50 = vpop.f32.mrf.mxu3 }
 0x1c1   : > { %v5993_v56 = vpop.eup %5992  ;;  %v4168_v62 = vpack.c.bf16 %v5991_v34, %v5991_v34  ;;  %6004 = vtanh.f32 %v3594_v32  ;;  %v3722_v3 = vadd.f32 %v7726_v2, %v3462_v37  ;;  %v3271_v52 = vld [vmem:[#allocation2 + $0xb0] sm:$0xff]  ;;  %3205 = vst.msk [vmem:[#allocation2 + $0x6b8] sm:$0xff] %vm276_vm3, %v2948_v41 }
 0x1c2   : > { %v5995_v35 = vpop.eup %5994  ;;  %4361 = vst.msk [vmem:[%s6736_s10 + $0x14c] sm:$0xf] %vm4277_vm4, %v4104_v59  ;;  %v4232_v57 = vpack.c.bf16 %v5993_v56, %v5993_v56  ;;  %6006 = vtanh.f32 %v3658_v36  ;;  %v3531_v14 = vadd.f32 %v7726_v2, %v3271_v52  ;;  %v3335_v63 = vld [vmem:[#allocation2 + $0x2b0] sm:$0xff]  ;;  %v7898_v32 = vpop.f32.mrf.mxu0  ;;  %v557_v56 = vld [vmem:[#allocation2 + $0xc0] sm:$0xff] }
 0x1c3   : > { %v5997_v24 = vpop.eup %5996  ;;  %4425 = vst.msk [vmem:[%s6736_s10 + $0x24c] sm:$0xf] %vm4277_vm4, %v4168_v62  ;;  %v4041_v5 = vpack.c.bf16 %v5995_v35, %v5995_v35  ;;  %6008 = vtanh.f32 %v3722_v3  ;;  %v3595_v11 = vadd.f32 %v7726_v2, %v3335_v63  ;;  %v3399_v4 = vld [vmem:[#allocation2 + $0x4b0] sm:$0xff]  ;;  %v7900_v55 = vpop.f32.mrf.mxu1  ;;  %v621_v52 = vld [vmem:[#allocation2 + $0x2c0] sm:$0xff] }
 0x1c4   : > { %v5999_v9 = vpop.eup %5998  ;;  %4489 = vst.msk [vmem:[%s6736_s10 + $0x34c] sm:$0xf] %vm4277_vm4, %v4232_v57  ;;  %v4105_v0 = vpack.c.bf16 %v5997_v24, %v5997_v24  ;;  %6010 = vtanh.f32 %v3531_v14  ;;  %v3659_v12 = vadd.f32 %v7726_v2, %v3399_v4  ;;  %v3463_v7 = vld [vmem:[#allocation2 + $0x6b0] sm:$0xff]  ;;  %v685_v14 = vld [vmem:[#allocation2 + $0x4c0] sm:$0xff] }
 0x1c5   : > { %v6001_v27 = vpop.eup %6000  ;;  %4298 = vst.msk [vmem:[%s6736_s10 + $0x50] sm:$0xf] %vm4277_vm4, %v4041_v5  ;;  %v4169_v18 = vpack.c.bf16 %v5999_v9, %v5999_v9  ;;  %6012 = vtanh.f32 %v3595_v11  ;;  %v3723_v16 = vadd.f32 %v7726_v2, %v3463_v7  ;;  %v3272_v10 = vld [vmem:[#allocation2 + $0xb8] sm:$0xff]  ;;  %v2757_v5 = vadd.f32 %v7797_v15, %v557_v56  ;;  %v749_v11 = vld [vmem:[#allocation2 + $0x6c0] sm:$0xff] }
 0x1c6   : > { %v6003_v13 = vpop.eup %6002  ;;  %4362 = vst.msk [vmem:[%s6736_s10 + $0x150] sm:$0xf] %vm4277_vm4, %v4105_v0  ;;  %v4233_v17 = vpack.c.bf16 %v6001_v27, %v6001_v27  ;;  %6014 = vtanh.f32 %v3659_v12  ;;  %v3532_v42 = vadd.f32 %v7726_v2, %v3272_v10  ;;  %v3336_v19 = vld [vmem:[#allocation2 + $0x2b8] sm:$0xff]  ;;  %v2821_v9 = vadd.f32 %v7799_v49, %v621_v52  ;;  %v558_v0 = vld [vmem:[#allocation2 + $0xc8] sm:$0xff]  ;;  %v689_v56 = vld [vmem:[#allocation2 + $0x4e0] sm:$0xff] }
 0x1c7   : > { %v6005_v30 = vpop.eup %6004  ;;  %4426 = vst.msk [vmem:[%s6736_s10 + $0x250] sm:$0xf] %vm4277_vm4, %v4169_v18  ;;  %v4042_v22 = vpack.c.bf16 %v6003_v13, %v6003_v13  ;;  %6016 = vtanh.f32 %v3723_v16  ;;  %v3596_v29 = vadd.f32 %v7726_v2, %v3336_v19  ;;  %v3400_v25 = vld [vmem:[#allocation2 + $0x4b8] sm:$0xff]  ;;  %v2480_v12 = vpop.f32.mrf.mxu2  ;;  %v2885_v27 = vadd.f32 %v7824_v33, %v685_v14  ;;  %v622_v18 = vld [vmem:[#allocation2 + $0x2c8] sm:$0xff]  ;;  %v5614_v13 = vld [vmem:[%s6534_s5 + $0xb0] sm:$0xff] }
 0x1c8   : > { %v6007_v26 = vpop.eup %6006  ;;  %4490 = vst.msk [vmem:[%s6736_s10 + $0x350] sm:$0xf] %vm4277_vm4, %v4233_v17  ;;  %v4106_v31 = vpack.c.bf16 %v6005_v30, %v6005_v30  ;;  %6018 = vtanh.f32 %v3532_v42  ;;  %v3660_v23 = vadd.f32 %v7726_v2, %v3400_v25  ;;  %v3464_v44 = vld [vmem:[#allocation2 + $0x6b8] sm:$0xff]  ;;  %v7916_v7 = vpop.f32.mrf.mxu3  ;;  %v2949_v15 = vadd.f32 %v7826_v38, %v749_v11  ;;  %v686_v16 = vld [vmem:[#allocation2 + $0x4c8] sm:$0xff]  ;;  %v5646_v17 = vld [vmem:[%s6534_s5 + $0x1b0] sm:$0xff] }
 0x1c9   : > { %v6009_v6 = vpop.eup %6008  ;;  %4299 = vst.msk [vmem:[%s6736_s10 + $0x54] sm:$0xf] %vm4277_vm4, %v4042_v22  ;;  %v4170_v46 = vpack.c.bf16 %v6007_v26, %v6007_v26  ;;  %6020 = vtanh.f32 %v3596_v29  ;;  %v3724_v47 = vadd.f32 %v7726_v2, %v3464_v44  ;;  %v750_v10 = vld [vmem:[#allocation2 + $0x6c8] sm:$0xff]  ;;  %v2758_v39 = vadd.f32 %v7833_v60, %v558_v0  ;;  %v5678_v42 = vld [vmem:[%s6534_s5 + $0x2b0] sm:$0xff]  ;;  %v560_v29 = vld [vmem:[#allocation2 + $0xd8] sm:$0xff] }
 0x1ca   : > { %v6011_v48 = vpop.eup %6010  ;;  %4363 = vst.msk [vmem:[%s6736_s10 + $0x154] sm:$0xf] %vm4277_vm4, %v4106_v31  ;;  %v4234_v45 = vpack.c.bf16 %v6009_v6, %v6009_v6  ;;  %6022 = vtanh.f32 %v3660_v23  ;;  %v7924_v20 = vpop.f32.mrf.mxu0  ;;  %v2822_v33 = vadd.f32 %v7835_v53, %v622_v18  ;;  %v559_v19 = vld [vmem:[#allocation2 + $0xd0] sm:$0xff]  ;;  %v2886_v38 = vadd.f32 %v7851_v1, %v686_v16  ;;  %v624_v31 = vld [vmem:[#allocation2 + $0x2d8] sm:$0xff] }
 0x1cb   : > { %v6013_v41 = vpop.eup %6012  ;;  %4427 = vst.msk [vmem:[%s6736_s10 + $0x254] sm:$0xf] %vm4277_vm4, %v4170_v46  ;;  %v4043_v58 = vpack.c.bf16 %v6011_v48, %v6011_v48  ;;  %6024 = vtanh.f32 %v3724_v47  ;;  %v7926_v49 = vpop.f32.mrf.mxu1  ;;  %v2950_v60 = vadd.f32 %v7853_v40, %v750_v10  ;;  %v687_v30 = vld [vmem:[#allocation2 + $0x4d0] sm:$0xff]  ;;  %v2759_v53 = vadd.f32 %v7861_v43, %v559_v19  ;;  %v688_v43 = vld [vmem:[#allocation2 + $0x4d8] sm:$0xff] }
 0x1cc   : > { %v6015_v54 = vpop.eup %6014  ;;  %4491 = vst.msk [vmem:[%s6736_s10 + $0x354] sm:$0xf] %vm4277_vm4, %v4234_v45  ;;  %v4107_v8 = vpack.c.bf16 %v6013_v41, %v6013_v41  ;;  %5469 = vmatmul.msk.bf16.gmra.mxu0 %vm1692_vm2, %v5614_v13  ;;  %v751_v22 = vld [vmem:[#allocation2 + $0x6d0] sm:$0xff]  ;;  %v2823_v1 = vadd.f32 %v7863_v51, %v623_v61  ;;  %v2887_v40 = vadd.f32 %v7890_v28, %v687_v30  ;;  %v752_v45 = vld [vmem:[#allocation2 + $0x6d8] sm:$0xff] }
 0x1cd   : > { %v6017_v34 = vpop.eup %6016  ;;  %4300 = vst.msk [vmem:[%s6736_s10 + $0x58] sm:$0xf] %vm4277_vm4, %v4043_v58  ;;  %v4171_v59 = vpack.c.bf16 %v6015_v54, %v6015_v54  ;;  %5501 = vmatmul.msk.bf16.gmra.mxu1 %vm1692_vm2, %v5646_v17  ;;  %v2951_v44 = vadd.f32 %v7892_v50, %v751_v22  ;;  %v2760_v48 = vadd.f32 %v7898_v32, %v560_v29  ;;  %v561_v58 = vld [vmem:[#allocation2 + $0xe0] sm:$0xff]  ;;  %v5647_v16 = vld [vmem:[%s6534_s5 + $0x1b8] sm:$0xff] }
 0x1ce   : > { %v6019_v36 = vpop.eup %6018  ;;  %4364 = vst.msk [vmem:[%s6736_s10 + $0x158] sm:$0xf] %vm4277_vm4, %v4107_v8  ;;  %v4235_v37 = vpack.c.bf16 %v6017_v34, %v6017_v34  ;;  %5533 = vmatmul.msk.bf16.gmra.mxu2 %vm1692_vm2, %v5678_v42  ;;  %v2824_v50 = vadd.f32 %v7900_v55, %v624_v31  ;;  %v2888_v34 = vadd.f32 %v2480_v12, %v688_v43  ;;  %v5679_v13 = vld [vmem:[%s6534_s5 + $0x2b8] sm:$0xff] }
 0x1cf   : > { %v6021_v62 = vpop.eup %6020  ;;  %4428 = vst.msk [vmem:[%s6736_s10 + $0x258] sm:$0xf] %vm4277_vm4, %v4171_v59  ;;  %v4044_v3 = vpack.c.bf16 %v6019_v36, %v6019_v36  ;;  %5565 = vmatmul.msk.bf16.gmra.mxu3 %vm1692_vm2, %v5710_v21  ;;  %v625_v59 = vld [vmem:[#allocation2 + $0x2e0] sm:$0xff]  ;;  %v5711_v17 = vld [vmem:[%s6534_s5 + $0x3b8] sm:$0xff] }
 0x1d0   : > { %v6023_v35 = vpop.eup %6022  ;;  %4492 = vst.msk [vmem:[%s6736_s10 + $0x358] sm:$0xf] %vm4277_vm4, %v4235_v37  ;;  %v4108_v57 = vpack.c.bf16 %v6021_v62, %v6021_v62  ;;  %v2952_v37 = vadd.f32 %v7916_v7, %v752_v45 }
 0x1d1   : > { %v6025_v63 = vpop.eup %6024  ;;  %4301 = vst.msk [vmem:[%s6736_s10 + $0x5c] sm:$0xf] %vm4277_vm4, %v4044_v3  ;;  %v4172_v24 = vpack.c.bf16 %v6023_v35, %v6023_v35  ;;  %v2483_v25 = vpop.f32.mrf.mxu2  ;;  %v2761_v3 = vadd.f32 %v7924_v20, %v561_v58 }
 0x1d2   : > { %4365 = vst.msk [vmem:[%s6736_s10 + $0x15c] sm:$0xf] %vm4277_vm4, %v4108_v57  ;;  %v4236_v4 = vpack.c.bf16 %v6025_v63, %v6025_v63  ;;  %v7948_v26 = vpop.f32.mrf.mxu3  ;;  %v7954_v6 = vpop.f32.mrf.mxu0  ;;  %v2825_v57 = vadd.f32 %v7926_v49, %v625_v59  ;;  %v2889_v11 = vadd.f32 %v2483_v25, %v689_v56 }
 0x1d3   : > { %4429 = vst.msk [vmem:[%s6736_s10 + $0x25c] sm:$0xf] %vm4277_vm4, %v4172_v24  ;;  %v7956_v46 = vpop.f32.mrf.mxu1 }
 0x1d4   : > { %4493 = vst.msk [vmem:[%s6736_s10 + $0x35c] sm:$0xf] %vm4277_vm4, %v4236_v4 }
 0x1d5   : > { %3014 = vst.msk [vmem:[#allocation2 + $0xc0] sm:$0xff] %vm276_vm3, %v2757_v5 }
 0x1d6   : > { %3078 = vst.msk [vmem:[#allocation2 + $0x2c0] sm:$0xff] %vm276_vm3, %v2821_v9 }
 0x1d7   : > { %3142 = vst.msk [vmem:[#allocation2 + $0x4c0] sm:$0xff] %vm276_vm3, %v2885_v27 }
 0x1d8   : > { %3206 = vst.msk [vmem:[#allocation2 + $0x6c0] sm:$0xff] %vm276_vm3, %v2949_v15  ;;  %v5615_v15 = vld [vmem:[%s6534_s5 + $0xb8] sm:$0xff] }
 0x1d9   : > { %3015 = vst.msk [vmem:[#allocation2 + $0xc8] sm:$0xff] %vm276_vm3, %v2758_v39  ;;  %v7975_v14 = vpop.f32.mrf.mxu2 }
 0x1da   : > { %3079 = vst.msk [vmem:[#allocation2 + $0x2c8] sm:$0xff] %vm276_vm3, %v2822_v33  ;;  %v7977_v63 = vpop.f32.mrf.mxu3  ;;  %v7983_v0 = vpop.f32.mrf.mxu0 }
 0x1db   : > { %3143 = vst.msk [vmem:[#allocation2 + $0x4c8] sm:$0xff] %vm276_vm3, %v2886_v38  ;;  %v7985_v12 = vpop.f32.mrf.mxu1 }
 0x1dc   : > { %v3273_v23 = vld [vmem:[#allocation2 + $0xc0] sm:$0xff]  ;;  %3207 = vst.msk [vmem:[#allocation2 + $0x6c8] sm:$0xff] %vm276_vm3, %v2950_v60  ;;  %5470 = vmatmul.msk.bf16.gmra.mxu0 %vm1692_vm2, %v5615_v15 }
 0x1dd   : > { %v3533_v51 = vadd.f32 %v7726_v2, %v3273_v23  ;;  %v3337_v47 = vld [vmem:[#allocation2 + $0x2c0] sm:$0xff]  ;;  %3016 = vst.msk [vmem:[#allocation2 + $0xd0] sm:$0xff] %vm276_vm3, %v2759_v53  ;;  %5502 = vmatmul.msk.bf16.gmra.mxu1 %vm1692_vm2, %v5647_v16 }
 0x1de   : > { %v3597_v28 = vadd.f32 %v7726_v2, %v3337_v47  ;;  %v3401_v41 = vld [vmem:[#allocation2 + $0x4c0] sm:$0xff]  ;;  %3080 = vst.msk [vmem:[#allocation2 + $0x2d0] sm:$0xff] %vm276_vm3, %v2823_v1  ;;  %5534 = vmatmul.msk.bf16.gmra.mxu2 %vm1692_vm2, %v5679_v13 }
 0x1df   : > { %6026 = vtanh.f32 %v3533_v51  ;;  %v3661_v54 = vadd.f32 %v7726_v2, %v3401_v41  ;;  %v3465_v8 = vld [vmem:[#allocation2 + $0x6c0] sm:$0xff]  ;;  %3144 = vst.msk [vmem:[#allocation2 + $0x4d0] sm:$0xff] %vm276_vm3, %v2887_v40  ;;  %5566 = vmatmul.msk.bf16.gmra.mxu3 %vm1692_vm2, %v5711_v17 }
 0x1e0   : > { %6028 = vtanh.f32 %v3597_v28  ;;  %v3725_v32 = vadd.f32 %v7726_v2, %v3465_v8  ;;  %v3274_v36 = vld [vmem:[#allocation2 + $0xc8] sm:$0xff]  ;;  %3208 = vst.msk [vmem:[#allocation2 + $0x6d0] sm:$0xff] %vm276_vm3, %v2951_v44 }
 0x1e1   : > { %6030 = vtanh.f32 %v3661_v54  ;;  %v3534_v55 = vadd.f32 %v7726_v2, %v3274_v36  ;;  %v3338_v62 = vld [vmem:[#allocation2 + $0x2c8] sm:$0xff]  ;;  %3017 = vst.msk [vmem:[#allocation2 + $0xd8] sm:$0xff] %vm276_vm3, %v2760_v48  ;;  %v8010_v44 = vpop.f32.mrf.mxu2 }
 0x1e2   : > { %6032 = vtanh.f32 %v3725_v32  ;;  %v3598_v52 = vadd.f32 %v7726_v2, %v3338_v62  ;;  %v3402_v35 = vld [vmem:[#allocation2 + $0x4c8] sm:$0xff]  ;;  %3081 = vst.msk [vmem:[#allocation2 + $0x2d8] sm:$0xff] %vm276_vm3, %v2824_v50  ;;  %v8012_v43 = vpop.f32.mrf.mxu3  ;;  %v8020_v54 = vpop.f32.mrf.mxu0 }
 0x1e3   : > { %6034 = vtanh.f32 %v3534_v55  ;;  %v3662_v24 = vadd.f32 %v7726_v2, %v3402_v35  ;;  %v3466_v5 = vld [vmem:[#allocation2 + $0x6c8] sm:$0xff]  ;;  %3145 = vst.msk [vmem:[#allocation2 + $0x4d8] sm:$0xff] %vm276_vm3, %v2888_v34  ;;  %v8022_v8 = vpop.f32.mrf.mxu1 }
 0x1e4   : > { %6036 = vtanh.f32 %v3598_v52  ;;  %v3726_v4 = vadd.f32 %v7726_v2, %v3466_v5  ;;  %v3275_v9 = vld [vmem:[#allocation2 + $0xd0] sm:$0xff]  ;;  %3209 = vst.msk [vmem:[#allocation2 + $0x6d8] sm:$0xff] %vm276_vm3, %v2952_v37 }
 0x1e5   : > { %v6027_v7 = vpop.eup %6026  ;;  %6038 = vtanh.f32 %v3662_v24  ;;  %v3535_v27 = vadd.f32 %v7726_v2, %v3275_v9  ;;  %v3339_v18 = vld [vmem:[#allocation2 + $0x2d0] sm:$0xff]  ;;  %3018 = vst.msk [vmem:[#allocation2 + $0xe0] sm:$0xff] %vm276_vm3, %v2761_v3 }
 0x1e6   : > { %v6029_v10 = vpop.eup %6028  ;;  %v4045_v20 = vpack.c.bf16 %v6027_v7, %v6027_v7  ;;  %6040 = vtanh.f32 %v3726_v4  ;;  %v3599_v49 = vadd.f32 %v7726_v2, %v3339_v18  ;;  %v3403_v39 = vld [vmem:[#allocation2 + $0x4d0] sm:$0xff]  ;;  %3082 = vst.msk [vmem:[#allocation2 + $0x2e0] sm:$0xff] %vm276_vm3, %v2825_v57 }
 0x1e7   : > { %v6031_v42 = vpop.eup %6030  ;;  %v4109_v33 = vpack.c.bf16 %v6029_v10, %v6029_v10  ;;  %6042 = vtanh.f32 %v3535_v27  ;;  %v3663_v19 = vadd.f32 %v7726_v2, %v3403_v39  ;;  %v3467_v21 = vld [vmem:[#allocation2 + $0x6d0] sm:$0xff]  ;;  %3146 = vst.msk [vmem:[#allocation2 + $0x4e0] sm:$0xff] %vm276_vm3, %v2889_v11  ;;  %v753_v10 = vld [vmem:[#allocation2 + $0x6e0] sm:$0xff] }
 0x1e8   : > { %v6033_v38 = vpop.eup %6032  ;;  %4302 = vst.msk [vmem:[%s6736_s10 + $0x60] sm:$0xf] %vm4277_vm4, %v4045_v20  ;;  %v4173_v61 = vpack.c.bf16 %v6031_v42, %v6031_v42  ;;  %6044 = vtanh.f32 %v3599_v49  ;;  %v3727_v60 = vadd.f32 %v7726_v2, %v3467_v21  ;;  %v3276_v30 = vld [vmem:[#allocation2 + $0xd8] sm:$0xff]  ;;  %v562_v20 = vld [vmem:[#allocation2 + $0xe8] sm:$0xff]  ;;  %v5616_v42 = vld [vmem:[%s6534_s5 + $0xc0] sm:$0xff] }
 0x1e9   : > { %v6035_v53 = vpop.eup %6034  ;;  %4366 = vst.msk [vmem:[%s6736_s10 + $0x160] sm:$0xf] %vm4277_vm4, %v4109_v33  ;;  %v4237_v22 = vpack.c.bf16 %v6033_v38, %v6033_v38  ;;  %6046 = vtanh.f32 %v3663_v19  ;;  %v3536_v1 = vadd.f32 %v7726_v2, %v3276_v30  ;;  %v3340_v29 = vld [vmem:[#allocation2 + $0x2d8] sm:$0xff]  ;;  %v8039_v7 = vpop.f32.mrf.mxu2  ;;  %v5648_v33 = vld [vmem:[%s6534_s5 + $0x1c0] sm:$0xff] }
 0x1ea   : > { %v6037_v25 = vpop.eup %6036  ;;  %4430 = vst.msk [vmem:[%s6736_s10 + $0x260] sm:$0xf] %vm4277_vm4, %v4173_v61  ;;  %v4046_v40 = vpack.c.bf16 %v6035_v53, %v6035_v53  ;;  %6048 = vtanh.f32 %v3727_v60  ;;  %v3600_v31 = vadd.f32 %v7726_v2, %v3340_v29  ;;  %v3404_v23 = vld [vmem:[#allocation2 + $0x4d8] sm:$0xff]  ;;  %v8047_v49 = vpop.f32.mrf.mxu0  ;;  %v5680_v19 = vld [vmem:[%s6534_s5 + $0x2c0] sm:$0xff]  ;;  %v626_v61 = vld [vmem:[#allocation2 + $0x2e8] sm:$0xff] }
 0x1eb   : > { %v6039_v51 = vpop.eup %6038  ;;  %4494 = vst.msk [vmem:[%s6736_s10 + $0x360] sm:$0xf] %vm4277_vm4, %v4237_v22  ;;  %v4110_v47 = vpack.c.bf16 %v6037_v25, %v6037_v25  ;;  %6050 = vtanh.f32 %v3536_v1  ;;  %v3664_v48 = vadd.f32 %v7726_v2, %v3404_v23  ;;  %v3468_v45 = vld [vmem:[#allocation2 + $0x6d8] sm:$0xff]  ;;  %v8049_v39 = vpop.f32.mrf.mxu1  ;;  %v5712_v60 = vld [vmem:[%s6534_s5 + $0x3c0] sm:$0xff]  ;;  %v2953_v22 = vadd.f32 %v7948_v26, %v753_v10  ;;  %v690_v1 = vld [vmem:[#allocation2 + $0x4e8] sm:$0xff] }
 0x1ec   : > { %v6041_v28 = vpop.eup %6040  ;;  %4303 = vst.msk [vmem:[%s6736_s10 + $0x64] sm:$0xf] %vm4277_vm4, %v4046_v40  ;;  %v4174_v41 = vpack.c.bf16 %v6039_v51, %v6039_v51  ;;  %6052 = vtanh.f32 %v3600_v31  ;;  %v3728_v50 = vadd.f32 %v7726_v2, %v3468_v45  ;;  %v3277_v58 = vld [vmem:[#allocation2 + $0xe0] sm:$0xff]  ;;  %5471 = vmatmul.msk.bf16.gmra.mxu0 %vm1692_vm2, %v5616_v42  ;;  %v2762_v25 = vadd.f32 %v7954_v6, %v562_v20  ;;  %v754_v40 = vld [vmem:[#allocation2 + $0x6e8] sm:$0xff]  ;;  %v563_v26 = vld [vmem:[#allocation2 + $0xf0] sm:$0xff] }
 0x1ed   : > { %v6043_v34 = vpop.eup %6042  ;;  %4367 = vst.msk [vmem:[%s6736_s10 + $0x164] sm:$0xf] %vm4277_vm4, %v4110_v47  ;;  %v4238_v59 = vpack.c.bf16 %v6041_v28, %v6041_v28  ;;  %6054 = vtanh.f32 %v3664_v48  ;;  %v3537_v32 = vadd.f32 %v7726_v2, %v3277_v58  ;;  %v3341_v36 = vld [vmem:[#allocation2 + $0x2e0] sm:$0xff]  ;;  %5503 = vmatmul.msk.bf16.gmra.mxu1 %vm1692_vm2, %v5648_v33  ;;  %v2826_v31 = vadd.f32 %v7956_v46, %v626_v61  ;;  %v627_v51 = vld [vmem:[#allocation2 + $0x2f0] sm:$0xff]  ;;  %v564_v58 = vld [vmem:[#allocation2 + $0xf8] sm:$0xff] }
 0x1ee   : > { %v6045_v37 = vpop.eup %6044  ;;  %4431 = vst.msk [vmem:[%s6736_s10 + $0x264] sm:$0xf] %vm4277_vm4, %v4174_v41  ;;  %v4047_v56 = vpack.c.bf16 %v6043_v34, %v6043_v34  ;;  %6056 = vtanh.f32 %v3728_v50  ;;  %v3601_v55 = vadd.f32 %v7726_v2, %v3341_v36  ;;  %v3405_v62 = vld [vmem:[#allocation2 + $0x4e0] sm:$0xff]  ;;  %5535 = vmatmul.msk.bf16.gmra.mxu2 %vm1692_vm2, %v5680_v19  ;;  %v2890_v23 = vadd.f32 %v7975_v14, %v690_v1  ;;  %v691_v45 = vld [vmem:[#allocation2 + $0x4f0] sm:$0xff]  ;;  %v756_v36 = vld [vmem:[#allocation2 + $0x6f8] sm:$0xff] }
 0x1ef   : > { %v6047_v3 = vpop.eup %6046  ;;  %4495 = vst.msk [vmem:[%s6736_s10 + $0x364] sm:$0xf] %vm4277_vm4, %v4238_v59  ;;  %v4111_v52 = vpack.c.bf16 %v6045_v37, %v6045_v37  ;;  %6058 = vtanh.f32 %v3537_v32  ;;  %v3665_v35 = vadd.f32 %v7726_v2, %v3405_v62  ;;  %v8041_v2 = vpop.f32.mrf.mxu3  ;;  %5567 = vmatmul.msk.bf16.gmra.mxu3 %vm1692_vm2, %v5712_v60  ;;  %v2954_v6 = vadd.f32 %v7977_v63, %v754_v40  ;;  %v755_v41 = vld [vmem:[#allocation2 + $0x6f0] sm:$0xff]  ;;  %v628_v63 = vld [vmem:[#allocation2 + $0x2f8] sm:$0xff]  ;;  %v565_v37 = vld [vmem:[#allocation2 + $0x100] sm:$0xff] }
 0x1f0   : > { %v6049_v57 = vpop.eup %6048  ;;  %4304 = vst.msk [vmem:[%s6736_s10 + $0x68] sm:$0xf] %vm4277_vm4, %v4047_v56  ;;  %v4175_v24 = vpack.c.bf16 %v6047_v3, %v6047_v3  ;;  %6060 = vtanh.f32 %v3601_v55  ;;  %v2763_v28 = vadd.f32 %v7983_v0, %v563_v26  ;;  %v2827_v14 = vadd.f32 %v7985_v12, %v627_v51  ;;  %v692_v0 = vld [vmem:[#allocation2 + $0x4f8] sm:$0xff]  ;;  %v629_v55 = vld [vmem:[#allocation2 + $0x300] sm:$0xff]  ;;  %v5649_v10 = vld [vmem:[%s6534_s5 + $0x1c8] sm:$0xff] }
 0x1f1   : > { %v6051_v5 = vpop.eup %6050  ;;  %4368 = vst.msk [vmem:[%s6736_s10 + $0x168] sm:$0xf] %vm4277_vm4, %v4111_v52  ;;  %v4239_v11 = vpack.c.bf16 %v6049_v57, %v6049_v57  ;;  %6062 = vtanh.f32 %v3665_v35  ;;  %v2493_v47 = vpop.f32.mrf.mxu2  ;;  %v2891_v34 = vadd.f32 %v8010_v44, %v691_v45  ;;  %v2955_v59 = vadd.f32 %v8012_v43, %v755_v41  ;;  %v693_v35 = vld [vmem:[#allocation2 + $0x500] sm:$0xff]  ;;  %v5713_v42 = vld [vmem:[%s6534_s5 + $0x3c8] sm:$0xff] }
 0x1f2   : > { %v6053_v4 = vpop.eup %6052  ;;  %4432 = vst.msk [vmem:[%s6736_s10 + $0x268] sm:$0xf] %vm4277_vm4, %v4175_v24  ;;  %v4048_v9 = vpack.c.bf16 %v6051_v5, %v6051_v5  ;;  %v8081_v46 = vpop.f32.mrf.mxu0  ;;  %v2764_v32 = vadd.f32 %v8020_v54, %v564_v58  ;;  %v2828_v12 = vadd.f32 %v8022_v8, %v628_v63  ;;  %v2892_v44 = vadd.f32 %v8039_v7, %v692_v0  ;;  %v8104_v54 = vld [vmem:[%s9116_s2] ss:$0 sm:$0xff] }
 0x1f3   : > { %v6055_v27 = vpop.eup %6054  ;;  %4496 = vst.msk [vmem:[%s6736_s10 + $0x368] sm:$0xf] %vm4277_vm4, %v4239_v11  ;;  %v4112_v18 = vpack.c.bf16 %v6053_v4, %v6053_v4  ;;  %v8083_v50 = vpop.f32.mrf.mxu1  ;;  %v2956_v8 = vadd.f32 %v8041_v2, %v756_v36  ;;  %v757_v57 = vld [vmem:[#allocation2 + $0x700] sm:$0xff]  ;;  %v2765_v11 = vadd.f32 %v8047_v49, %v565_v37  ;;  %v566_v4 = vld [vmem:[#allocation2 + $0x108] sm:$0xff] }
 0x1f4   : > { %v6057_v15 = vpop.eup %6056  ;;  %4305 = vst.msk [vmem:[%s6736_s10 + $0x6c] sm:$0xf] %vm4277_vm4, %v4048_v9  ;;  %v4176_v16 = vpack.c.bf16 %v6055_v27, %v6055_v27  ;;  %v630_v9 = vld [vmem:[#allocation2 + $0x308] sm:$0xff]  ;;  %v2766_v61 = vadd.f32 %v8081_v46, %v566_v4 }
 0x1f5   : > { %v6059_v13 = vpop.eup %6058  ;;  %4369 = vst.msk [vmem:[%s6736_s10 + $0x16c] sm:$0xf] %vm4277_vm4, %v4112_v18  ;;  %v4240_v17 = vpack.c.bf16 %v6057_v15, %v6057_v15  ;;  %v2829_v15 = vadd.f32 %v8049_v39, %v629_v55 }
 0x1f6   : > { %v6061_v21 = vpop.eup %6060  ;;  %4433 = vst.msk [vmem:[%s6736_s10 + $0x26c] sm:$0xf] %vm4277_vm4, %v4176_v16  ;;  %v4049_v38 = vpack.c.bf16 %v6059_v13, %v6059_v13  ;;  %v5617_v16 = vld [vmem:[%s6534_s5 + $0xc8] sm:$0xff]  ;;  %v2893_v13 = vadd.f32 %v2493_v47, %v693_v35 }
 0x1f7   : > { %v6063_v30 = vpop.eup %6062  ;;  %4497 = vst.msk [vmem:[%s6736_s10 + $0x36c] sm:$0xf] %vm4277_vm4, %v4240_v17  ;;  %v4113_v53 = vpack.c.bf16 %v6061_v21, %v6061_v21  ;;  %v8075_v48 = vpop.f32.mrf.mxu3  ;;  %v5681_v17 = vld [vmem:[%s6534_s5 + $0x2c8] sm:$0xff] }
 0x1f8   : > { %4306 = vst.msk [vmem:[%s6736_s10 + $0x70] sm:$0xf] %vm4277_vm4, %v4049_v38  ;;  %v4177_v29 = vpack.c.bf16 %v6063_v30, %v6063_v30  ;;  %v2957_v21 = vadd.f32 %v8075_v48, %v757_v57 }
 0x1f9   : > { %4370 = vst.msk [vmem:[%s6736_s10 + $0x170] sm:$0xf] %vm4277_vm4, %v4113_v53  ;;  %v8097_v62 = vpop.f32.mrf.mxu2  ;;  %v2830_v53 = vadd.f32 %v8083_v50, %v630_v9 }
 0x1fa   : > { %4434 = vst.msk [vmem:[%s6736_s10 + $0x270] sm:$0xf] %vm4277_vm4, %v4177_v29  ;;  %v8112_v7 = vpop.f32.mrf.mxu0 }
 0x1fb   : > { %3210 = vst.msk [vmem:[#allocation2 + $0x6e0] sm:$0xff] %vm276_vm3, %v2953_v22  ;;  %v8114_v27 = vpop.f32.mrf.mxu1 }
 0x1fc   : > { %3019 = vst.msk [vmem:[#allocation2 + $0xe8] sm:$0xff] %vm276_vm3, %v2762_v25  ;;  %5472 = vmatmul.msk.bf16.gmra.mxu0 %vm1692_vm2, %v5617_v16 }
 0x1fd   : > { %3083 = vst.msk [vmem:[#allocation2 + $0x2e8] sm:$0xff] %vm276_vm3, %v2826_v31  ;;  %5504 = vmatmul.msk.bf16.gmra.mxu1 %vm1692_vm2, %v5649_v10 }
 0x1fe   : > { %3147 = vst.msk [vmem:[#allocation2 + $0x4e8] sm:$0xff] %vm276_vm3, %v2890_v23  ;;  %5536 = vmatmul.msk.bf16.gmra.mxu2 %vm1692_vm2, %v5681_v17 }
 0x1ff   : > { %3211 = vst.msk [vmem:[#allocation2 + $0x6e8] sm:$0xff] %vm276_vm3, %v2954_v6  ;;  %v8099_v43 = vpop.f32.mrf.mxu3  ;;  %5568 = vmatmul.msk.bf16.gmra.mxu3 %vm1692_vm2, %v5713_v42 }
 0x200   : > { %3020 = vst.msk [vmem:[#allocation2 + $0xf0] sm:$0xff] %vm276_vm3, %v2763_v28 }
 0x201   : > { %3084 = vst.msk [vmem:[#allocation2 + $0x2f0] sm:$0xff] %vm276_vm3, %v2827_v14  ;;  %v8140_v29 = vpop.f32.mrf.mxu2 }
 0x202   : > { %v3469_v56 = vld [vmem:[#allocation2 + $0x6e0] sm:$0xff]  ;;  %3148 = vst.msk [vmem:[#allocation2 + $0x4f0] sm:$0xff] %vm276_vm3, %v2891_v34  ;;  %v8148_v6 = vpop.f32.mrf.mxu0 }
 0x203   : > { %v3729_v3 = vadd.f32 %v8104_v54, %v3469_v56  ;;  %v3278_v52 = vld [vmem:[#allocation2 + $0xe8] sm:$0xff]  ;;  %3212 = vst.msk [vmem:[#allocation2 + $0x6f0] sm:$0xff] %vm276_vm3, %v2955_v59  ;;  %v8150_v45 = vpop.f32.mrf.mxu1 }
 0x204   : > { %v3538_v24 = vadd.f32 %v8104_v54, %v3278_v52  ;;  %v3342_v5 = vld [vmem:[#allocation2 + $0x2e8] sm:$0xff]  ;;  %3021 = vst.msk [vmem:[#allocation2 + $0xf8] sm:$0xff] %vm276_vm3, %v2764_v32 }
 0x205   : > { %6064 = vtanh.f32 %v3729_v3  ;;  %v3602_v2 = vadd.f32 %v8104_v54, %v3342_v5  ;;  %v3406_v18 = vld [vmem:[#allocation2 + $0x4e8] sm:$0xff]  ;;  %3085 = vst.msk [vmem:[#allocation2 + $0x2f8] sm:$0xff] %vm276_vm3, %v2828_v12 }
 0x206   : > { %6066 = vtanh.f32 %v3538_v24  ;;  %v3666_v20 = vadd.f32 %v8104_v54, %v3406_v18  ;;  %v3470_v49 = vld [vmem:[#allocation2 + $0x6e8] sm:$0xff]  ;;  %3149 = vst.msk [vmem:[#allocation2 + $0x4f8] sm:$0xff] %vm276_vm3, %v2892_v44 }
 0x207   : > { %6068 = vtanh.f32 %v3602_v2  ;;  %v3730_v33 = vadd.f32 %v8104_v54, %v3470_v49  ;;  %v3279_v19 = vld [vmem:[#allocation2 + $0xf0] sm:$0xff]  ;;  %3213 = vst.msk [vmem:[#allocation2 + $0x6f8] sm:$0xff] %vm276_vm3, %v2956_v8  ;;  %v8142_v25 = vpop.f32.mrf.mxu3 }
 0x208   : > { %6070 = vtanh.f32 %v3666_v20  ;;  %v3539_v39 = vadd.f32 %v8104_v54, %v3279_v19  ;;  %v3343_v38 = vld [vmem:[#allocation2 + $0x2f0] sm:$0xff]  ;;  %3022 = vst.msk [vmem:[#allocation2 + $0x100] sm:$0xff] %vm276_vm3, %v2765_v11 }
 0x209   : > { %6072 = vtanh.f32 %v3730_v33  ;;  %v3603_v60 = vadd.f32 %v8104_v54, %v3343_v38  ;;  %v3407_v30 = vld [vmem:[#allocation2 + $0x4f0] sm:$0xff]  ;;  %3086 = vst.msk [vmem:[#allocation2 + $0x300] sm:$0xff] %vm276_vm3, %v2829_v15  ;;  %v8169_v11 = vpop.f32.mrf.mxu2 }
 0x20a   : > { %6074 = vtanh.f32 %v3539_v39  ;;  %v3667_v22 = vadd.f32 %v8104_v54, %v3407_v30  ;;  %v3471_v1 = vld [vmem:[#allocation2 + $0x6f0] sm:$0xff]  ;;  %3150 = vst.msk [vmem:[#allocation2 + $0x500] sm:$0xff] %vm276_vm3, %v2893_v13  ;;  %v8179_v13 = vpop.f32.mrf.mxu0 }
 0x20b   : > { %v6065_v40 = vpop.eup %6064  ;;  %6076 = vtanh.f32 %v3603_v60  ;;  %v3731_v31 = vadd.f32 %v8104_v54, %v3471_v1  ;;  %v3280_v26 = vld [vmem:[#allocation2 + $0xf8] sm:$0xff]  ;;  %3214 = vst.msk [vmem:[#allocation2 + $0x700] sm:$0xff] %vm276_vm3, %v2957_v21  ;;  %v8181_v17 = vpop.f32.mrf.mxu1  ;;  %v5618_v21 = vld [vmem:[%s6534_s5 + $0xd0] sm:$0xff] }
 0x20c   : > { %v6067_v23 = vpop.eup %6066  ;;  %v4241_v51 = vpack.c.bf16 %v6065_v40, %v6065_v40  ;;  %6078 = vtanh.f32 %v3667_v22  ;;  %v3540_v47 = vadd.f32 %v8104_v54, %v3280_v26  ;;  %v3344_v48 = vld [vmem:[#allocation2 + $0x2f8] sm:$0xff]  ;;  %3023 = vst.msk [vmem:[#allocation2 + $0x108] sm:$0xff] %vm276_vm3, %v2766_v61  ;;  %v5650_v39 = vld [vmem:[%s6534_s5 + $0x1d0] sm:$0xff]  ;;  %5473 = vmatmul.msk.bf16.gmra.mxu0 %vm1692_vm2, %v5618_v21  ;;  %v570_v21 = vld [vmem:[#allocation2 + $0x128] sm:$0xff] }
 0x20d   : > { %v6069_v28 = vpop.eup %6068  ;;  %v4050_v41 = vpack.c.bf16 %v6067_v23, %v6067_v23  ;;  %6080 = vtanh.f32 %v3731_v31  ;;  %v3604_v46 = vadd.f32 %v8104_v54, %v3344_v48  ;;  %v3408_v50 = vld [vmem:[#allocation2 + $0x4f8] sm:$0xff]  ;;  %3087 = vst.msk [vmem:[#allocation2 + $0x308] sm:$0xff] %vm276_vm3, %v2830_v53  ;;  %v5682_v38 = vld [vmem:[%s6534_s5 + $0x2d0] sm:$0xff]  ;;  %5505 = vmatmul.msk.bf16.gmra.mxu1 %vm1692_vm2, %v5650_v39 }
 0x20e   : > { %v6071_v14 = vpop.eup %6070  ;;  %4498 = vst.msk [vmem:[%s6736_s10 + $0x370] sm:$0xf] %vm4277_vm4, %v4241_v51  ;;  %v4114_v58 = vpack.c.bf16 %v6069_v28, %v6069_v28  ;;  %6082 = vtanh.f32 %v3540_v47  ;;  %v3668_v34 = vadd.f32 %v8104_v54, %v3408_v50  ;;  %v3472_v63 = vld [vmem:[#allocation2 + $0x6f8] sm:$0xff]  ;;  %v5714_v30 = vld [vmem:[%s6534_s5 + $0x3d0] sm:$0xff]  ;;  %5537 = vmatmul.msk.bf16.gmra.mxu2 %vm1692_vm2, %v5682_v38  ;;  %v694_v47 = vld [vmem:[#allocation2 + $0x508] sm:$0xff] }
 0x20f   : > { %v6073_v59 = vpop.eup %6072  ;;  %4307 = vst.msk [vmem:[%s6736_s10 + $0x74] sm:$0xf] %vm4277_vm4, %v4050_v41  ;;  %v4178_v0 = vpack.c.bf16 %v6071_v14, %v6071_v14  ;;  %6084 = vtanh.f32 %v3604_v46  ;;  %v3732_v32 = vadd.f32 %v8104_v54, %v3472_v63  ;;  %v3281_v36 = vld [vmem:[#allocation2 + $0x100] sm:$0xff]  ;;  %v8171_v4 = vpop.f32.mrf.mxu3  ;;  %5569 = vmatmul.msk.bf16.gmra.mxu3 %vm1692_vm2, %v5714_v30  ;;  %v758_v41 = vld [vmem:[#allocation2 + $0x708] sm:$0xff] }
 0x210   : > { %v6075_v12 = vpop.eup %6074  ;;  %4371 = vst.msk [vmem:[%s6736_s10 + $0x174] sm:$0xf] %vm4277_vm4, %v4114_v58  ;;  %v4242_v37 = vpack.c.bf16 %v6073_v59, %v6073_v59  ;;  %6086 = vtanh.f32 %v3668_v34  ;;  %v3541_v56 = vadd.f32 %v8104_v54, %v3281_v36  ;;  %v3345_v44 = vld [vmem:[#allocation2 + $0x300] sm:$0xff]  ;;  %v567_v34 = vld [vmem:[#allocation2 + $0x110] sm:$0xff]  ;;  %v2894_v36 = vadd.f32 %v8097_v62, %v694_v47  ;;  %v634_v38 = vld [vmem:[#allocation2 + $0x328] sm:$0xff] }
 0x211   : > { %v6077_v55 = vpop.eup %6076  ;;  %4435 = vst.msk [vmem:[%s6736_s10 + $0x274] sm:$0xf] %vm4277_vm4, %v4178_v0  ;;  %v4051_v3 = vpack.c.bf16 %v6075_v12, %v6075_v12  ;;  %6088 = vtanh.f32 %v3732_v32  ;;  %v3605_v52 = vadd.f32 %v8104_v54, %v3345_v44  ;;  %v3409_v8 = vld [vmem:[#allocation2 + $0x500] sm:$0xff]  ;;  %v8206_v46 = vpop.f32.mrf.mxu2  ;;  %v631_v12 = vld [vmem:[#allocation2 + $0x310] sm:$0xff]  ;;  %v698_v30 = vld [vmem:[#allocation2 + $0x528] sm:$0xff] }
 0x212   : > { %v6079_v35 = vpop.eup %6078  ;;  %4499 = vst.msk [vmem:[%s6736_s10 + $0x374] sm:$0xf] %vm4277_vm4, %v4242_v37  ;;  %v4115_v57 = vpack.c.bf16 %v6077_v55, %v6077_v55  ;;  %6090 = vtanh.f32 %v3541_v56  ;;  %v3669_v24 = vadd.f32 %v8104_v54, %v3409_v8  ;;  %v3473_v5 = vld [vmem:[#allocation2 + $0x700] sm:$0xff]  ;;  %v8212_v63 = vpop.f32.mrf.mxu0  ;;  %v2958_v56 = vadd.f32 %v8099_v43, %v758_v41  ;;  %v695_v44 = vld [vmem:[#allocation2 + $0x510] sm:$0xff]  ;;  %v568_v8 = vld [vmem:[#allocation2 + $0x118] sm:$0xff] }
 0x213   : > { %v6081_v9 = vpop.eup %6080  ;;  %4308 = vst.msk [vmem:[%s6736_s10 + $0x78] sm:$0xf] %vm4277_vm4, %v4051_v3  ;;  %v4179_v2 = vpack.c.bf16 %v6079_v35, %v6079_v35  ;;  %6092 = vtanh.f32 %v3605_v52  ;;  %v3733_v18 = vadd.f32 %v8104_v54, %v3473_v5  ;;  %v3282_v15 = vld [vmem:[#allocation2 + $0x108] sm:$0xff]  ;;  %v8214_v59 = vpop.f32.mrf.mxu1  ;;  %v2767_v55 = vadd.f32 %v8112_v7, %v567_v34  ;;  %v759_v3 = vld [vmem:[#allocation2 + $0x710] sm:$0xff]  ;;  %v632_v35 = vld [vmem:[#allocation2 + $0x318] sm:$0xff] }
 0x214   : > { %v6083_v16 = vpop.eup %6082  ;;  %4372 = vst.msk [vmem:[%s6736_s10 + $0x178] sm:$0xf] %vm4277_vm4, %v4115_v57  ;;  %v4243_v10 = vpack.c.bf16 %v6081_v9, %v6081_v9  ;;  %6094 = vtanh.f32 %v3669_v24  ;;  %v3542_v20 = vadd.f32 %v8104_v54, %v3282_v15  ;;  %v3346_v49 = vld [vmem:[#allocation2 + $0x308] sm:$0xff]  ;;  %v2831_v52 = vadd.f32 %v8114_v27, %v631_v12  ;;  %v696_v57 = vld [vmem:[#allocation2 + $0x518] sm:$0xff]  ;;  %v569_v9 = vld [vmem:[#allocation2 + $0x120] sm:$0xff] }
 0x215   : > { %v6085_v42 = vpop.eup %6084  ;;  %4436 = vst.msk [vmem:[%s6736_s10 + $0x278] sm:$0xf] %vm4277_vm4, %v4179_v2  ;;  %v4052_v33 = vpack.c.bf16 %v6083_v16, %v6083_v16  ;;  %6096 = vtanh.f32 %v3733_v18  ;;  %v3606_v19 = vadd.f32 %v8104_v54, %v3346_v49  ;;  %v2895_v62 = vadd.f32 %v8140_v29, %v695_v44  ;;  %v760_v24 = vld [vmem:[#allocation2 + $0x718] sm:$0xff]  ;;  %v633_v15 = vld [vmem:[#allocation2 + $0x320] sm:$0xff] }
 0x216   : > { %v6087_v61 = vpop.eup %6086  ;;  %4500 = vst.msk [vmem:[%s6736_s10 + $0x378] sm:$0xf] %vm4277_vm4, %v4243_v10  ;;  %v4116_v60 = vpack.c.bf16 %v6085_v42, %v6085_v42  ;;  %6098 = vtanh.f32 %v3542_v20  ;;  %v2959_v43 = vadd.f32 %v8142_v25, %v759_v3  ;;  %v2768_v7 = vadd.f32 %v8148_v6, %v568_v8  ;;  %v5619_v6 = vld [vmem:[%s6534_s5 + $0xd8] sm:$0xff]  ;;  %v697_v20 = vld [vmem:[#allocation2 + $0x520] sm:$0xff] }
 0x217   : > { %v6089_v53 = vpop.eup %6088  ;;  %4309 = vst.msk [vmem:[%s6736_s10 + $0x7c] sm:$0xf] %vm4277_vm4, %v4052_v33  ;;  %v4180_v22 = vpack.c.bf16 %v6087_v61, %v6087_v61  ;;  %6100 = vtanh.f32 %v3606_v19  ;;  %v8208_v50 = vpop.f32.mrf.mxu3  ;;  %v2832_v29 = vadd.f32 %v8150_v45, %v632_v35  ;;  %v2896_v25 = vadd.f32 %v8169_v11, %v696_v57  ;;  %v5651_v16 = vld [vmem:[%s6534_s5 + $0x1d8] sm:$0xff]  ;;  %v761_v33 = vld [vmem:[#allocation2 + $0x720] sm:$0xff] }
 0x218   : > { %v6091_v1 = vpop.eup %6090  ;;  %4373 = vst.msk [vmem:[%s6736_s10 + $0x17c] sm:$0xf] %vm4277_vm4, %v4116_v60  ;;  %v4244_v40 = vpack.c.bf16 %v6089_v53, %v6089_v53  ;;  %v2960_v10 = vadd.f32 %v8171_v4, %v760_v24  ;;  %v5683_v49 = vld [vmem:[%s6534_s5 + $0x2d8] sm:$0xff]  ;;  %v2769_v45 = vadd.f32 %v8179_v13, %v569_v9  ;;  %v2833_v19 = vadd.f32 %v8181_v17, %v633_v15 }
 0x219   : > { %v6093_v31 = vpop.eup %6092  ;;  %4437 = vst.msk [vmem:[%s6736_s10 + $0x27c] sm:$0xf] %vm4277_vm4, %v4180_v22  ;;  %v4053_v26 = vpack.c.bf16 %v6091_v1, %v6091_v1  ;;  %v2505_v27 = vpop.f32.mrf.mxu2  ;;  %v5715_v42 = vld [vmem:[%s6534_s5 + $0x3d8] sm:$0xff]  ;;  %v2897_v13 = vadd.f32 %v8206_v46, %v697_v20  ;;  %v2961_v17 = vadd.f32 %v8208_v50, %v761_v33  ;;  %v2770_v1 = vadd.f32 %v8212_v63, %v570_v21  ;;  %v5620_v20 = vld [vmem:[%s6534_s5 + $0xe0] sm:$0xff] }
 0x21a   : > { %v6095_v23 = vpop.eup %6094  ;;  %4501 = vst.msk [vmem:[%s6736_s10 + $0x37c] sm:$0xf] %vm4277_vm4, %v4244_v40  ;;  %v4117_v51 = vpack.c.bf16 %v6093_v31, %v6093_v31  ;;  %v8236_v2 = vpop.f32.mrf.mxu0  ;;  %v762_v40 = vld [vmem:[#allocation2 + $0x728] sm:$0xff]  ;;  %v2834_v47 = vadd.f32 %v8214_v59, %v634_v38  ;;  %v5716_v21 = vld [vmem:[%s6534_s5 + $0x3e0] sm:$0xff] }
 0x21b   : > { %v6097_v48 = vpop.eup %6096  ;;  %4310 = vst.msk [vmem:[%s6736_s10 + $0x80] sm:$0xf] %vm4277_vm4, %v4053_v26  ;;  %v4181_v28 = vpack.c.bf16 %v6095_v23, %v6095_v23  ;;  %v8238_v18 = vpop.f32.mrf.mxu1 }
 0x21c   : > { %v6099_v14 = vpop.eup %6098  ;;  %4374 = vst.msk [vmem:[%s6736_s10 + $0x180] sm:$0xf] %vm4277_vm4, %v4117_v51  ;;  %v4245_v58 = vpack.c.bf16 %v6097_v48, %v6097_v48  ;;  %5474 = vmatmul.msk.bf16.gmra.mxu0 %vm1692_vm2, %v5619_v6  ;;  %v571_v48 = vld [vmem:[#allocation2 + $0x130] sm:$0xff] }
 0x21d   : > { %v6101_v0 = vpop.eup %6100  ;;  %4438 = vst.msk [vmem:[%s6736_s10 + $0x280] sm:$0xf] %vm4277_vm4, %v4181_v28  ;;  %v4054_v32 = vpack.c.bf16 %v6099_v14, %v6099_v14  ;;  %5506 = vmatmul.msk.bf16.gmra.mxu1 %vm1692_vm2, %v5651_v16  ;;  %v2898_v14 = vadd.f32 %v2505_v27, %v698_v30 }
 0x21e   : > { %4502 = vst.msk [vmem:[%s6736_s10 + $0x380] sm:$0xf] %vm4277_vm4, %v4245_v58  ;;  %v4118_v37 = vpack.c.bf16 %v6101_v0, %v6101_v0  ;;  %5538 = vmatmul.msk.bf16.gmra.mxu2 %vm1692_vm2, %v5683_v49  ;;  %v5652_v49 = vld [vmem:[%s6534_s5 + $0x1e0] sm:$0xff] }
 0x21f   : > { %4311 = vst.msk [vmem:[%s6736_s10 + $0x84] sm:$0xf] %vm4277_vm4, %v4054_v32  ;;  %v2665_v5 = vpop.f32.mrf.mxu3  ;;  %5570 = vmatmul.msk.bf16.gmra.mxu3 %vm1692_vm2, %v5715_v42  ;;  %v2771_v32 = vadd.f32 %v8236_v2, %v571_v48 }
 0x220   : > { %4375 = vst.msk [vmem:[%s6736_s10 + $0x184] sm:$0xf] %vm4277_vm4, %v4118_v37  ;;  %v2962_v63 = vadd.f32 %v2665_v5, %v762_v40 }
 0x221   : > { %3151 = vst.msk [vmem:[#allocation2 + $0x508] sm:$0xff] %vm276_vm3, %v2894_v36  ;;  %v8265_v31 = vpop.f32.mrf.mxu2 }
 0x222   : > { %3215 = vst.msk [vmem:[#allocation2 + $0x708] sm:$0xff] %vm276_vm3, %v2958_v56  ;;  %v8272_v28 = vpop.f32.mrf.mxu0 }
 0x223   : > { %3024 = vst.msk [vmem:[#allocation2 + $0x110] sm:$0xff] %vm276_vm3, %v2767_v55  ;;  %v8274_v41 = vpop.f32.mrf.mxu1 }
 0x224   : > { %3088 = vst.msk [vmem:[#allocation2 + $0x310] sm:$0xff] %vm276_vm3, %v2831_v52 }
 0x225   : > { %3152 = vst.msk [vmem:[#allocation2 + $0x510] sm:$0xff] %vm276_vm3, %v2895_v62 }
 0x226   : > { %3216 = vst.msk [vmem:[#allocation2 + $0x710] sm:$0xff] %vm276_vm3, %v2959_v43 }
 0x227   : > { %3025 = vst.msk [vmem:[#allocation2 + $0x118] sm:$0xff] %vm276_vm3, %v2768_v7  ;;  %v8267_v26 = vpop.f32.mrf.mxu3 }
 0x228   : > { %v3410_v11 = vld [vmem:[#allocation2 + $0x508] sm:$0xff]  ;;  %3089 = vst.msk [vmem:[#allocation2 + $0x318] sm:$0xff] %vm276_vm3, %v2832_v29 }
 0x229   : > { %v3670_v4 = vadd.f32 %v8104_v54, %v3410_v11  ;;  %v3474_v39 = vld [vmem:[#allocation2 + $0x708] sm:$0xff]  ;;  %3153 = vst.msk [vmem:[#allocation2 + $0x518] sm:$0xff] %vm276_vm3, %v2896_v25  ;;  %v8291_v7 = vpop.f32.mrf.mxu2 }
 0x22a   : > { %v3734_v61 = vadd.f32 %v8104_v54, %v3474_v39  ;;  %v3283_v60 = vld [vmem:[#allocation2 + $0x110] sm:$0xff]  ;;  %3217 = vst.msk [vmem:[#allocation2 + $0x718] sm:$0xff] %vm276_vm3, %v2960_v10  ;;  %v8298_v2 = vpop.f32.mrf.mxu0 }
 0x22b   : > { %6102 = vtanh.f32 %v3670_v4  ;;  %v3543_v53 = vadd.f32 %v8104_v54, %v3283_v60  ;;  %v3347_v22 = vld [vmem:[#allocation2 + $0x310] sm:$0xff]  ;;  %3026 = vst.msk [vmem:[#allocation2 + $0x120] sm:$0xff] %vm276_vm3, %v2769_v45  ;;  %v8300_v25 = vpop.f32.mrf.mxu1 }
 0x22c   : > { %6104 = vtanh.f32 %v3734_v61  ;;  %v3607_v23 = vadd.f32 %v8104_v54, %v3347_v22  ;;  %v3411_v51 = vld [vmem:[#allocation2 + $0x510] sm:$0xff]  ;;  %3090 = vst.msk [vmem:[#allocation2 + $0x320] sm:$0xff] %vm276_vm3, %v2833_v19  ;;  %v5684_v19 = vld [vmem:[%s6534_s5 + $0x2e0] sm:$0xff]  ;;  %5475 = vmatmul.msk.bf16.gmra.mxu0 %vm1692_vm2, %v5620_v20 }
 0x22d   : > { %6106 = vtanh.f32 %v3543_v53  ;;  %v3671_v46 = vadd.f32 %v8104_v54, %v3411_v51  ;;  %v3475_v50 = vld [vmem:[#allocation2 + $0x710] sm:$0xff]  ;;  %3154 = vst.msk [vmem:[#allocation2 + $0x520] sm:$0xff] %vm276_vm3, %v2897_v13  ;;  %5507 = vmatmul.msk.bf16.gmra.mxu1 %vm1692_vm2, %v5652_v49 }
 0x22e   : > { %6108 = vtanh.f32 %v3607_v23  ;;  %v3735_v58 = vadd.f32 %v8104_v54, %v3475_v50  ;;  %v3284_v34 = vld [vmem:[#allocation2 + $0x118] sm:$0xff]  ;;  %3218 = vst.msk [vmem:[#allocation2 + $0x720] sm:$0xff] %vm276_vm3, %v2961_v17  ;;  %5539 = vmatmul.msk.bf16.gmra.mxu2 %vm1692_vm2, %v5684_v19  ;;  %v5621_v19 = vld [vmem:[%s6534_s5 + $0xe8] sm:$0xff] }
 0x22f   : > { %6110 = vtanh.f32 %v3671_v46  ;;  %v3544_v59 = vadd.f32 %v8104_v54, %v3284_v34  ;;  %v3348_v0 = vld [vmem:[#allocation2 + $0x318] sm:$0xff]  ;;  %3027 = vst.msk [vmem:[#allocation2 + $0x128] sm:$0xff] %vm276_vm3, %v2770_v1  ;;  %v8293_v24 = vpop.f32.mrf.mxu3  ;;  %5571 = vmatmul.msk.bf16.gmra.mxu3 %vm1692_vm2, %v5716_v21  ;;  %v5653_v21 = vld [vmem:[%s6534_s5 + $0x1e8] sm:$0xff] }
 0x230   : > { %6112 = vtanh.f32 %v3735_v58  ;;  %v3608_v36 = vadd.f32 %v8104_v54, %v3348_v0  ;;  %v3412_v12 = vld [vmem:[#allocation2 + $0x518] sm:$0xff]  ;;  %3091 = vst.msk [vmem:[#allocation2 + $0x328] sm:$0xff] %vm276_vm3, %v2834_v47 }
 0x231   : > { %v6103_v37 = vpop.eup %6102  ;;  %6114 = vtanh.f32 %v3544_v59  ;;  %v3672_v56 = vadd.f32 %v8104_v54, %v3412_v12  ;;  %v3476_v44 = vld [vmem:[#allocation2 + $0x718] sm:$0xff]  ;;  %3155 = vst.msk [vmem:[#allocation2 + $0x528] sm:$0xff] %vm276_vm3, %v2898_v14  ;;  %v8331_v58 = vpop.f32.mrf.mxu2 }
 0x232   : > { %v6105_v55 = vpop.eup %6104  ;;  %v4182_v3 = vpack.c.bf16 %v6103_v37, %v6103_v37  ;;  %6116 = vtanh.f32 %v3608_v36  ;;  %v3736_v52 = vadd.f32 %v8104_v54, %v3476_v44  ;;  %v3285_v8 = vld [vmem:[#allocation2 + $0x120] sm:$0xff]  ;;  %3219 = vst.msk [vmem:[#allocation2 + $0x728] sm:$0xff] %vm276_vm3, %v2962_v63  ;;  %v8337_v0 = vpop.f32.mrf.mxu0 }
 0x233   : > { %v6107_v62 = vpop.eup %6106  ;;  %v4246_v35 = vpack.c.bf16 %v6105_v55, %v6105_v55  ;;  %6118 = vtanh.f32 %v3672_v56  ;;  %v3545_v43 = vadd.f32 %v8104_v54, %v3285_v8  ;;  %v3349_v57 = vld [vmem:[#allocation2 + $0x320] sm:$0xff]  ;;  %3028 = vst.msk [vmem:[#allocation2 + $0x130] sm:$0xff] %vm276_vm3, %v2771_v32  ;;  %v8339_v32 = vpop.f32.mrf.mxu1  ;;  %v635_v8 = vld [vmem:[#allocation2 + $0x330] sm:$0xff] }
 0x234   : > { %v6109_v27 = vpop.eup %6108  ;;  %4439 = vst.msk [vmem:[%s6736_s10 + $0x284] sm:$0xf] %vm4277_vm4, %v4182_v3  ;;  %v4055_v5 = vpack.c.bf16 %v6107_v62, %v6107_v62  ;;  %6120 = vtanh.f32 %v3736_v52  ;;  %v3609_v29 = vadd.f32 %v8104_v54, %v3349_v57  ;;  %v3413_v9 = vld [vmem:[#allocation2 + $0x520] sm:$0xff] }
 0x235   : > { %v6111_v15 = vpop.eup %6110  ;;  %4503 = vst.msk [vmem:[%s6736_s10 + $0x384] sm:$0xf] %vm4277_vm4, %v4246_v35  ;;  %v4119_v6 = vpack.c.bf16 %v6109_v27, %v6109_v27  ;;  %6122 = vtanh.f32 %v3545_v43  ;;  %v3673_v16 = vadd.f32 %v8104_v54, %v3413_v9  ;;  %v3477_v10 = vld [vmem:[#allocation2 + $0x720] sm:$0xff]  ;;  %v699_v43 = vld [vmem:[#allocation2 + $0x530] sm:$0xff] }
 0x236   : > { %v6113_v42 = vpop.eup %6112  ;;  %4312 = vst.msk [vmem:[%s6736_s10 + $0x88] sm:$0xf] %vm4277_vm4, %v4055_v5  ;;  %v4183_v45 = vpack.c.bf16 %v6111_v15, %v6111_v15  ;;  %6124 = vtanh.f32 %v3609_v29  ;;  %v3737_v33 = vadd.f32 %v8104_v54, %v3477_v10  ;;  %v3286_v11 = vld [vmem:[#allocation2 + $0x128] sm:$0xff]  ;;  %v763_v5 = vld [vmem:[#allocation2 + $0x730] sm:$0xff]  ;;  %v2835_v15 = vadd.f32 %v8238_v18, %v635_v8 }
 0x237   : > { %v6115_v4 = vpop.eup %6114  ;;  %4376 = vst.msk [vmem:[%s6736_s10 + $0x188] sm:$0xf] %vm4277_vm4, %v4119_v6  ;;  %v4247_v39 = vpack.c.bf16 %v6113_v42, %v6113_v42  ;;  %6126 = vtanh.f32 %v3673_v16  ;;  %v3546_v13 = vadd.f32 %v8104_v54, %v3286_v11  ;;  %v3350_v38 = vld [vmem:[#allocation2 + $0x328] sm:$0xff]  ;;  %v8333_v34 = vpop.f32.mrf.mxu3  ;;  %v572_v6 = vld [vmem:[#allocation2 + $0x138] sm:$0xff]  ;;  %v2899_v49 = vadd.f32 %v8265_v31, %v699_v43 }
 0x238   : > { %v6117_v61 = vpop.eup %6116  ;;  %4440 = vst.msk [vmem:[%s6736_s10 + $0x288] sm:$0xf] %vm4277_vm4, %v4183_v45  ;;  %v4056_v60 = vpack.c.bf16 %v6115_v4, %v6115_v4  ;;  %6128 = vtanh.f32 %v3737_v33  ;;  %v3610_v17 = vadd.f32 %v8104_v54, %v3350_v38  ;;  %v3414_v30 = vld [vmem:[#allocation2 + $0x528] sm:$0xff]  ;;  %v636_v42 = vld [vmem:[#allocation2 + $0x338] sm:$0xff]  ;;  %v2963_v18 = vadd.f32 %v8267_v26, %v763_v5 }
 0x239   : > { %v6119_v53 = vpop.eup %6118  ;;  %4504 = vst.msk [vmem:[%s6736_s10 + $0x388] sm:$0xf] %vm4277_vm4, %v4247_v39  ;;  %v4120_v22 = vpack.c.bf16 %v6117_v61, %v6117_v61  ;;  %6130 = vtanh.f32 %v3546_v13  ;;  %v3674_v1 = vadd.f32 %v8104_v54, %v3414_v30  ;;  %v3478_v40 = vld [vmem:[#allocation2 + $0x728] sm:$0xff]  ;;  %v2515_v16 = vpop.f32.mrf.mxu2  ;;  %v700_v45 = vld [vmem:[#allocation2 + $0x538] sm:$0xff]  ;;  %v2772_v39 = vadd.f32 %v8272_v28, %v572_v6  ;;  %v573_v61 = vld [vmem:[#allocation2 + $0x140] sm:$0xff] }
 0x23a   : > { %v6121_v23 = vpop.eup %6120  ;;  %4313 = vst.msk [vmem:[%s6736_s10 + $0x8c] sm:$0xf] %vm4277_vm4, %v4056_v60  ;;  %v4184_v51 = vpack.c.bf16 %v6119_v53, %v6119_v53  ;;  %6132 = vtanh.f32 %v3610_v17  ;;  %v3738_v47 = vadd.f32 %v8104_v54, %v3478_v40  ;;  %v3287_v48 = vld [vmem:[#allocation2 + $0x130] sm:$0xff]  ;;  %v8361_v33 = vpop.f32.mrf.mxu0  ;;  %v5685_v4 = vld [vmem:[%s6534_s5 + $0x2e8] sm:$0xff]  ;;  %v764_v13 = vld [vmem:[#allocation2 + $0x738] sm:$0xff]  ;;  %v2836_v31 = vadd.f32 %v8274_v41, %v636_v42 }
 0x23b   : > { %v6123_v46 = vpop.eup %6122  ;;  %4377 = vst.msk [vmem:[%s6736_s10 + $0x18c] sm:$0xf] %vm4277_vm4, %v4120_v22  ;;  %v4248_v50 = vpack.c.bf16 %v6121_v23, %v6121_v23  ;;  %6134 = vtanh.f32 %v3674_v1  ;;  %v3547_v14 = vadd.f32 %v8104_v54, %v3287_v48  ;;  %v8363_v11 = vpop.f32.mrf.mxu1  ;;  %v5717_v38 = vld [vmem:[%s6534_s5 + $0x3e8] sm:$0xff]  ;;  %v2900_v26 = vadd.f32 %v8291_v7, %v700_v45  ;;  %v637_v60 = vld [vmem:[#allocation2 + $0x340] sm:$0xff] }
 0x23c   : > { %v6125_v63 = vpop.eup %6124  ;;  %4441 = vst.msk [vmem:[%s6736_s10 + $0x28c] sm:$0xf] %vm4277_vm4, %v4184_v51  ;;  %v4057_v59 = vpack.c.bf16 %v6123_v46, %v6123_v46  ;;  %6136 = vtanh.f32 %v3738_v47  ;;  %5476 = vmatmul.msk.bf16.gmra.mxu0 %vm1692_vm2, %v5621_v19  ;;  %v2964_v28 = vadd.f32 %v8293_v24, %v764_v13  ;;  %v701_v17 = vld [vmem:[#allocation2 + $0x540] sm:$0xff]  ;;  %v2773_v41 = vadd.f32 %v8298_v2, %v573_v61  ;;  %v574_v7 = vld [vmem:[#allocation2 + $0x148] sm:$0xff] }
 0x23d   : > { %v6127_v36 = vpop.eup %6126  ;;  %4505 = vst.msk [vmem:[%s6736_s10 + $0x38c] sm:$0xf] %vm4277_vm4, %v4248_v50  ;;  %v4121_v12 = vpack.c.bf16 %v6125_v63, %v6125_v63  ;;  %6138 = vtanh.f32 %v3547_v14  ;;  %5508 = vmatmul.msk.bf16.gmra.mxu1 %vm1692_vm2, %v5653_v21  ;;  %v765_v30 = vld [vmem:[#allocation2 + $0x740] sm:$0xff]  ;;  %v2837_v53 = vadd.f32 %v8300_v25, %v637_v60  ;;  %v2901_v40 = vadd.f32 %v8331_v58, %v701_v17  ;;  %v638_v23 = vld [vmem:[#allocation2 + $0x348] sm:$0xff]  ;;  %v575_v63 = vld [vmem:[#allocation2 + $0x150] sm:$0xff] }
 0x23e   : > { %v6129_v37 = vpop.eup %6128  ;;  %4314 = vst.msk [vmem:[%s6736_s10 + $0x90] sm:$0xf] %vm4277_vm4, %v4057_v59  ;;  %v4185_v56 = vpack.c.bf16 %v6127_v36, %v6127_v36  ;;  %5540 = vmatmul.msk.bf16.gmra.mxu2 %vm1692_vm2, %v5685_v4  ;;  %v2965_v2 = vadd.f32 %v8333_v34, %v765_v30  ;;  %v702_v47 = vld [vmem:[#allocation2 + $0x548] sm:$0xff]  ;;  %v2774_v25 = vadd.f32 %v8337_v0, %v574_v7 }
 0x23f   : > { %v6131_v44 = vpop.eup %6130  ;;  %4378 = vst.msk [vmem:[%s6736_s10 + $0x190] sm:$0xf] %vm4277_vm4, %v4121_v12  ;;  %v4249_v55 = vpack.c.bf16 %v6129_v37, %v6129_v37  ;;  %v8356_v10 = vpop.f32.mrf.mxu3  ;;  %5572 = vmatmul.msk.bf16.gmra.mxu3 %vm1692_vm2, %v5717_v38  ;;  %v766_v46 = vld [vmem:[#allocation2 + $0x748] sm:$0xff]  ;;  %v2838_v58 = vadd.f32 %v8339_v32, %v638_v23  ;;  %v2902_v34 = vadd.f32 %v2515_v16, %v702_v47  ;;  %v639_v12 = vld [vmem:[#allocation2 + $0x350] sm:$0xff] }
 0x240   : > { %v6133_v3 = vpop.eup %6132  ;;  %4442 = vst.msk [vmem:[%s6736_s10 + $0x290] sm:$0xf] %vm4277_vm4, %v4185_v56  ;;  %v4058_v52 = vpack.c.bf16 %v6131_v44, %v6131_v44  ;;  %v2966_v56 = vadd.f32 %v8356_v10, %v766_v46  ;;  %v703_v44 = vld [vmem:[#allocation2 + $0x550] sm:$0xff] }
 0x241   : > { %v6135_v62 = vpop.eup %6134  ;;  %4506 = vst.msk [vmem:[%s6736_s10 + $0x390] sm:$0xf] %vm4277_vm4, %v4249_v55  ;;  %v4122_v35 = vpack.c.bf16 %v6133_v3, %v6133_v3  ;;  %v2518_v22 = vpop.f32.mrf.mxu2  ;;  %v2775_v3 = vadd.f32 %v8361_v33, %v575_v63  ;;  %v5686_v33 = vld [vmem:[%s6534_s5 + $0x2f0] sm:$0xff]  ;;  %v8463_v63 = vld [vmem:[%s9116_s2] ss:$0 sm:$0xff] }
 0x242   : > { %v6137_v57 = vpop.eup %6136  ;;  %4315 = vst.msk [vmem:[%s6736_s10 + $0x94] sm:$0xf] %vm4277_vm4, %v4058_v52  ;;  %v4186_v27 = vpack.c.bf16 %v6135_v62, %v6135_v62  ;;  %v8391_v51 = vpop.f32.mrf.mxu0  ;;  %v767_v52 = vld [vmem:[#allocation2 + $0x750] sm:$0xff] }
 0x243   : > { %v6139_v29 = vpop.eup %6138  ;;  %4379 = vst.msk [vmem:[%s6736_s10 + $0x194] sm:$0xf] %vm4277_vm4, %v4122_v35  ;;  %v4250_v9 = vpack.c.bf16 %v6137_v57, %v6137_v57  ;;  %v8393_v24 = vpop.f32.mrf.mxu1  ;;  %v2839_v35 = vadd.f32 %v8363_v11, %v639_v12  ;;  %v5718_v11 = vld [vmem:[%s6534_s5 + $0x3f0] sm:$0xff] }
 0x244   : > { %4443 = vst.msk [vmem:[%s6736_s10 + $0x294] sm:$0xf] %vm4277_vm4, %v4186_v27  ;;  %v4059_v20 = vpack.c.bf16 %v6139_v29, %v6139_v29  ;;  %v2903_v29 = vadd.f32 %v2518_v22, %v703_v44 }
 0x245   : > { %4507 = vst.msk [vmem:[%s6736_s10 + $0x394] sm:$0xf] %vm4277_vm4, %v4250_v9 }
 0x246   : > { %4316 = vst.msk [vmem:[%s6736_s10 + $0x98] sm:$0xf] %vm4277_vm4, %v4059_v20  ;;  %v5622_v20 = vld [vmem:[%s6534_s5 + $0xf0] sm:$0xff] }
 0x247   : > { %3092 = vst.msk [vmem:[#allocation2 + $0x330] sm:$0xff] %vm276_vm3, %v2835_v15  ;;  %v2678_v1 = vpop.f32.mrf.mxu3 }
 0x248   : > { %3156 = vst.msk [vmem:[#allocation2 + $0x530] sm:$0xff] %vm276_vm3, %v2899_v49  ;;  %v2967_v10 = vadd.f32 %v2678_v1, %v767_v52  ;;  %v5654_v49 = vld [vmem:[%s6534_s5 + $0x1f0] sm:$0xff] }
 0x249   : > { %3220 = vst.msk [vmem:[#allocation2 + $0x730] sm:$0xff] %vm276_vm3, %v2963_v18  ;;  %v8413_v43 = vpop.f32.mrf.mxu2 }
 0x24a   : > { %3029 = vst.msk [vmem:[#allocation2 + $0x138] sm:$0xff] %vm276_vm3, %v2772_v39  ;;  %v8419_v9 = vpop.f32.mrf.mxu0 }
 0x24b   : > { %3093 = vst.msk [vmem:[#allocation2 + $0x338] sm:$0xff] %vm276_vm3, %v2836_v31  ;;  %v8421_v15 = vpop.f32.mrf.mxu1 }
 0x24c   : > { %3157 = vst.msk [vmem:[#allocation2 + $0x538] sm:$0xff] %vm276_vm3, %v2900_v26  ;;  %5477 = vmatmul.msk.bf16.gmra.mxu0 %vm1692_vm2, %v5622_v20 }
 0x24d   : > { %3221 = vst.msk [vmem:[#allocation2 + $0x738] sm:$0xff] %vm276_vm3, %v2964_v28  ;;  %5509 = vmatmul.msk.bf16.gmra.mxu1 %vm1692_vm2, %v5654_v49 }
 0x24e   : > { %v3351_v48 = vld [vmem:[#allocation2 + $0x330] sm:$0xff]  ;;  %3030 = vst.msk [vmem:[#allocation2 + $0x140] sm:$0xff] %vm276_vm3, %v2773_v41  ;;  %5541 = vmatmul.msk.bf16.gmra.mxu2 %vm1692_vm2, %v5686_v33 }
 0x24f   : > { %v3611_v50 = vadd.f32 %v8104_v54, %v3351_v48  ;;  %v3415_v14 = vld [vmem:[#allocation2 + $0x530] sm:$0xff]  ;;  %3094 = vst.msk [vmem:[#allocation2 + $0x340] sm:$0xff] %vm276_vm3, %v2837_v53  ;;  %v8415_v57 = vpop.f32.mrf.mxu3  ;;  %5573 = vmatmul.msk.bf16.gmra.mxu3 %vm1692_vm2, %v5718_v11 }
 0x250   : > { %v3675_v59 = vadd.f32 %v8104_v54, %v3415_v14  ;;  %v3479_v36 = vld [vmem:[#allocation2 + $0x730] sm:$0xff]  ;;  %3158 = vst.msk [vmem:[#allocation2 + $0x540] sm:$0xff] %vm276_vm3, %v2901_v40 }
 0x251   : > { %6140 = vtanh.f32 %v3611_v50  ;;  %v3739_v37 = vadd.f32 %v8104_v54, %v3479_v36  ;;  %v3288_v0 = vld [vmem:[#allocation2 + $0x138] sm:$0xff]  ;;  %3222 = vst.msk [vmem:[#allocation2 + $0x740] sm:$0xff] %vm276_vm3, %v2965_v2  ;;  %v8447_v40 = vpop.f32.mrf.mxu2 }
 0x252   : > { %6142 = vtanh.f32 %v3675_v59  ;;  %v3548_v32 = vadd.f32 %v8104_v54, %v3288_v0  ;;  %v3352_v55 = vld [vmem:[#allocation2 + $0x338] sm:$0xff]  ;;  %3031 = vst.msk [vmem:[#allocation2 + $0x148] sm:$0xff] %vm276_vm3, %v2774_v25  ;;  %v8454_v46 = vpop.f32.mrf.mxu0 }
 0x253   : > { %6144 = vtanh.f32 %v3739_v37  ;;  %v3612_v8 = vadd.f32 %v8104_v54, %v3352_v55  ;;  %v3416_v62 = vld [vmem:[#allocation2 + $0x538] sm:$0xff]  ;;  %3095 = vst.msk [vmem:[#allocation2 + $0x348] sm:$0xff] %vm276_vm3, %v2838_v58  ;;  %v8456_v50 = vpop.f32.mrf.mxu1 }
 0x254   : > { %6146 = vtanh.f32 %v3548_v32  ;;  %v3676_v27 = vadd.f32 %v8104_v54, %v3416_v62  ;;  %v3480_v5 = vld [vmem:[#allocation2 + $0x738] sm:$0xff]  ;;  %3159 = vst.msk [vmem:[#allocation2 + $0x548] sm:$0xff] %vm276_vm3, %v2902_v34 }
 0x255   : > { %6148 = vtanh.f32 %v3612_v8  ;;  %v3740_v6 = vadd.f32 %v8104_v54, %v3480_v5  ;;  %v3289_v16 = vld [vmem:[#allocation2 + $0x140] sm:$0xff]  ;;  %3223 = vst.msk [vmem:[#allocation2 + $0x748] sm:$0xff] %vm276_vm3, %v2966_v56 }
 0x256   : > { %6150 = vtanh.f32 %v3676_v27  ;;  %v3549_v42 = vadd.f32 %v8104_v54, %v3289_v16  ;;  %v3353_v45 = vld [vmem:[#allocation2 + $0x340] sm:$0xff]  ;;  %3032 = vst.msk [vmem:[#allocation2 + $0x150] sm:$0xff] %vm276_vm3, %v2775_v3 }
 0x257   : > { %v6141_v18 = vpop.eup %6140  ;;  %6152 = vtanh.f32 %v3740_v6  ;;  %v3613_v19 = vadd.f32 %v8104_v54, %v3353_v45  ;;  %v3417_v21 = vld [vmem:[#allocation2 + $0x540] sm:$0xff]  ;;  %3096 = vst.msk [vmem:[#allocation2 + $0x350] sm:$0xff] %vm276_vm3, %v2839_v35  ;;  %v8449_v23 = vpop.f32.mrf.mxu3 }
 0x258   : > { %v6143_v4 = vpop.eup %6142  ;;  %v4123_v39 = vpack.c.bf16 %v6141_v18, %v6141_v18  ;;  %6154 = vtanh.f32 %v3549_v42  ;;  %v3677_v13 = vadd.f32 %v8104_v54, %v3417_v21  ;;  %v3481_v38 = vld [vmem:[#allocation2 + $0x740] sm:$0xff]  ;;  %3160 = vst.msk [vmem:[#allocation2 + $0x550] sm:$0xff] %vm276_vm3, %v2903_v29  ;;  %v5655_v21 = vld [vmem:[%s6534_s5 + $0x1f8] sm:$0xff] }
 0x259   : > { %v6145_v31 = vpop.eup %6144  ;;  %v4187_v61 = vpack.c.bf16 %v6143_v4, %v6143_v4  ;;  %6156 = vtanh.f32 %v3613_v19  ;;  %v3741_v26 = vadd.f32 %v8104_v54, %v3481_v38  ;;  %v3290_v60 = vld [vmem:[#allocation2 + $0x148] sm:$0xff]  ;;  %3224 = vst.msk [vmem:[#allocation2 + $0x750] sm:$0xff] %vm276_vm3, %v2967_v10  ;;  %v8482_v10 = vpop.f32.mrf.mxu2  ;;  %v5623_v19 = vld [vmem:[%s6534_s5 + $0xf8] sm:$0xff] }
 0x25a   : > { %v6147_v28 = vpop.eup %6146  ;;  %4380 = vst.msk [vmem:[%s6736_s10 + $0x198] sm:$0xf] %vm4277_vm4, %v4123_v39  ;;  %v4251_v17 = vpack.c.bf16 %v6145_v31, %v6145_v31  ;;  %6158 = vtanh.f32 %v3677_v13  ;;  %v3550_v41 = vadd.f32 %v8104_v54, %v3290_v60  ;;  %v3354_v30 = vld [vmem:[#allocation2 + $0x348] sm:$0xff]  ;;  %v8488_v45 = vpop.f32.mrf.mxu0  ;;  %v5687_v4 = vld [vmem:[%s6534_s5 + $0x2f8] sm:$0xff] }
 0x25b   : > { %v6149_v53 = vpop.eup %6148  ;;  %4444 = vst.msk [vmem:[%s6736_s10 + $0x298] sm:$0xf] %vm4277_vm4, %v4187_v61  ;;  %v4060_v7 = vpack.c.bf16 %v6147_v28, %v6147_v28  ;;  %6160 = vtanh.f32 %v3741_v26  ;;  %v3614_v22 = vadd.f32 %v8104_v54, %v3354_v30  ;;  %v3418_v1 = vld [vmem:[#allocation2 + $0x548] sm:$0xff]  ;;  %v8490_v33 = vpop.f32.mrf.mxu1  ;;  %v576_v38 = vld [vmem:[#allocation2 + $0x158] sm:$0xff] }
 0x25c   : > { %v6151_v2 = vpop.eup %6150  ;;  %4508 = vst.msk [vmem:[%s6736_s10 + $0x398] sm:$0xf] %vm4277_vm4, %v4251_v17  ;;  %v4124_v47 = vpack.c.bf16 %v6149_v53, %v6149_v53  ;;  %6162 = vtanh.f32 %v3550_v41  ;;  %v3678_v48 = vadd.f32 %v8104_v54, %v3418_v1  ;;  %v3482_v25 = vld [vmem:[#allocation2 + $0x748] sm:$0xff]  ;;  %v5719_v31 = vld [vmem:[%s6534_s5 + $0x3f8] sm:$0xff]  ;;  %5478 = vmatmul.msk.bf16.gmra.mxu0 %vm1692_vm2, %v5623_v19 }
 0x25d   : > { %v6153_v14 = vpop.eup %6152  ;;  %4317 = vst.msk [vmem:[%s6736_s10 + $0x9c] sm:$0xf] %vm4277_vm4, %v4060_v7  ;;  %v4188_v58 = vpack.c.bf16 %v6151_v2, %v6151_v2  ;;  %6164 = vtanh.f32 %v3614_v22  ;;  %v3742_v59 = vadd.f32 %v8463_v63, %v3482_v25  ;;  %v3291_v54 = vld [vmem:[#allocation2 + $0x150] sm:$0xff]  ;;  %v640_v60 = vld [vmem:[#allocation2 + $0x358] sm:$0xff]  ;;  %5510 = vmatmul.msk.bf16.gmra.mxu1 %vm1692_vm2, %v5655_v21  ;;  %v2776_v7 = vadd.f32 %v8391_v51, %v576_v38  ;;  %v641_v25 = vld [vmem:[#allocation2 + $0x360] sm:$0xff] }
 0x25e   : > { %v6155_v36 = vpop.eup %6154  ;;  %4381 = vst.msk [vmem:[%s6736_s10 + $0x19c] sm:$0xf] %vm4277_vm4, %v4124_v47  ;;  %v4252_v34 = vpack.c.bf16 %v6153_v14, %v6153_v14  ;;  %6166 = vtanh.f32 %v3678_v48  ;;  %v3551_v12 = vadd.f32 %v8463_v63, %v3291_v54  ;;  %v3355_v37 = vld [vmem:[#allocation2 + $0x350] sm:$0xff]  ;;  %v704_v41 = vld [vmem:[#allocation2 + $0x558] sm:$0xff]  ;;  %5542 = vmatmul.msk.bf16.gmra.mxu2 %vm1692_vm2, %v5687_v4  ;;  %v2840_v2 = vadd.f32 %v8393_v24, %v640_v60  ;;  %v577_v47 = vld [vmem:[#allocation2 + $0x160] sm:$0xff] }
 0x25f   : > { %v6157_v0 = vpop.eup %6156  ;;  %4445 = vst.msk [vmem:[%s6736_s10 + $0x29c] sm:$0xf] %vm4277_vm4, %v4188_v58  ;;  %v4061_v56 = vpack.c.bf16 %v6155_v36, %v6155_v36  ;;  %6168 = vtanh.f32 %v3742_v59  ;;  %v3615_v44 = vadd.f32 %v8463_v63, %v3355_v37  ;;  %v3419_v32 = vld [vmem:[#allocation2 + $0x550] sm:$0xff]  ;;  %v8484_v20 = vpop.f32.mrf.mxu3  ;;  %5574 = vmatmul.msk.bf16.gmra.mxu3 %vm1692_vm2, %v5719_v31  ;;  %v768_v22 = vld [vmem:[#allocation2 + $0x758] sm:$0xff]  ;;  %v2904_v48 = vadd.f32 %v8413_v43, %v704_v41  ;;  %v705_v54 = vld [vmem:[#allocation2 + $0x560] sm:$0xff] }
 0x260   : > { %v6159_v55 = vpop.eup %6158  ;;  %4509 = vst.msk [vmem:[%s6736_s10 + $0x39c] sm:$0xf] %vm4277_vm4, %v4252_v34  ;;  %v4125_v3 = vpack.c.bf16 %v6157_v0, %v6157_v0  ;;  %6170 = vtanh.f32 %v3551_v12  ;;  %v3679_v52 = vadd.f32 %v8463_v63, %v3419_v32  ;;  %v3483_v8 = vld [vmem:[#allocation2 + $0x750] sm:$0xff]  ;;  %v2968_v59 = vadd.f32 %v8415_v57, %v768_v22  ;;  %v769_v24 = vld [vmem:[#allocation2 + $0x760] sm:$0xff]  ;;  %v578_v43 = vld [vmem:[#allocation2 + $0x168] sm:$0xff] }
 0x261   : > { %v6161_v62 = vpop.eup %6160  ;;  %4318 = vst.msk [vmem:[%s6736_s10 + $0xa0] sm:$0xf] %vm4277_vm4, %v4061_v56  ;;  %v4189_v35 = vpack.c.bf16 %v6159_v55, %v6159_v55  ;;  %6172 = vtanh.f32 %v3615_v44  ;;  %v3743_v27 = vadd.f32 %v8463_v63, %v3483_v8  ;;  %v2528_v14 = vpop.f32.mrf.mxu2  ;;  %v2777_v34 = vadd.f32 %v8419_v9, %v577_v47  ;;  %v642_v0 = vld [vmem:[#allocation2 + $0x368] sm:$0xff]  ;;  %v579_v32 = vld [vmem:[#allocation2 + $0x170] sm:$0xff]  ;;  %v708_v4 = vld [vmem:[#allocation2 + $0x578] sm:$0xff] }
 0x262   : > { %v6163_v5 = vpop.eup %6162  ;;  %4382 = vst.msk [vmem:[%s6736_s10 + $0x1a0] sm:$0xf] %vm4277_vm4, %v4125_v3  ;;  %v4253_v29 = vpack.c.bf16 %v6161_v62, %v6161_v62  ;;  %6174 = vtanh.f32 %v3679_v52  ;;  %v2210_v51 = vpop.f32.mrf.mxu0  ;;  %v2841_v12 = vadd.f32 %v8421_v15, %v641_v25  ;;  %v2905_v37 = vadd.f32 %v8447_v40, %v705_v54  ;;  %v706_v56 = vld [vmem:[#allocation2 + $0x568] sm:$0xff]  ;;  %v643_v55 = vld [vmem:[#allocation2 + $0x370] sm:$0xff] }
 0x263   : > { %v6165_v6 = vpop.eup %6164  ;;  %4446 = vst.msk [vmem:[%s6736_s10 + $0x2a0] sm:$0xf] %vm4277_vm4, %v4189_v35  ;;  %v4062_v16 = vpack.c.bf16 %v6163_v5, %v6163_v5  ;;  %6176 = vtanh.f32 %v3743_v27  ;;  %v2370_v36 = vpop.f32.mrf.mxu1  ;;  %v2969_v57 = vadd.f32 %v8449_v23, %v769_v24  ;;  %v2778_v9 = vadd.f32 %v8454_v46, %v578_v43  ;;  %v770_v44 = vld [vmem:[#allocation2 + $0x768] sm:$0xff]  ;;  %v707_v46 = vld [vmem:[#allocation2 + $0x570] sm:$0xff] }
 0x264   : > { %v6167_v49 = vpop.eup %6166  ;;  %4510 = vst.msk [vmem:[%s6736_s10 + $0x3a0] sm:$0xf] %vm4277_vm4, %v4253_v29  ;;  %v4126_v42 = vpack.c.bf16 %v6165_v6, %v6165_v6  ;;  %v2842_v15 = vadd.f32 %v8456_v50, %v642_v0  ;;  %v2906_v40 = vadd.f32 %v8482_v10, %v706_v56  ;;  %v2970_v8 = vadd.f32 %v8484_v20, %v770_v44  ;;  %v771_v29 = vld [vmem:[#allocation2 + $0x770] sm:$0xff]  ;;  %v580_v20 = vld [vmem:[#allocation2 + $0x178] sm:$0xff] }
 0x265   : > { %v6169_v11 = vpop.eup %6168  ;;  %4319 = vst.msk [vmem:[%s6736_s10 + $0xa4] sm:$0xf] %vm4277_vm4, %v4062_v16  ;;  %v4190_v18 = vpack.c.bf16 %v6167_v49, %v6167_v49  ;;  %v2779_v5 = vadd.f32 %v8488_v45, %v579_v32  ;;  %v2843_v10 = vadd.f32 %v8490_v33, %v643_v55 }
 0x266   : > { %v6171_v39 = vpop.eup %6170  ;;  %4383 = vst.msk [vmem:[%s6736_s10 + $0x1a4] sm:$0xf] %vm4277_vm4, %v4126_v42  ;;  %v4254_v13 = vpack.c.bf16 %v6169_v11, %v6169_v11  ;;  %v2907_v11 = vadd.f32 %v2528_v14, %v707_v46 }
 0x267   : > { %v6173_v61 = vpop.eup %6172  ;;  %4447 = vst.msk [vmem:[%s6736_s10 + $0x2a4] sm:$0xf] %vm4277_vm4, %v4190_v18  ;;  %v4063_v26 = vpack.c.bf16 %v6171_v39, %v6171_v39  ;;  %v2688_v58 = vpop.f32.mrf.mxu3  ;;  %v644_v18 = vld [vmem:[#allocation2 + $0x378] sm:$0xff] }
 0x268   : > { %v6175_v28 = vpop.eup %6174  ;;  %4511 = vst.msk [vmem:[%s6736_s10 + $0x3a4] sm:$0xf] %vm4277_vm4, %v4254_v13  ;;  %v4127_v17 = vpack.c.bf16 %v6173_v61, %v6173_v61  ;;  %v2971_v21 = vadd.f32 %v2688_v58, %v771_v29  ;;  %v2780_v13 = vadd.f32 %v2210_v51, %v580_v20  ;;  %v2844_v61 = vadd.f32 %v2370_v36, %v644_v18 }
 0x269   : > { %v6177_v30 = vpop.eup %6176  ;;  %4320 = vst.msk [vmem:[%s6736_s10 + $0xa8] sm:$0xf] %vm4277_vm4, %v4063_v26  ;;  %v4191_v53 = vpack.c.bf16 %v6175_v28, %v6175_v28  ;;  %v2530_v3 = vpop.f32.mrf.mxu2 }
 0x26a   : > { %4384 = vst.msk [vmem:[%s6736_s10 + $0x1a8] sm:$0xf] %vm4277_vm4, %v4127_v17  ;;  %v4255_v1 = vpack.c.bf16 %v6177_v30, %v6177_v30  ;;  %v8538_v62 = vpop.f32.mrf.mxu0  ;;  %v2908_v28 = vadd.f32 %v2530_v3, %v708_v4 }
 0x26b   : > { %4448 = vst.msk [vmem:[%s6736_s10 + $0x2a8] sm:$0xf] %vm4277_vm4, %v4191_v53  ;;  %v8540_v35 = vpop.f32.mrf.mxu1 }
 0x26c   : > { %4512 = vst.msk [vmem:[%s6736_s10 + $0x3a8] sm:$0xf] %vm4277_vm4, %v4255_v1 }
 0x26d   : > { %3033 = vst.msk [vmem:[#allocation2 + $0x158] sm:$0xff] %vm276_vm3, %v2776_v7 }
 0x26e   : > { %3097 = vst.msk [vmem:[#allocation2 + $0x358] sm:$0xff] %vm276_vm3, %v2840_v2 }
 0x26f   : > { %3161 = vst.msk [vmem:[#allocation2 + $0x558] sm:$0xff] %vm276_vm3, %v2904_v48  ;;  %v8534_v52 = vpop.f32.mrf.mxu3 }
 0x270   : > { %3225 = vst.msk [vmem:[#allocation2 + $0x758] sm:$0xff] %vm276_vm3, %v2968_v59 }
 0x271   : > { %3034 = vst.msk [vmem:[#allocation2 + $0x160] sm:$0xff] %vm276_vm3, %v2777_v34  ;;  %v8558_v17 = vpop.f32.mrf.mxu2 }
 0x272   : > { %3098 = vst.msk [vmem:[#allocation2 + $0x360] sm:$0xff] %vm276_vm3, %v2841_v12  ;;  %v8564_v7 = vpop.f32.mrf.mxu0 }
 0x273   : > { %3162 = vst.msk [vmem:[#allocation2 + $0x560] sm:$0xff] %vm276_vm3, %v2905_v37  ;;  %v8566_v22 = vpop.f32.mrf.mxu1 }
 0x274   : > { %v3292_v23 = vld [vmem:[#allocation2 + $0x158] sm:$0xff]  ;;  %3226 = vst.msk [vmem:[#allocation2 + $0x760] sm:$0xff] %vm276_vm3, %v2969_v57 }
 0x275   : > { %v3552_v50 = vadd.f32 %v8463_v63, %v3292_v23  ;;  %v3356_v27 = vld [vmem:[#allocation2 + $0x358] sm:$0xff]  ;;  %3035 = vst.msk [vmem:[#allocation2 + $0x168] sm:$0xff] %vm276_vm3, %v2778_v9 }
 0x276   : > { %v3616_v6 = vadd.f32 %v8463_v63, %v3356_v27  ;;  %v3420_v16 = vld [vmem:[#allocation2 + $0x558] sm:$0xff]  ;;  %3099 = vst.msk [vmem:[#allocation2 + $0x368] sm:$0xff] %vm276_vm3, %v2842_v15 }
 0x277   : > { %6178 = vtanh.f32 %v3552_v50  ;;  %v3680_v49 = vadd.f32 %v8463_v63, %v3420_v16  ;;  %v3484_v42 = vld [vmem:[#allocation2 + $0x758] sm:$0xff]  ;;  %3163 = vst.msk [vmem:[#allocation2 + $0x568] sm:$0xff] %vm276_vm3, %v2906_v40  ;;  %v8560_v41 = vpop.f32.mrf.mxu3 }
 0x278   : > { %6180 = vtanh.f32 %v3616_v6  ;;  %v3744_v45 = vadd.f32 %v8463_v63, %v3484_v42  ;;  %v3293_v19 = vld [vmem:[#allocation2 + $0x160] sm:$0xff]  ;;  %3227 = vst.msk [vmem:[#allocation2 + $0x768] sm:$0xff] %vm276_vm3, %v2970_v8 }
 0x279   : > { %6182 = vtanh.f32 %v3680_v49  ;;  %v3553_v33 = vadd.f32 %v8463_v63, %v3293_v19  ;;  %v3357_v39 = vld [vmem:[#allocation2 + $0x360] sm:$0xff]  ;;  %3036 = vst.msk [vmem:[#allocation2 + $0x170] sm:$0xff] %vm276_vm3, %v2779_v5  ;;  %v8586_v8 = vpop.f32.mrf.mxu2 }
 0x27a   : > { %6184 = vtanh.f32 %v3744_v45  ;;  %v3617_v38 = vadd.f32 %v8463_v63, %v3357_v39  ;;  %v3421_v31 = vld [vmem:[#allocation2 + $0x560] sm:$0xff]  ;;  %3100 = vst.msk [vmem:[#allocation2 + $0x370] sm:$0xff] %vm276_vm3, %v2843_v10  ;;  %v8593_v6 = vpop.f32.mrf.mxu0 }
 0x27b   : > { %6186 = vtanh.f32 %v3553_v33  ;;  %v3681_v26 = vadd.f32 %v8463_v63, %v3421_v31  ;;  %v3485_v60 = vld [vmem:[#allocation2 + $0x760] sm:$0xff]  ;;  %3164 = vst.msk [vmem:[#allocation2 + $0x570] sm:$0xff] %vm276_vm3, %v2907_v11  ;;  %v8595_v16 = vpop.f32.mrf.mxu1 }
 0x27c   : > { %6188 = vtanh.f32 %v3617_v38  ;;  %v3745_v30 = vadd.f32 %v8463_v63, %v3485_v60  ;;  %v3294_v53 = vld [vmem:[#allocation2 + $0x168] sm:$0xff]  ;;  %3228 = vst.msk [vmem:[#allocation2 + $0x770] sm:$0xff] %vm276_vm3, %v2971_v21 }
 0x27d   : > { %v6179_v1 = vpop.eup %6178  ;;  %6190 = vtanh.f32 %v3681_v26  ;;  %v3554_v2 = vadd.f32 %v8463_v63, %v3294_v53  ;;  %v3358_v47 = vld [vmem:[#allocation2 + $0x368] sm:$0xff]  ;;  %3037 = vst.msk [vmem:[#allocation2 + $0x178] sm:$0xff] %vm276_vm3, %v2780_v13 }
 0x27e   : > { %v6181_v48 = vpop.eup %6180  ;;  %v4064_v25 = vpack.c.bf16 %v6179_v1, %v6179_v1  ;;  %6192 = vtanh.f32 %v3745_v30  ;;  %v3618_v14 = vadd.f32 %v8463_v63, %v3358_v47  ;;  %v3422_v58 = vld [vmem:[#allocation2 + $0x568] sm:$0xff]  ;;  %3101 = vst.msk [vmem:[#allocation2 + $0x378] sm:$0xff] %vm276_vm3, %v2844_v61  ;;  %v772_v47 = vld [vmem:[#allocation2 + $0x778] sm:$0xff] }
 0x27f   : > { %v6183_v59 = vpop.eup %6182  ;;  %v4128_v54 = vpack.c.bf16 %v6181_v48, %v6181_v48  ;;  %6194 = vtanh.f32 %v3554_v2  ;;  %v3682_v51 = vadd.f32 %v8463_v63, %v3422_v58  ;;  %v3486_v36 = vld [vmem:[#allocation2 + $0x768] sm:$0xff]  ;;  %3165 = vst.msk [vmem:[#allocation2 + $0x578] sm:$0xff] %vm276_vm3, %v2908_v28  ;;  %v8588_v46 = vpop.f32.mrf.mxu3 }
 0x280   : > { %v6185_v34 = vpop.eup %6184  ;;  %4321 = vst.msk [vmem:[%s6736_s10 + $0xac] sm:$0xf] %vm4277_vm4, %v4064_v25  ;;  %v4192_v24 = vpack.c.bf16 %v6183_v59, %v6183_v59  ;;  %6196 = vtanh.f32 %v3618_v14  ;;  %v3746_v12 = vadd.f32 %v8463_v63, %v3486_v36  ;;  %v3295_v43 = vld [vmem:[#allocation2 + $0x170] sm:$0xff]  ;;  %v581_v59 = vld [vmem:[#allocation2 + $0x180] sm:$0xff] }
 0x281   : > { %v6187_v37 = vpop.eup %6186  ;;  %4385 = vst.msk [vmem:[%s6736_s10 + $0x1ac] sm:$0xf] %vm4277_vm4, %v4128_v54  ;;  %v4256_v0 = vpack.c.bf16 %v6185_v34, %v6185_v34  ;;  %6198 = vtanh.f32 %v3682_v51  ;;  %v3555_v57 = vadd.f32 %v8463_v63, %v3295_v43  ;;  %v3359_v56 = vld [vmem:[#allocation2 + $0x370] sm:$0xff]  ;;  %v2538_v30 = vpop.f32.mrf.mxu2  ;;  %v645_v36 = vld [vmem:[#allocation2 + $0x380] sm:$0xff] }
 0x282   : > { %v6189_v9 = vpop.eup %6188  ;;  %4449 = vst.msk [vmem:[%s6736_s10 + $0x2ac] sm:$0xf] %vm4277_vm4, %v4192_v24  ;;  %v4065_v44 = vpack.c.bf16 %v6187_v37, %v6187_v37  ;;  %6200 = vtanh.f32 %v3746_v12  ;;  %v3619_v15 = vadd.f32 %v8463_v63, %v3359_v56  ;;  %v3423_v32 = vld [vmem:[#allocation2 + $0x570] sm:$0xff]  ;;  %v8616_v48 = vpop.f32.mrf.mxu0  ;;  %v2972_v12 = vadd.f32 %v8534_v52, %v772_v47  ;;  %v709_v43 = vld [vmem:[#allocation2 + $0x580] sm:$0xff] }
 0x283   : > { %v6191_v40 = vpop.eup %6190  ;;  %4513 = vst.msk [vmem:[%s6736_s10 + $0x3ac] sm:$0xf] %vm4277_vm4, %v4256_v0  ;;  %v4129_v55 = vpack.c.bf16 %v6189_v9, %v6189_v9  ;;  %6202 = vtanh.f32 %v3555_v57  ;;  %v3683_v3 = vadd.f32 %v8463_v63, %v3423_v32  ;;  %v3487_v23 = vld [vmem:[#allocation2 + $0x770] sm:$0xff]  ;;  %v8618_v25 = vpop.f32.mrf.mxu1  ;;  %v2781_v0 = vadd.f32 %v8538_v62, %v581_v59  ;;  %v773_v57 = vld [vmem:[#allocation2 + $0x780] sm:$0xff]  ;;  %v582_v9 = vld [vmem:[#allocation2 + $0x188] sm:$0xff] }
 0x284   : > { %v6193_v50 = vpop.eup %6192  ;;  %4322 = vst.msk [vmem:[%s6736_s10 + $0xb0] sm:$0xf] %vm4277_vm4, %v4065_v44  ;;  %v4193_v27 = vpack.c.bf16 %v6191_v40, %v6191_v40  ;;  %6204 = vtanh.f32 %v3619_v15  ;;  %v3747_v5 = vadd.f32 %v8463_v63, %v3487_v23  ;;  %v3296_v29 = vld [vmem:[#allocation2 + $0x178] sm:$0xff]  ;;  %v2845_v56 = vadd.f32 %v8540_v35, %v645_v36  ;;  %v646_v15 = vld [vmem:[#allocation2 + $0x388] sm:$0xff] }
 0x285   : > { %v6195_v10 = vpop.eup %6194  ;;  %4386 = vst.msk [vmem:[%s6736_s10 + $0x1b0] sm:$0xf] %vm4277_vm4, %v4129_v55  ;;  %v4257_v20 = vpack.c.bf16 %v6193_v50, %v6193_v50  ;;  %6206 = vtanh.f32 %v3683_v3  ;;  %v3556_v49 = vadd.f32 %v8463_v63, %v3296_v29  ;;  %v3360_v42 = vld [vmem:[#allocation2 + $0x378] sm:$0xff]  ;;  %v2909_v44 = vadd.f32 %v8558_v17, %v709_v43  ;;  %v710_v32 = vld [vmem:[#allocation2 + $0x588] sm:$0xff]  ;;  %v583_v17 = vld [vmem:[#allocation2 + $0x190] sm:$0xff] }
 0x286   : > { %v6197_v11 = vpop.eup %6196  ;;  %4450 = vst.msk [vmem:[%s6736_s10 + $0x2b0] sm:$0xf] %vm4277_vm4, %v4193_v27  ;;  %v4066_v18 = vpack.c.bf16 %v6195_v10, %v6195_v10  ;;  %6208 = vtanh.f32 %v3747_v5  ;;  %v3620_v45 = vadd.f32 %v8463_v63, %v3360_v42  ;;  %v3424_v19 = vld [vmem:[#allocation2 + $0x578] sm:$0xff]  ;;  %v2973_v52 = vadd.f32 %v8560_v41, %v773_v57  ;;  %v774_v3 = vld [vmem:[#allocation2 + $0x788] sm:$0xff]  ;;  %v647_v41 = vld [vmem:[#allocation2 + $0x390] sm:$0xff] }
 0x287   : > { %v6199_v21 = vpop.eup %6198  ;;  %4514 = vst.msk [vmem:[%s6736_s10 + $0x3b0] sm:$0xf] %vm4277_vm4, %v4257_v20  ;;  %v4130_v4 = vpack.c.bf16 %v6197_v11, %v6197_v11  ;;  %6210 = vtanh.f32 %v3556_v49  ;;  %v3684_v33 = vadd.f32 %v8463_v63, %v3424_v19  ;;  %v2698_v53 = vpop.f32.mrf.mxu3  ;;  %v2782_v62 = vadd.f32 %v8564_v7, %v582_v9  ;;  %v711_v29 = vld [vmem:[#allocation2 + $0x590] sm:$0xff]  ;;  %v584_v20 = vld [vmem:[#allocation2 + $0x198] sm:$0xff] }
 0x288   : > { %v6201_v39 = vpop.eup %6200  ;;  %4323 = vst.msk [vmem:[%s6736_s10 + $0xb4] sm:$0xf] %vm4277_vm4, %v4066_v18  ;;  %v4194_v13 = vpack.c.bf16 %v6199_v21, %v6199_v21  ;;  %6212 = vtanh.f32 %v3620_v45  ;;  %v2846_v50 = vadd.f32 %v8566_v22, %v646_v15  ;;  %v2910_v27 = vadd.f32 %v8586_v8, %v710_v32  ;;  %v775_v10 = vld [vmem:[#allocation2 + $0x790] sm:$0xff]  ;;  %v648_v42 = vld [vmem:[#allocation2 + $0x398] sm:$0xff] }
 0x289   : > { %v6203_v38 = vpop.eup %6202  ;;  %4387 = vst.msk [vmem:[%s6736_s10 + $0x1b4] sm:$0xf] %vm4277_vm4, %v4130_v4  ;;  %v4258_v31 = vpack.c.bf16 %v6201_v39, %v6201_v39  ;;  %6214 = vtanh.f32 %v3684_v33  ;;  %v2540_v40 = vpop.f32.mrf.mxu2  ;;  %v2974_v5 = vadd.f32 %v8588_v46, %v774_v3  ;;  %v2783_v7 = vadd.f32 %v8593_v6, %v583_v17  ;;  %v712_v45 = vld [vmem:[#allocation2 + $0x598] sm:$0xff] }
 0x28a   : > { %v6205_v61 = vpop.eup %6204  ;;  %4451 = vst.msk [vmem:[%s6736_s10 + $0x2b4] sm:$0xf] %vm4277_vm4, %v4194_v13  ;;  %v4067_v26 = vpack.c.bf16 %v6203_v38, %v6203_v38  ;;  %v2223_v23 = vpop.f32.mrf.mxu0  ;;  %v2847_v22 = vadd.f32 %v8595_v16, %v647_v41  ;;  %v2911_v8 = vadd.f32 %v2538_v30, %v711_v29  ;;  %v2975_v46 = vadd.f32 %v2698_v53, %v775_v10  ;;  %v776_v33 = vld [vmem:[#allocation2 + $0x798] sm:$0xff]  ;;  %v649_v53 = vld [vmem:[#allocation2 + $0x3a0] sm:$0xff] }
 0x28b   : > { %v6207_v60 = vpop.eup %6206  ;;  %4515 = vst.msk [vmem:[%s6736_s10 + $0x3b4] sm:$0xf] %vm4277_vm4, %v4258_v31  ;;  %v4131_v28 = vpack.c.bf16 %v6205_v61, %v6205_v61  ;;  %v2383_v35 = vpop.f32.mrf.mxu1  ;;  %v2784_v4 = vadd.f32 %v8616_v48, %v584_v20  ;;  %v2848_v61 = vadd.f32 %v8618_v25, %v648_v42  ;;  %v2912_v30 = vadd.f32 %v2540_v40, %v712_v45 }
 0x28c   : > { %v6209_v1 = vpop.eup %6208  ;;  %4324 = vst.msk [vmem:[%s6736_s10 + $0xb8] sm:$0xf] %vm4277_vm4, %v4067_v26  ;;  %v4195_v2 = vpack.c.bf16 %v6207_v60, %v6207_v60  ;;  %v585_v26 = vld [vmem:[#allocation2 + $0x1a0] sm:$0xff] }
 0x28d   : > { %v6211_v14 = vpop.eup %6210  ;;  %4388 = vst.msk [vmem:[%s6736_s10 + $0x1b8] sm:$0xf] %vm4277_vm4, %v4131_v28  ;;  %v4259_v58 = vpack.c.bf16 %v6209_v1, %v6209_v1 }
 0x28e   : > { %v6213_v54 = vpop.eup %6212  ;;  %4452 = vst.msk [vmem:[%s6736_s10 + $0x2b8] sm:$0xf] %vm4277_vm4, %v4195_v2  ;;  %v4068_v51 = vpack.c.bf16 %v6211_v14, %v6211_v14  ;;  %v2785_v14 = vadd.f32 %v2223_v23, %v585_v26 }
 0x28f   : > { %v6215_v34 = vpop.eup %6214  ;;  %4516 = vst.msk [vmem:[%s6736_s10 + $0x3b8] sm:$0xf] %vm4277_vm4, %v4259_v58  ;;  %v4132_v24 = vpack.c.bf16 %v6213_v54, %v6213_v54  ;;  %v2700_v55 = vpop.f32.mrf.mxu3  ;;  %v2849_v54 = vadd.f32 %v2383_v35, %v649_v53 }
 0x290   : > { %4325 = vst.msk [vmem:[%s6736_s10 + $0xbc] sm:$0xf] %vm4277_vm4, %v4068_v51  ;;  %v4196_v37 = vpack.c.bf16 %v6215_v34, %v6215_v34  ;;  %v2976_v47 = vadd.f32 %v2700_v55, %v776_v33 }
 0x291   : > { %4389 = vst.msk [vmem:[%s6736_s10 + $0x1bc] sm:$0xf] %vm4277_vm4, %v4132_v24  ;;  %v8653_v19 = vpop.f32.mrf.mxu2 }
 0x292   : > { %4453 = vst.msk [vmem:[%s6736_s10 + $0x2bc] sm:$0xf] %vm4277_vm4, %v4196_v37  ;;  %v8660_v39 = vpop.f32.mrf.mxu0 }
 0x293   : > { %3229 = vst.msk [vmem:[#allocation2 + $0x778] sm:$0xff] %vm276_vm3, %v2972_v12  ;;  %v8662_v13 = vpop.f32.mrf.mxu1 }
 0x294   : > { %3038 = vst.msk [vmem:[#allocation2 + $0x180] sm:$0xff] %vm276_vm3, %v2781_v0 }
 0x295   : > { %3102 = vst.msk [vmem:[#allocation2 + $0x380] sm:$0xff] %vm276_vm3, %v2845_v56 }
 0x296   : > { %3166 = vst.msk [vmem:[#allocation2 + $0x580] sm:$0xff] %vm276_vm3, %v2909_v44 }
 0x297   : > { %3230 = vst.msk [vmem:[#allocation2 + $0x780] sm:$0xff] %vm276_vm3, %v2973_v52  ;;  %v8655_v6 = vpop.f32.mrf.mxu3 }
 0x298   : > { %3039 = vst.msk [vmem:[#allocation2 + $0x188] sm:$0xff] %vm276_vm3, %v2782_v62 }
 0x299   : > { %3103 = vst.msk [vmem:[#allocation2 + $0x388] sm:$0xff] %vm276_vm3, %v2846_v50  ;;  %v8679_v43 = vpop.f32.mrf.mxu2 }
 0x29a   : > { %v3488_v49 = vld [vmem:[#allocation2 + $0x778] sm:$0xff]  ;;  %3167 = vst.msk [vmem:[#allocation2 + $0x588] sm:$0xff] %vm276_vm3, %v2910_v27  ;;  %v8685_v44 = vpop.f32.mrf.mxu0 }
 0x29b   : > { %v3748_v11 = vadd.f32 %v8463_v63, %v3488_v49  ;;  %v3297_v18 = vld [vmem:[#allocation2 + $0x180] sm:$0xff]  ;;  %3231 = vst.msk [vmem:[#allocation2 + $0x788] sm:$0xff] %vm276_vm3, %v2974_v5  ;;  %v8687_v15 = vpop.f32.mrf.mxu1 }
 0x29c   : > { %v3557_v21 = vadd.f32 %v8463_v63, %v3297_v18  ;;  %v3361_v16 = vld [vmem:[#allocation2 + $0x380] sm:$0xff]  ;;  %3040 = vst.msk [vmem:[#allocation2 + $0x190] sm:$0xff] %vm276_vm3, %v2783_v7 }
 0x29d   : > { %6216 = vtanh.f32 %v3748_v11  ;;  %v3621_v38 = vadd.f32 %v8463_v63, %v3361_v16  ;;  %v3425_v31 = vld [vmem:[#allocation2 + $0x580] sm:$0xff]  ;;  %3104 = vst.msk [vmem:[#allocation2 + $0x390] sm:$0xff] %vm276_vm3, %v2847_v22 }
 0x29e   : > { %6218 = vtanh.f32 %v3557_v21  ;;  %v3685_v60 = vadd.f32 %v8463_v63, %v3425_v31  ;;  %v3489_v28 = vld [vmem:[#allocation2 + $0x780] sm:$0xff]  ;;  %3168 = vst.msk [vmem:[#allocation2 + $0x590] sm:$0xff] %vm276_vm3, %v2911_v8 }
 0x29f   : > { %6220 = vtanh.f32 %v3621_v38  ;;  %v3749_v1 = vadd.f32 %v8463_v63, %v3489_v28  ;;  %v3298_v2 = vld [vmem:[#allocation2 + $0x188] sm:$0xff]  ;;  %3232 = vst.msk [vmem:[#allocation2 + $0x790] sm:$0xff] %vm276_vm3, %v2975_v46  ;;  %v8681_v37 = vpop.f32.mrf.mxu3 }
 0x2a0   : > { %6222 = vtanh.f32 %v3685_v60  ;;  %v3558_v48 = vadd.f32 %v8463_v63, %v3298_v2  ;;  %v3362_v25 = vld [vmem:[#allocation2 + $0x388] sm:$0xff]  ;;  %3041 = vst.msk [vmem:[#allocation2 + $0x198] sm:$0xff] %vm276_vm3, %v2784_v4 }
 0x2a1   : > { %6224 = vtanh.f32 %v3749_v1  ;;  %v3622_v58 = vadd.f32 %v8463_v63, %v3362_v25  ;;  %v3426_v59 = vld [vmem:[#allocation2 + $0x588] sm:$0xff]  ;;  %3105 = vst.msk [vmem:[#allocation2 + $0x398] sm:$0xff] %vm276_vm3, %v2848_v61  ;;  %v8709_v33 = vpop.f32.mrf.mxu2 }
 0x2a2   : > { %6226 = vtanh.f32 %v3558_v48  ;;  %v3686_v51 = vadd.f32 %v8463_v63, %v3426_v59  ;;  %v3490_v36 = vld [vmem:[#allocation2 + $0x788] sm:$0xff]  ;;  %3169 = vst.msk [vmem:[#allocation2 + $0x598] sm:$0xff] %vm276_vm3, %v2912_v30  ;;  %v8716_v28 = vpop.f32.mrf.mxu0 }
 0x2a3   : > { %v6217_v34 = vpop.eup %6216  ;;  %6228 = vtanh.f32 %v3622_v58  ;;  %v3750_v24 = vadd.f32 %v8463_v63, %v3490_v36  ;;  %v3299_v12 = vld [vmem:[#allocation2 + $0x190] sm:$0xff]  ;;  %3233 = vst.msk [vmem:[#allocation2 + $0x798] sm:$0xff] %vm276_vm3, %v2976_v47  ;;  %v8718_v30 = vpop.f32.mrf.mxu1 }
 0x2a4   : > { %v6219_v0 = vpop.eup %6218  ;;  %v4260_v57 = vpack.c.bf16 %v6217_v34, %v6217_v34  ;;  %6230 = vtanh.f32 %v3686_v51  ;;  %v3559_v56 = vadd.f32 %v8463_v63, %v3299_v12  ;;  %v3363_v9 = vld [vmem:[#allocation2 + $0x390] sm:$0xff]  ;;  %3042 = vst.msk [vmem:[#allocation2 + $0x1a0] sm:$0xff] %vm276_vm3, %v2785_v14 }
 0x2a5   : > { %v6221_v52 = vpop.eup %6220  ;;  %v4069_v32 = vpack.c.bf16 %v6219_v0, %v6219_v0  ;;  %6232 = vtanh.f32 %v3750_v24  ;;  %v3623_v40 = vadd.f32 %v8463_v63, %v3363_v9  ;;  %v3427_v55 = vld [vmem:[#allocation2 + $0x590] sm:$0xff]  ;;  %3106 = vst.msk [vmem:[#allocation2 + $0x3a0] sm:$0xff] %vm276_vm3, %v2849_v54  ;;  %v713_v24 = vld [vmem:[#allocation2 + $0x5a0] sm:$0xff] }
 0x2a6   : > { %v6223_v62 = vpop.eup %6222  ;;  %4517 = vst.msk [vmem:[%s6736_s10 + $0x3bc] sm:$0xf] %vm4277_vm4, %v4260_v57  ;;  %v4133_v3 = vpack.c.bf16 %v6221_v52, %v6221_v52  ;;  %6234 = vtanh.f32 %v3559_v56  ;;  %v3687_v23 = vadd.f32 %v8463_v63, %v3427_v55  ;;  %v3491_v35 = vld [vmem:[#allocation2 + $0x790] sm:$0xff]  ;;  %v777_v57 = vld [vmem:[#allocation2 + $0x7a0] sm:$0xff] }
 0x2a7   : > { %v6225_v50 = vpop.eup %6224  ;;  %4326 = vst.msk [vmem:[%s6736_s10 + $0xc0] sm:$0xf] %vm4277_vm4, %v4069_v32  ;;  %v4197_v17 = vpack.c.bf16 %v6223_v62, %v6223_v62  ;;  %6236 = vtanh.f32 %v3623_v40  ;;  %v3751_v27 = vadd.f32 %v8463_v63, %v3491_v35  ;;  %v3300_v41 = vld [vmem:[#allocation2 + $0x198] sm:$0xff]  ;;  %v8711_v38 = vpop.f32.mrf.mxu3  ;;  %v586_v40 = vld [vmem:[#allocation2 + $0x1a8] sm:$0xff] }
 0x2a8   : > { %v6227_v5 = vpop.eup %6226  ;;  %4390 = vst.msk [vmem:[%s6736_s10 + $0x1c0] sm:$0xf] %vm4277_vm4, %v4133_v3  ;;  %v4261_v29 = vpack.c.bf16 %v6225_v50, %v6225_v50  ;;  %6238 = vtanh.f32 %v3687_v23  ;;  %v3560_v7 = vadd.f32 %v8463_v63, %v3300_v41  ;;  %v3364_v10 = vld [vmem:[#allocation2 + $0x398] sm:$0xff]  ;;  %v2913_v3 = vadd.f32 %v8653_v19, %v713_v24  ;;  %v650_v23 = vld [vmem:[#allocation2 + $0x3a8] sm:$0xff] }
 0x2a9   : > { %v6229_v22 = vpop.eup %6228  ;;  %4454 = vst.msk [vmem:[%s6736_s10 + $0x2c0] sm:$0xf] %vm4277_vm4, %v4197_v17  ;;  %v4070_v20 = vpack.c.bf16 %v6227_v5, %v6227_v5  ;;  %6240 = vtanh.f32 %v3751_v27  ;;  %v3624_v49 = vadd.f32 %v8463_v63, %v3364_v10  ;;  %v3428_v8 = vld [vmem:[#allocation2 + $0x598] sm:$0xff]  ;;  %v2550_v56 = vpop.f32.mrf.mxu2  ;;  %v2977_v17 = vadd.f32 %v8655_v6, %v777_v57  ;;  %v714_v27 = vld [vmem:[#allocation2 + $0x5a8] sm:$0xff]  ;;  %v587_v10 = vld [vmem:[#allocation2 + $0x1b0] sm:$0xff] }
 0x2aa   : > { %v6231_v42 = vpop.eup %6230  ;;  %4518 = vst.msk [vmem:[%s6736_s10 + $0x3c0] sm:$0xf] %vm4277_vm4, %v4261_v29  ;;  %v4134_v11 = vpack.c.bf16 %v6229_v22, %v6229_v22  ;;  %6242 = vtanh.f32 %v3560_v7  ;;  %v3688_v18 = vadd.f32 %v8463_v63, %v3428_v8  ;;  %v3492_v46 = vld [vmem:[#allocation2 + $0x798] sm:$0xff]  ;;  %v2233_v35 = vpop.f32.mrf.mxu0  ;;  %v2786_v5 = vadd.f32 %v8660_v39, %v586_v40  ;;  %v778_v29 = vld [vmem:[#allocation2 + $0x7a8] sm:$0xff]  ;;  %v651_v22 = vld [vmem:[#allocation2 + $0x3b0] sm:$0xff] }
 0x2ab   : > { %v6233_v45 = vpop.eup %6232  ;;  %4327 = vst.msk [vmem:[%s6736_s10 + $0xc4] sm:$0xf] %vm4277_vm4, %v4070_v20  ;;  %v4198_v21 = vpack.c.bf16 %v6231_v42, %v6231_v42  ;;  %6244 = vtanh.f32 %v3624_v49  ;;  %v3752_v16 = vadd.f32 %v8463_v63, %v3492_v46  ;;  %v3301_v4 = vld [vmem:[#allocation2 + $0x1a0] sm:$0xff]  ;;  %v2393_v41 = vpop.f32.mrf.mxu1  ;;  %v2850_v7 = vadd.f32 %v8662_v13, %v650_v23  ;;  %v715_v20 = vld [vmem:[#allocation2 + $0x5b0] sm:$0xff]  ;;  %v716_v46 = vld [vmem:[#allocation2 + $0x5b8] sm:$0xff] }
 0x2ac   : > { %v6235_v31 = vpop.eup %6234  ;;  %4391 = vst.msk [vmem:[%s6736_s10 + $0x1c4] sm:$0xf] %vm4277_vm4, %v4134_v11  ;;  %v4262_v61 = vpack.c.bf16 %v6233_v45, %v6233_v45  ;;  %6246 = vtanh.f32 %v3688_v18  ;;  %v3561_v26 = vadd.f32 %v8463_v63, %v3301_v4  ;;  %v3365_v60 = vld [vmem:[#allocation2 + $0x3a0] sm:$0xff]  ;;  %v2914_v19 = vadd.f32 %v8679_v43, %v714_v27  ;;  %v779_v49 = vld [vmem:[#allocation2 + $0x7b0] sm:$0xff]  ;;  %v588_v11 = vld [vmem:[#allocation2 + $0x1b8] sm:$0xff] }
 0x2ad   : > { %v6237_v53 = vpop.eup %6236  ;;  %4455 = vst.msk [vmem:[%s6736_s10 + $0x2c4] sm:$0xf] %vm4277_vm4, %v4198_v21  ;;  %v4071_v1 = vpack.c.bf16 %v6235_v31, %v6235_v31  ;;  %6248 = vtanh.f32 %v3752_v16  ;;  %v3625_v2 = vadd.f32 %v8463_v63, %v3365_v60  ;;  %v2978_v6 = vadd.f32 %v8681_v37, %v778_v29  ;;  %v652_v18 = vld [vmem:[#allocation2 + $0x3b8] sm:$0xff]  ;;  %v589_v4 = vld [vmem:[#allocation2 + $0x1c0] sm:$0xff] }
 0x2ae   : > { %v6239_v47 = vpop.eup %6238  ;;  %4519 = vst.msk [vmem:[%s6736_s10 + $0x3c4] sm:$0xf] %vm4277_vm4, %v4262_v61  ;;  %v4135_v48 = vpack.c.bf16 %v6237_v53, %v6237_v53  ;;  %6250 = vtanh.f32 %v3561_v26  ;;  %v2787_v39 = vadd.f32 %v8685_v44, %v587_v10  ;;  %v2851_v13 = vadd.f32 %v8687_v15, %v651_v22  ;;  %v780_v45 = vld [vmem:[#allocation2 + $0x7b8] sm:$0xff]  ;;  %v653_v26 = vld [vmem:[#allocation2 + $0x3c0] sm:$0xff] }
 0x2af   : > { %v6241_v25 = vpop.eup %6240  ;;  %4328 = vst.msk [vmem:[%s6736_s10 + $0xc8] sm:$0xf] %vm4277_vm4, %v4071_v1  ;;  %v4199_v14 = vpack.c.bf16 %v6239_v47, %v6239_v47  ;;  %6252 = vtanh.f32 %v3625_v2  ;;  %v2710_v9 = vpop.f32.mrf.mxu3  ;;  %v2915_v43 = vadd.f32 %v8709_v33, %v715_v20  ;;  %v2979_v37 = vadd.f32 %v8711_v38, %v779_v49  ;;  %v717_v1 = vld [vmem:[#allocation2 + $0x5c0] sm:$0xff] }
 0x2b0   : > { %v6243_v58 = vpop.eup %6242  ;;  %4392 = vst.msk [vmem:[%s6736_s10 + $0x1c8] sm:$0xf] %vm4277_vm4, %v4135_v48  ;;  %v4263_v59 = vpack.c.bf16 %v6241_v25, %v6241_v25  ;;  %v2788_v44 = vadd.f32 %v8716_v28, %v588_v11  ;;  %v2852_v15 = vadd.f32 %v8718_v30, %v652_v18  ;;  %v2916_v38 = vadd.f32 %v2550_v56, %v716_v46  ;;  %v781_v48 = vld [vmem:[#allocation2 + $0x7c0] sm:$0xff] }
 0x2b1   : > { %v6245_v54 = vpop.eup %6244  ;;  %4456 = vst.msk [vmem:[%s6736_s10 + $0x2c8] sm:$0xf] %vm4277_vm4, %v4199_v14  ;;  %v4072_v51 = vpack.c.bf16 %v6243_v58, %v6243_v58  ;;  %v2553_v8 = vpop.f32.mrf.mxu2  ;;  %v2980_v53 = vadd.f32 %v2710_v9, %v780_v45  ;;  %v2789_v47 = vadd.f32 %v2233_v35, %v589_v4 }
 0x2b2   : > { %v6247_v36 = vpop.eup %6246  ;;  %4520 = vst.msk [vmem:[%s6736_s10 + $0x3c8] sm:$0xf] %vm4277_vm4, %v4263_v59  ;;  %v4136_v34 = vpack.c.bf16 %v6245_v54, %v6245_v54  ;;  %v2235_v21 = vpop.f32.mrf.mxu0  ;;  %v2853_v54 = vadd.f32 %v2393_v41, %v653_v26 }
 0x2b3   : > { %v6249_v12 = vpop.eup %6248  ;;  %4329 = vst.msk [vmem:[%s6736_s10 + $0xcc] sm:$0xf] %vm4277_vm4, %v4072_v51  ;;  %v4200_v0 = vpack.c.bf16 %v6247_v36, %v6247_v36  ;;  %v8765_v31 = vpop.f32.mrf.mxu1  ;;  %v590_v51 = vld [vmem:[#allocation2 + $0x1c8] sm:$0xff]  ;;  %v8782_v36 = vld [vmem:[%s9116_s2] ss:$0 sm:$0xff] }
 0x2b4   : > { %v6251_v52 = vpop.eup %6250  ;;  %4393 = vst.msk [vmem:[%s6736_s10 + $0x1cc] sm:$0xf] %vm4277_vm4, %v4136_v34  ;;  %v4264_v32 = vpack.c.bf16 %v6249_v12, %v6249_v12  ;;  %v2917_v12 = vadd.f32 %v2553_v8, %v717_v1 }
 0x2b5   : > { %v6253_v55 = vpop.eup %6252  ;;  %4457 = vst.msk [vmem:[%s6736_s10 + $0x2cc] sm:$0xf] %vm4277_vm4, %v4200_v0  ;;  %v4073_v62 = vpack.c.bf16 %v6251_v52, %v6251_v52  ;;  %v2790_v52 = vadd.f32 %v2235_v21, %v590_v51 }
 0x2b6   : > { %4521 = vst.msk [vmem:[%s6736_s10 + $0x3cc] sm:$0xf] %vm4277_vm4, %v4264_v32  ;;  %v4137_v50 = vpack.c.bf16 %v6253_v55, %v6253_v55 }
 0x2b7   : > { %4330 = vst.msk [vmem:[%s6736_s10 + $0xd0] sm:$0xf] %vm4277_vm4, %v4073_v62  ;;  %v2713_v42 = vpop.f32.mrf.mxu3 }
 0x2b8   : > { %4394 = vst.msk [vmem:[%s6736_s10 + $0x1d0] sm:$0xf] %vm4277_vm4, %v4137_v50  ;;  %v2981_v57 = vadd.f32 %v2713_v42, %v781_v48 }
 0x2b9   : > { %3170 = vst.msk [vmem:[#allocation2 + $0x5a0] sm:$0xff] %vm276_vm3, %v2913_v3  ;;  %v8773_v25 = vpop.f32.mrf.mxu2 }
 0x2ba   : > { %3234 = vst.msk [vmem:[#allocation2 + $0x7a0] sm:$0xff] %vm276_vm3, %v2977_v17  ;;  %v8794_v23 = vpop.f32.mrf.mxu0 }
 0x2bb   : > { %3043 = vst.msk [vmem:[#allocation2 + $0x1a8] sm:$0xff] %vm276_vm3, %v2786_v5  ;;  %v8798_v41 = vpop.f32.mrf.mxu1 }
 0x2bc   : > { %3107 = vst.msk [vmem:[#allocation2 + $0x3a8] sm:$0xff] %vm276_vm3, %v2850_v7 }
 0x2bd   : > { %3171 = vst.msk [vmem:[#allocation2 + $0x5a8] sm:$0xff] %vm276_vm3, %v2914_v19 }
 0x2be   : > { %3235 = vst.msk [vmem:[#allocation2 + $0x7a8] sm:$0xff] %vm276_vm3, %v2978_v6 }
 0x2bf   : > { %3044 = vst.msk [vmem:[#allocation2 + $0x1b0] sm:$0xff] %vm276_vm3, %v2787_v39  ;;  %v8775_v14 = vpop.f32.mrf.mxu3 }
 0x2c0   : > { %v3429_v16 = vld [vmem:[#allocation2 + $0x5a0] sm:$0xff]  ;;  %3108 = vst.msk [vmem:[#allocation2 + $0x3b0] sm:$0xff] %vm276_vm3, %v2851_v13 }
 0x2c1   : > { %v3689_v33 = vadd.f32 %v8463_v63, %v3429_v16  ;;  %v3493_v61 = vld [vmem:[#allocation2 + $0x7a0] sm:$0xff]  ;;  %3172 = vst.msk [vmem:[#allocation2 + $0x5b0] sm:$0xff] %vm276_vm3, %v2915_v43  ;;  %v8802_v19 = vpop.f32.mrf.mxu2 }
 0x2c2   : > { %v3753_v60 = vadd.f32 %v8463_v63, %v3493_v61  ;;  %v3302_v28 = vld [vmem:[#allocation2 + $0x1a8] sm:$0xff]  ;;  %3236 = vst.msk [vmem:[#allocation2 + $0x7b0] sm:$0xff] %vm276_vm3, %v2979_v37 }
 0x2c3   : > { %6254 = vtanh.f32 %v3689_v33  ;;  %v3562_v30 = vadd.f32 %v8463_v63, %v3302_v28  ;;  %v3366_v2 = vld [vmem:[#allocation2 + $0x3a8] sm:$0xff]  ;;  %3045 = vst.msk [vmem:[#allocation2 + $0x1b8] sm:$0xff] %vm276_vm3, %v2788_v44 }
 0x2c4   : > { %6256 = vtanh.f32 %v3753_v60  ;;  %v3626_v58 = vadd.f32 %v8463_v63, %v3366_v2  ;;  %v3430_v59 = vld [vmem:[#allocation2 + $0x5a8] sm:$0xff]  ;;  %3109 = vst.msk [vmem:[#allocation2 + $0x3b8] sm:$0xff] %vm276_vm3, %v2852_v15 }
 0x2c5   : > { %6258 = vtanh.f32 %v3562_v30  ;;  %v3690_v34 = vadd.f32 %v8782_v36, %v3430_v59  ;;  %v3494_v24 = vld [vmem:[#allocation2 + $0x7a8] sm:$0xff]  ;;  %3173 = vst.msk [vmem:[#allocation2 + $0x5b8] sm:$0xff] %vm276_vm3, %v2916_v38  ;;  %v2240_v59 = vpop.f32.mrf.mxu0 }
 0x2c6   : > { %6260 = vtanh.f32 %v3626_v58  ;;  %v3754_v63 = vadd.f32 %v8782_v36, %v3494_v24  ;;  %v3303_v0 = vld [vmem:[#allocation2 + $0x1b0] sm:$0xff]  ;;  %3237 = vst.msk [vmem:[#allocation2 + $0x7b8] sm:$0xff] %vm276_vm3, %v2980_v53 }
 0x2c7   : > { %6262 = vtanh.f32 %v3690_v34  ;;  %v3563_v56 = vadd.f32 %v8782_v36, %v3303_v0  ;;  %v3367_v9 = vld [vmem:[#allocation2 + $0x3b0] sm:$0xff]  ;;  %3046 = vst.msk [vmem:[#allocation2 + $0x1c0] sm:$0xff] %vm276_vm3, %v2789_v47  ;;  %v8807_v49 = vpop.f32.mrf.mxu3  ;;  %v2400_v34 = vpop.f32.mrf.mxu1 }
 0x2c8   : > { %6264 = vtanh.f32 %v3754_v63  ;;  %v3627_v32 = vadd.f32 %v8782_v36, %v3367_v9  ;;  %v3431_v40 = vld [vmem:[#allocation2 + $0x5b0] sm:$0xff]  ;;  %3110 = vst.msk [vmem:[#allocation2 + $0x3c0] sm:$0xff] %vm276_vm3, %v2853_v54 }
 0x2c9   : > { %v6255_v55 = vpop.eup %6254  ;;  %6266 = vtanh.f32 %v3563_v56  ;;  %v3691_v62 = vadd.f32 %v8782_v36, %v3431_v40  ;;  %v3495_v3 = vld [vmem:[#allocation2 + $0x7b0] sm:$0xff]  ;;  %3174 = vst.msk [vmem:[#allocation2 + $0x5c0] sm:$0xff] %vm276_vm3, %v2917_v12  ;;  %v2560_v63 = vpop.f32.mrf.mxu2 }
 0x2ca   : > { %v6257_v35 = vpop.eup %6256  ;;  %v4201_v50 = vpack.c.bf16 %v6255_v55, %v6255_v55  ;;  %6268 = vtanh.f32 %v3627_v32  ;;  %v3755_v17 = vadd.f32 %v8782_v36, %v3495_v3  ;;  %v3304_v27 = vld [vmem:[#allocation2 + $0x1b8] sm:$0xff]  ;;  %3238 = vst.msk [vmem:[#allocation2 + $0x7c0] sm:$0xff] %vm276_vm3, %v2981_v57  ;;  %v654_v55 = vld [vmem:[#allocation2 + $0x3c8] sm:$0xff] }
 0x2cb   : > { %v6259_v5 = vpop.eup %6258  ;;  %v4265_v29 = vpack.c.bf16 %v6257_v35, %v6257_v35  ;;  %6270 = vtanh.f32 %v3691_v62  ;;  %v3564_v7 = vadd.f32 %v8782_v36, %v3304_v27  ;;  %v3368_v10 = vld [vmem:[#allocation2 + $0x3b8] sm:$0xff]  ;;  %3047 = vst.msk [vmem:[#allocation2 + $0x1c8] sm:$0xff] %vm276_vm3, %v2790_v52  ;;  %v718_v35 = vld [vmem:[#allocation2 + $0x5c8] sm:$0xff] }
 0x2cc   : > { %v6261_v22 = vpop.eup %6260  ;;  %4458 = vst.msk [vmem:[%s6736_s10 + $0x2d0] sm:$0xf] %vm4277_vm4, %v4201_v50  ;;  %v4074_v6 = vpack.c.bf16 %v6259_v5, %v6259_v5  ;;  %6272 = vtanh.f32 %v3755_v17  ;;  %v3628_v20 = vadd.f32 %v8782_v36, %v3368_v10  ;;  %v3432_v39 = vld [vmem:[#allocation2 + $0x5b8] sm:$0xff]  ;;  %v782_v27 = vld [vmem:[#allocation2 + $0x7c8] sm:$0xff]  ;;  %v591_v10 = vld [vmem:[#allocation2 + $0x1d0] sm:$0xff] }
 0x2cd   : > { %v6263_v8 = vpop.eup %6262  ;;  %4522 = vst.msk [vmem:[%s6736_s10 + $0x3d0] sm:$0xf] %vm4277_vm4, %v4265_v29  ;;  %v4138_v42 = vpack.c.bf16 %v6261_v22, %v6261_v22  ;;  %6274 = vtanh.f32 %v3564_v7  ;;  %v3692_v13 = vadd.f32 %v8782_v36, %v3432_v39  ;;  %v3496_v11 = vld [vmem:[#allocation2 + $0x7b8] sm:$0xff]  ;;  %v2854_v7 = vadd.f32 %v8765_v31, %v654_v55 }
 0x2ce   : > { %v6265_v43 = vpop.eup %6264  ;;  %4331 = vst.msk [vmem:[%s6736_s10 + $0xd4] sm:$0xf] %vm4277_vm4, %v4074_v6  ;;  %v4202_v18 = vpack.c.bf16 %v6263_v8, %v6263_v8  ;;  %6276 = vtanh.f32 %v3628_v20  ;;  %v3756_v37 = vadd.f32 %v8782_v36, %v3496_v11  ;;  %v3305_v46 = vld [vmem:[#allocation2 + $0x1c0] sm:$0xff]  ;;  %v2918_v6 = vadd.f32 %v8773_v25, %v718_v35  ;;  %v655_v20 = vld [vmem:[#allocation2 + $0x3d0] sm:$0xff] }
 0x2cf   : > { %v6267_v44 = vpop.eup %6266  ;;  %4395 = vst.msk [vmem:[%s6736_s10 + $0x1d4] sm:$0xf] %vm4277_vm4, %v4138_v42  ;;  %v4266_v45 = vpack.c.bf16 %v6265_v43, %v6265_v43  ;;  %6278 = vtanh.f32 %v3692_v13  ;;  %v3565_v21 = vadd.f32 %v8782_v36, %v3305_v46  ;;  %v3369_v16 = vld [vmem:[#allocation2 + $0x3c0] sm:$0xff]  ;;  %v2720_v56 = vpop.f32.mrf.mxu3  ;;  %v2982_v39 = vadd.f32 %v8775_v14, %v782_v27  ;;  %v719_v8 = vld [vmem:[#allocation2 + $0x5d0] sm:$0xff]  ;;  %v656_v46 = vld [vmem:[#allocation2 + $0x3d8] sm:$0xff] }
 0x2d0   : > { %v6269_v15 = vpop.eup %6268  ;;  %4459 = vst.msk [vmem:[%s6736_s10 + $0x2d4] sm:$0xf] %vm4277_vm4, %v4202_v18  ;;  %v4075_v4 = vpack.c.bf16 %v6267_v44, %v6267_v44  ;;  %6280 = vtanh.f32 %v3756_v37  ;;  %v3629_v33 = vadd.f32 %v8782_v36, %v3369_v16  ;;  %v3433_v61 = vld [vmem:[#allocation2 + $0x5c0] sm:$0xff]  ;;  %v2243_v42 = vpop.f32.mrf.mxu0  ;;  %v2791_v13 = vadd.f32 %v8794_v23, %v591_v10  ;;  %v783_v11 = vld [vmem:[#allocation2 + $0x7d0] sm:$0xff]  ;;  %v592_v18 = vld [vmem:[#allocation2 + $0x1d8] sm:$0xff] }
 0x2d1   : > { %v6271_v38 = vpop.eup %6270  ;;  %4523 = vst.msk [vmem:[%s6736_s10 + $0x3d4] sm:$0xf] %vm4277_vm4, %v4266_v45  ;;  %v4139_v26 = vpack.c.bf16 %v6269_v15, %v6269_v15  ;;  %6282 = vtanh.f32 %v3565_v21  ;;  %v3693_v60 = vadd.f32 %v8782_v36, %v3433_v61  ;;  %v3497_v28 = vld [vmem:[#allocation2 + $0x7c0] sm:$0xff]  ;;  %v2403_v43 = vpop.f32.mrf.mxu1  ;;  %v2855_v31 = vadd.f32 %v8798_v41, %v655_v20  ;;  %v720_v45 = vld [vmem:[#allocation2 + $0x5d8] sm:$0xff] }
 0x2d2   : > { %v6273_v53 = vpop.eup %6272  ;;  %4332 = vst.msk [vmem:[%s6736_s10 + $0xd8] sm:$0xf] %vm4277_vm4, %v4075_v4  ;;  %v4203_v1 = vpack.c.bf16 %v6271_v38, %v6271_v38  ;;  %6284 = vtanh.f32 %v3629_v33  ;;  %v3757_v30 = vadd.f32 %v8782_v36, %v3497_v28  ;;  %v3306_v2 = vld [vmem:[#allocation2 + $0x1c8] sm:$0xff]  ;;  %v2563_v37 = vpop.f32.mrf.mxu2  ;;  %v2919_v25 = vadd.f32 %v8802_v19, %v719_v8  ;;  %v784_v21 = vld [vmem:[#allocation2 + $0x7d8] sm:$0xff]  ;;  %v593_v16 = vld [vmem:[#allocation2 + $0x1e0] sm:$0xff] }
 0x2d3   : > { %v6275_v47 = vpop.eup %6274  ;;  %4396 = vst.msk [vmem:[%s6736_s10 + $0x1d8] sm:$0xf] %vm4277_vm4, %v4139_v26  ;;  %v4267_v48 = vpack.c.bf16 %v6273_v53, %v6273_v53  ;;  %6286 = vtanh.f32 %v3693_v60  ;;  %v3566_v58 = vadd.f32 %v8782_v36, %v3306_v2  ;;  %v2983_v44 = vadd.f32 %v8807_v49, %v783_v11  ;;  %v657_v4 = vld [vmem:[#allocation2 + $0x3e0] sm:$0xff]  ;;  %v594_v53 = vld [vmem:[#allocation2 + $0x1e8] sm:$0xff] }
 0x2d4   : > { %v6277_v54 = vpop.eup %6276  ;;  %4460 = vst.msk [vmem:[%s6736_s10 + $0x2d8] sm:$0xf] %vm4277_vm4, %v4203_v1  ;;  %v4076_v51 = vpack.c.bf16 %v6275_v47, %v6275_v47  ;;  %6288 = vtanh.f32 %v3757_v30  ;;  %v2792_v23 = vadd.f32 %v2240_v59, %v592_v18  ;;  %v2856_v41 = vadd.f32 %v2400_v34, %v656_v46  ;;  %v721_v33 = vld [vmem:[#allocation2 + $0x5e0] sm:$0xff]  ;;  %v722_v34 = vld [vmem:[#allocation2 + $0x5e8] sm:$0xff] }
 0x2d5   : > { %v6279_v24 = vpop.eup %6278  ;;  %4524 = vst.msk [vmem:[%s6736_s10 + $0x3d8] sm:$0xf] %vm4277_vm4, %v4267_v48  ;;  %v4140_v12 = vpack.c.bf16 %v6277_v54, %v6277_v54  ;;  %6290 = vtanh.f32 %v3566_v58  ;;  %v2920_v15 = vadd.f32 %v2560_v63, %v720_v45  ;;  %v2984_v19 = vadd.f32 %v2720_v56, %v784_v21  ;;  %v785_v38 = vld [vmem:[#allocation2 + $0x7e0] sm:$0xff]  ;;  %v658_v48 = vld [vmem:[#allocation2 + $0x3e8] sm:$0xff] }
 0x2d6   : > { %v6281_v0 = vpop.eup %6280  ;;  %4333 = vst.msk [vmem:[%s6736_s10 + $0xdc] sm:$0xf] %vm4277_vm4, %v4076_v51  ;;  %v4204_v57 = vpack.c.bf16 %v6279_v24, %v6279_v24  ;;  %v2793_v49 = vadd.f32 %v2243_v42, %v593_v16  ;;  %v2857_v28 = vadd.f32 %v2403_v43, %v657_v4  ;;  %v2921_v47 = vadd.f32 %v2563_v37, %v721_v33 }
 0x2d7   : > { %v6283_v9 = vpop.eup %6282  ;;  %4397 = vst.msk [vmem:[%s6736_s10 + $0x1dc] sm:$0xf] %vm4277_vm4, %v4140_v12  ;;  %v4268_v52 = vpack.c.bf16 %v6281_v0, %v6281_v0  ;;  %v2723_v14 = vpop.f32.mrf.mxu3 }
 0x2d8   : > { %v6285_v32 = vpop.eup %6284  ;;  %4461 = vst.msk [vmem:[%s6736_s10 + $0x2dc] sm:$0xf] %vm4277_vm4, %v4204_v57  ;;  %v4077_v40 = vpack.c.bf16 %v6283_v9, %v6283_v9  ;;  %v2245_v1 = vpop.f32.mrf.mxu0  ;;  %v2985_v51 = vadd.f32 %v2723_v14, %v785_v38  ;;  %v786_v57 = vld [vmem:[#allocation2 + $0x7e8] sm:$0xff] }
 0x2d9   : > { %v6287_v62 = vpop.eup %6286  ;;  %4525 = vst.msk [vmem:[%s6736_s10 + $0x3dc] sm:$0xf] %vm4277_vm4, %v4268_v52  ;;  %v4141_v3 = vpack.c.bf16 %v6285_v32, %v6285_v32  ;;  %v2405_v58 = vpop.f32.mrf.mxu1  ;;  %v2794_v0 = vadd.f32 %v2245_v1, %v594_v53 }
 0x2da   : > { %v6289_v50 = vpop.eup %6288  ;;  %4334 = vst.msk [vmem:[%s6736_s10 + $0xe0] sm:$0xf] %vm4277_vm4, %v4077_v40  ;;  %v4205_v17 = vpack.c.bf16 %v6287_v62, %v6287_v62  ;;  %v2565_v24 = vpop.f32.mrf.mxu2  ;;  %v2858_v32 = vadd.f32 %v2405_v58, %v658_v48 }
 0x2db   : > { %v6291_v5 = vpop.eup %6290  ;;  %4398 = vst.msk [vmem:[%s6736_s10 + $0x1e0] sm:$0xf] %vm4277_vm4, %v4141_v3  ;;  %v4269_v29 = vpack.c.bf16 %v6289_v50, %v6289_v50  ;;  %v2922_v62 = vadd.f32 %v2565_v24, %v722_v34 }
 0x2dc   : > { %4462 = vst.msk [vmem:[%s6736_s10 + $0x2e0] sm:$0xf] %vm4277_vm4, %v4205_v17  ;;  %v4078_v22 = vpack.c.bf16 %v6291_v5, %v6291_v5 }
 0x2dd   : > { %4526 = vst.msk [vmem:[%s6736_s10 + $0x3e0] sm:$0xf] %vm4277_vm4, %v4269_v29 }
 0x2de   : > { %4335 = vst.msk [vmem:[%s6736_s10 + $0xe4] sm:$0xf] %vm4277_vm4, %v4078_v22 }
 0x2df   : > { %3111 = vst.msk [vmem:[#allocation2 + $0x3c8] sm:$0xff] %vm276_vm3, %v2854_v7  ;;  %v2725_v56 = vpop.f32.mrf.mxu3 }
 0x2e0   : > { %3175 = vst.msk [vmem:[#allocation2 + $0x5c8] sm:$0xff] %vm276_vm3, %v2918_v6  ;;  %v2986_v50 = vadd.f32 %v2725_v56, %v786_v57 }
 0x2e1   : > { %3239 = vst.msk [vmem:[#allocation2 + $0x7c8] sm:$0xff] %vm276_vm3, %v2982_v39 }
 0x2e2   : > { %3048 = vst.msk [vmem:[#allocation2 + $0x1d0] sm:$0xff] %vm276_vm3, %v2791_v13  ;;  %v2568_v24 = vpop.f32.mrf.mxu2 }
 0x2e3   : > { %3112 = vst.msk [vmem:[#allocation2 + $0x3d0] sm:$0xff] %vm276_vm3, %v2855_v31 }
 0x2e4   : > { %3176 = vst.msk [vmem:[#allocation2 + $0x5d0] sm:$0xff] %vm276_vm3, %v2919_v25 }
 0x2e5   : > { %3240 = vst.msk [vmem:[#allocation2 + $0x7d0] sm:$0xff] %vm276_vm3, %v2983_v44 }
 0x2e6   : > { %v3370_v61 = vld [vmem:[#allocation2 + $0x3c8] sm:$0xff]  ;;  %3049 = vst.msk [vmem:[#allocation2 + $0x1d8] sm:$0xff] %vm276_vm3, %v2792_v23 }
 0x2e7   : > { %v3630_v26 = vadd.f32 %v8782_v36, %v3370_v61  ;;  %v3434_v60 = vld [vmem:[#allocation2 + $0x5c8] sm:$0xff]  ;;  %3113 = vst.msk [vmem:[#allocation2 + $0x3d8] sm:$0xff] %vm276_vm3, %v2856_v41 }
 0x2e8   : > { %v3694_v30 = vadd.f32 %v8782_v36, %v3434_v60  ;;  %v3498_v2 = vld [vmem:[#allocation2 + $0x7c8] sm:$0xff]  ;;  %3177 = vst.msk [vmem:[#allocation2 + $0x5d8] sm:$0xff] %vm276_vm3, %v2920_v15 }
 0x2e9   : > { %6292 = vtanh.f32 %v3630_v26  ;;  %v3758_v59 = vadd.f32 %v8782_v36, %v3498_v2  ;;  %v3307_v54 = vld [vmem:[#allocation2 + $0x1d0] sm:$0xff]  ;;  %3241 = vst.msk [vmem:[#allocation2 + $0x7d8] sm:$0xff] %vm276_vm3, %v2984_v19 }
 0x2ea   : > { %6294 = vtanh.f32 %v3694_v30  ;;  %v3567_v12 = vadd.f32 %v8782_v36, %v3307_v54  ;;  %v3371_v63 = vld [vmem:[#allocation2 + $0x3d0] sm:$0xff]  ;;  %3050 = vst.msk [vmem:[#allocation2 + $0x1e0] sm:$0xff] %vm276_vm3, %v2793_v49  ;;  %v2408_v54 = vpop.f32.mrf.mxu1 }
 0x2eb   : > { %6296 = vtanh.f32 %v3758_v59  ;;  %v3631_v9 = vadd.f32 %v8782_v36, %v3371_v63  ;;  %v3435_v52 = vld [vmem:[#allocation2 + $0x5d0] sm:$0xff]  ;;  %3114 = vst.msk [vmem:[#allocation2 + $0x3e0] sm:$0xff] %vm276_vm3, %v2857_v28 }
 0x2ec   : > { %6298 = vtanh.f32 %v3567_v12  ;;  %v3695_v40 = vadd.f32 %v8782_v36, %v3435_v52  ;;  %v3499_v55 = vld [vmem:[#allocation2 + $0x7d0] sm:$0xff]  ;;  %3178 = vst.msk [vmem:[#allocation2 + $0x5e0] sm:$0xff] %vm276_vm3, %v2921_v47  ;;  %v2248_v47 = vpop.f32.mrf.mxu0 }
 0x2ed   : > { %6300 = vtanh.f32 %v3631_v9  ;;  %v3759_v3 = vadd.f32 %v8782_v36, %v3499_v55  ;;  %v3308_v35 = vld [vmem:[#allocation2 + $0x1d8] sm:$0xff]  ;;  %3242 = vst.msk [vmem:[#allocation2 + $0x7e0] sm:$0xff] %vm276_vm3, %v2985_v51  ;;  %v595_v55 = vld [vmem:[#allocation2 + $0x1f0] sm:$0xff] }
 0x2ee   : > { %6302 = vtanh.f32 %v3695_v40  ;;  %v3568_v17 = vadd.f32 %v8782_v36, %v3308_v35  ;;  %v3372_v27 = vld [vmem:[#allocation2 + $0x3d8] sm:$0xff]  ;;  %3051 = vst.msk [vmem:[#allocation2 + $0x1e8] sm:$0xff] %vm276_vm3, %v2794_v0  ;;  %v2728_v0 = vpop.f32.mrf.mxu3  ;;  %v659_v35 = vld [vmem:[#allocation2 + $0x3f0] sm:$0xff] }
 0x2ef   : > { %v6293_v5 = vpop.eup %6292  ;;  %6304 = vtanh.f32 %v3759_v3  ;;  %v3632_v29 = vadd.f32 %v8782_v36, %v3372_v27  ;;  %v3436_v7 = vld [vmem:[#allocation2 + $0x5d8] sm:$0xff]  ;;  %3115 = vst.msk [vmem:[#allocation2 + $0x3e8] sm:$0xff] %vm276_vm3, %v2858_v32  ;;  %v723_v27 = vld [vmem:[#allocation2 + $0x5f0] sm:$0xff] }
 0x2f0   : > { %v6295_v10 = vpop.eup %6294  ;;  %v4142_v22 = vpack.c.bf16 %v6293_v5, %v6293_v5  ;;  %6306 = vtanh.f32 %v3568_v17  ;;  %v3696_v6 = vadd.f32 %v8782_v36, %v3436_v7  ;;  %v3500_v20 = vld [vmem:[#allocation2 + $0x7d8] sm:$0xff]  ;;  %3179 = vst.msk [vmem:[#allocation2 + $0x5e8] sm:$0xff] %vm276_vm3, %v2922_v62  ;;  %v2795_v7 = vadd.f32 %v2248_v47, %v595_v55 }
 0x2f1   : > { %v6297_v39 = vpop.eup %6296  ;;  %v4206_v8 = vpack.c.bf16 %v6295_v10, %v6295_v10  ;;  %6308 = vtanh.f32 %v3632_v29  ;;  %v3760_v42 = vadd.f32 %v8782_v36, %v3500_v20  ;;  %v3309_v13 = vld [vmem:[#allocation2 + $0x1e0] sm:$0xff]  ;;  %3243 = vst.msk [vmem:[#allocation2 + $0x7e8] sm:$0xff] %vm276_vm3, %v2986_v50  ;;  %v787_v10 = vld [vmem:[#allocation2 + $0x7f0] sm:$0xff]  ;;  %v596_v20 = vld [vmem:[#allocation2 + $0x1f8] sm:$0xff] }
 0x2f2   : > { %v6299_v11 = vpop.eup %6298  ;;  %4399 = vst.msk [vmem:[%s6736_s10 + $0x1e4] sm:$0xf] %vm4277_vm4, %v4142_v22  ;;  %v4270_v43 = vpack.c.bf16 %v6297_v39, %v6297_v39  ;;  %6310 = vtanh.f32 %v3696_v6  ;;  %v3569_v31 = vadd.f32 %v8782_v36, %v3309_v13  ;;  %v3373_v18 = vld [vmem:[#allocation2 + $0x3e0] sm:$0xff]  ;;  %v2859_v6 = vadd.f32 %v2408_v54, %v659_v35  ;;  %v2410_v13 = vpop.f32.mrf.mxu1 }
 0x2f3   : > { %v6301_v37 = vpop.eup %6300  ;;  %4463 = vst.msk [vmem:[%s6736_s10 + $0x2e4] sm:$0xf] %vm4277_vm4, %v4206_v8  ;;  %v4079_v25 = vpack.c.bf16 %v6299_v11, %v6299_v11  ;;  %6312 = vtanh.f32 %v3760_v42  ;;  %v3633_v46 = vadd.f32 %v8782_v36, %v3373_v18  ;;  %v3437_v14 = vld [vmem:[#allocation2 + $0x5e0] sm:$0xff]  ;;  %v2923_v8 = vadd.f32 %v2568_v24, %v723_v27  ;;  %v660_v42 = vld [vmem:[#allocation2 + $0x3f8] sm:$0xff] }
 0x2f4   : > { %v6303_v44 = vpop.eup %6302  ;;  %4527 = vst.msk [vmem:[%s6736_s10 + $0x3e4] sm:$0xf] %vm4277_vm4, %v4270_v43  ;;  %v4143_v45 = vpack.c.bf16 %v6301_v37, %v6301_v37  ;;  %6314 = vtanh.f32 %v3569_v31  ;;  %v3697_v23 = vadd.f32 %v8782_v36, %v3437_v14  ;;  %v3501_v21 = vld [vmem:[#allocation2 + $0x7e0] sm:$0xff]  ;;  %v2250_v39 = vpop.f32.mrf.mxu0  ;;  %v2987_v11 = vadd.f32 %v2728_v0, %v787_v10  ;;  %v724_v43 = vld [vmem:[#allocation2 + $0x5f8] sm:$0xff] }
 0x2f5   : > { %v6305_v41 = vpop.eup %6304  ;;  %4336 = vst.msk [vmem:[%s6736_s10 + $0xe8] sm:$0xf] %vm4277_vm4, %v4079_v25  ;;  %v4207_v16 = vpack.c.bf16 %v6303_v44, %v6303_v44  ;;  %6316 = vtanh.f32 %v3633_v46  ;;  %v3761_v15 = vadd.f32 %v8782_v36, %v3501_v21  ;;  %v3310_v4 = vld [vmem:[#allocation2 + $0x1e8] sm:$0xff]  ;;  %v2570_v31 = vpop.f32.mrf.mxu2  ;;  %v2796_v18 = vadd.f32 %v2250_v39, %v596_v20  ;;  %v788_v37 = vld [vmem:[#allocation2 + $0x7f8] sm:$0xff] }
 0x2f6   : > { %v6307_v19 = vpop.eup %6306  ;;  %4400 = vst.msk [vmem:[%s6736_s10 + $0x1e8] sm:$0xf] %vm4277_vm4, %v4143_v45  ;;  %v4271_v33 = vpack.c.bf16 %v6305_v41, %v6305_v41  ;;  %6318 = vtanh.f32 %v3697_v23  ;;  %v3570_v61 = vadd.f32 %v8782_v36, %v3310_v4  ;;  %v3374_v49 = vld [vmem:[#allocation2 + $0x3e8] sm:$0xff]  ;;  %v2730_v25 = vpop.f32.mrf.mxu3  ;;  %v2860_v46 = vadd.f32 %v2410_v13, %v660_v42 }
 0x2f7   : > { %v6309_v38 = vpop.eup %6308  ;;  %4464 = vst.msk [vmem:[%s6736_s10 + $0x2e8] sm:$0xf] %vm4277_vm4, %v4207_v16  ;;  %v4080_v26 = vpack.c.bf16 %v6307_v19, %v6307_v19  ;;  %6320 = vtanh.f32 %v3761_v15  ;;  %v3634_v60 = vadd.f32 %v8782_v36, %v3374_v49  ;;  %v3438_v28 = vld [vmem:[#allocation2 + $0x5e8] sm:$0xff]  ;;  %v2924_v14 = vadd.f32 %v2570_v31, %v724_v43 }
 0x2f8   : > { %v6311_v53 = vpop.eup %6310  ;;  %4528 = vst.msk [vmem:[%s6736_s10 + $0x3e8] sm:$0xf] %vm4277_vm4, %v4271_v33  ;;  %v4144_v1 = vpack.c.bf16 %v6309_v38, %v6309_v38  ;;  %6322 = vtanh.f32 %v3570_v61  ;;  %v3698_v30 = vadd.f32 %v8782_v36, %v3438_v28  ;;  %v3502_v2 = vld [vmem:[#allocation2 + $0x7e8] sm:$0xff]  ;;  %v2988_v44 = vadd.f32 %v2730_v25, %v788_v37 }
 0x2f9   : > { %v6313_v48 = vpop.eup %6312  ;;  %4337 = vst.msk [vmem:[%s6736_s10 + $0xec] sm:$0xf] %vm4277_vm4, %v4080_v26  ;;  %v4208_v58 = vpack.c.bf16 %v6311_v53, %v6311_v53  ;;  %6324 = vtanh.f32 %v3634_v60  ;;  %v3762_v59 = vadd.f32 %v8782_v36, %v3502_v2 }
 0x2fa   : > { %v6315_v51 = vpop.eup %6314  ;;  %4401 = vst.msk [vmem:[%s6736_s10 + $0x1ec] sm:$0xf] %vm4277_vm4, %v4144_v1  ;;  %v4272_v34 = vpack.c.bf16 %v6313_v48, %v6313_v48  ;;  %6326 = vtanh.f32 %v3698_v30 }
 0x2fb   : > { %v6317_v12 = vpop.eup %6316  ;;  %4465 = vst.msk [vmem:[%s6736_s10 + $0x2ec] sm:$0xf] %vm4277_vm4, %v4208_v58  ;;  %v4081_v63 = vpack.c.bf16 %v6315_v51, %v6315_v51  ;;  %6328 = vtanh.f32 %v3762_v59 }
 0x2fc   : > { %v6319_v57 = vpop.eup %6318  ;;  %4529 = vst.msk [vmem:[%s6736_s10 + $0x3ec] sm:$0xf] %vm4277_vm4, %v4272_v34  ;;  %v4145_v56 = vpack.c.bf16 %v6317_v12, %v6317_v12 }
 0x2fd   : > { %v6321_v9 = vpop.eup %6320  ;;  %4338 = vst.msk [vmem:[%s6736_s10 + $0xf0] sm:$0xf] %vm4277_vm4, %v4081_v63  ;;  %v4209_v52 = vpack.c.bf16 %v6319_v57, %v6319_v57 }
 0x2fe   : > { %v6323_v32 = vpop.eup %6322  ;;  %4402 = vst.msk [vmem:[%s6736_s10 + $0x1f0] sm:$0xf] %vm4277_vm4, %v4145_v56  ;;  %v4273_v40 = vpack.c.bf16 %v6321_v9, %v6321_v9 }
 0x2ff   : > { %v6325_v62 = vpop.eup %6324  ;;  %4466 = vst.msk [vmem:[%s6736_s10 + $0x2f0] sm:$0xf] %vm4277_vm4, %v4209_v52  ;;  %v4082_v3 = vpack.c.bf16 %v6323_v32, %v6323_v32 }
 0x300   : > { %v6327_v50 = vpop.eup %6326  ;;  %4530 = vst.msk [vmem:[%s6736_s10 + $0x3f0] sm:$0xf] %vm4277_vm4, %v4273_v40  ;;  %v4146_v17 = vpack.c.bf16 %v6325_v62, %v6325_v62 }
 0x301   : > { %v6329_v5 = vpop.eup %6328  ;;  %4339 = vst.msk [vmem:[%s6736_s10 + $0xf4] sm:$0xf] %vm4277_vm4, %v4082_v3  ;;  %v4210_v29 = vpack.c.bf16 %v6327_v50, %v6327_v50 }
 0x302   : > { %4403 = vst.msk [vmem:[%s6736_s10 + $0x1f4] sm:$0xf] %vm4277_vm4, %v4146_v17  ;;  %v4274_v22 = vpack.c.bf16 %v6329_v5, %v6329_v5 }
 0x303   : > { %4467 = vst.msk [vmem:[%s6736_s10 + $0x2f4] sm:$0xf] %vm4277_vm4, %v4210_v29 }
 0x304   : > { %4531 = vst.msk [vmem:[%s6736_s10 + $0x3f4] sm:$0xf] %vm4277_vm4, %v4274_v22 }
 0x305   : > { %3052 = vst.msk [vmem:[#allocation2 + $0x1f0] sm:$0xff] %vm276_vm3, %v2795_v7 }
 0x306   : > { %3116 = vst.msk [vmem:[#allocation2 + $0x3f0] sm:$0xff] %vm276_vm3, %v2859_v6 }
 0x307   : > { %3180 = vst.msk [vmem:[#allocation2 + $0x5f0] sm:$0xff] %vm276_vm3, %v2923_v8 }
 0x308   : > { %3244 = vst.msk [vmem:[#allocation2 + $0x7f0] sm:$0xff] %vm276_vm3, %v2987_v11 }
 0x309   : > { %3053 = vst.msk [vmem:[#allocation2 + $0x1f8] sm:$0xff] %vm276_vm3, %v2796_v18 }
 0x30a   : > { %3117 = vst.msk [vmem:[#allocation2 + $0x3f8] sm:$0xff] %vm276_vm3, %v2860_v46 }
 0x30b   : > { %3181 = vst.msk [vmem:[#allocation2 + $0x5f8] sm:$0xff] %vm276_vm3, %v2924_v14 }
 0x30c   : > { %v3311_v45 = vld [vmem:[#allocation2 + $0x1f0] sm:$0xff]  ;;  %3245 = vst.msk [vmem:[#allocation2 + $0x7f8] sm:$0xff] %vm276_vm3, %v2988_v44 }
 0x30d   : > { %v3571_v23 = vadd.f32 %v8782_v36, %v3311_v45  ;;  %v3375_v21 = vld [vmem:[#allocation2 + $0x3f0] sm:$0xff] }
 0x30e   : > { %v3635_v41 = vadd.f32 %v8782_v36, %v3375_v21  ;;  %v3439_v16 = vld [vmem:[#allocation2 + $0x5f0] sm:$0xff] }
 0x30f   : > { %6330 = vtanh.f32 %v3571_v23  ;;  %v3699_v15 = vadd.f32 %v8782_v36, %v3439_v16  ;;  %v3503_v4 = vld [vmem:[#allocation2 + $0x7f0] sm:$0xff] }
 0x310   : > { %6332 = vtanh.f32 %v3635_v41  ;;  %v3763_v19 = vadd.f32 %v8782_v36, %v3503_v4  ;;  %v3312_v33 = vld [vmem:[#allocation2 + $0x1f8] sm:$0xff] }
 0x311   : > { %6334 = vtanh.f32 %v3699_v15  ;;  %v3572_v61 = vadd.f32 %v8782_v36, %v3312_v33  ;;  %v3376_v49 = vld [vmem:[#allocation2 + $0x3f8] sm:$0xff] }
 0x312   : > { %6336 = vtanh.f32 %v3763_v19  ;;  %v3636_v38 = vadd.f32 %v8782_v36, %v3376_v49  ;;  %v3440_v26 = vld [vmem:[#allocation2 + $0x5f8] sm:$0xff] }
 0x313   : > { %6338 = vtanh.f32 %v3572_v61  ;;  %v3700_v60 = vadd.f32 %v8782_v36, %v3440_v26  ;;  %v3504_v28 = vld [vmem:[#allocation2 + $0x7f8] sm:$0xff] }
 0x314   : > { %6340 = vtanh.f32 %v3636_v38  ;;  %v3764_v53 = vadd.f32 %v8782_v36, %v3504_v28 }
 0x315   : > { %v6331_v1 = vpop.eup %6330  ;;  %6342 = vtanh.f32 %v3700_v60 }
 0x316   : > { %v6333_v30 = vpop.eup %6332  ;;  %v4083_v2 = vpack.c.bf16 %v6331_v1, %v6331_v1  ;;  %6344 = vtanh.f32 %v3764_v53 }
 0x317   : > { %v6335_v47 = vpop.eup %6334  ;;  %v4147_v48 = vpack.c.bf16 %v6333_v30, %v6333_v30 }
 0x318   : > { %v6337_v58 = vpop.eup %6336  ;;  %4340 = vst.msk [vmem:[%s6736_s10 + $0xf8] sm:$0xf] %vm4277_vm4, %v4083_v2  ;;  %v4211_v59 = vpack.c.bf16 %v6335_v47, %v6335_v47 }
 0x319   : > { %v6339_v54 = vpop.eup %6338  ;;  %4404 = vst.msk [vmem:[%s6736_s10 + $0x1f8] sm:$0xf] %vm4277_vm4, %v4147_v48  ;;  %v4275_v36 = vpack.c.bf16 %v6337_v58, %v6337_v58 }
 0x31a   : > { %v6341_v51 = vpop.eup %6340  ;;  %4468 = vst.msk [vmem:[%s6736_s10 + $0x2f8] sm:$0xf] %vm4277_vm4, %v4211_v59  ;;  %v4084_v34 = vpack.c.bf16 %v6339_v54, %v6339_v54 }
 0x31b   : > { %v6343_v24 = vpop.eup %6342  ;;  %4532 = vst.msk [vmem:[%s6736_s10 + $0x3f8] sm:$0xf] %vm4277_vm4, %v4275_v36  ;;  %v4148_v12 = vpack.c.bf16 %v6341_v51, %v6341_v51  ;;  %4540 = sbr.rel (!%p6509_p3) target bundleno = 864 (0x360), region = 44 }
 0x31c   : > { %v6345_v63 = vpop.eup %6344  ;;  %4341 = vst.msk [vmem:[%s6736_s10 + $0xfc] sm:$0xf] %vm4277_vm4, %v4084_v34  ;;  %v4212_v0 = vpack.c.bf16 %v6343_v24, %v6343_v24 }
 0x31d   : > { %4405 = vst.msk [vmem:[%s6736_s10 + $0x1fc] sm:$0xf] %vm4277_vm4, %v4148_v12  ;;  %v4276_v57 = vpack.c.bf16 %v6345_v63, %v6345_v63 }
 0x31e   : > { %4469 = vst.msk [vmem:[%s6736_s10 + $0x2fc] sm:$0xf] %vm4277_vm4, %v4212_v0 }
 0x31f   : > { %4533 = vst.msk [vmem:[%s6736_s10 + $0x3fc] sm:$0xf] %vm4277_vm4, %v4276_v57 }
 0x320   : > { %s9131_s29 = smov (!%p4543_p9, %s4542_s29), 256 }
 0x321   : > { %s5577_s7 = sshll.u32 %s9131_s29, 2 }
 0x322   : > { %p5580_p10 = scmp.eq.s32.totalorder %s5577_s7, 0 }
 0x323   : > { %s8980_s8 = sshrl.u32 (!%p5580_p10), %s9131_s29, 5 }
 0x324   : > { %4552 = sbr.rel (%p5580_p10) target bundleno = 864 (0x360), region = 48  ;;  %p5581_p11 = scmp.le.s32.totalorder (!%p5580_p10), %s8980_s8, 0 }
 0x329   : > { %4848 = sbr.rel (%p5581_p11) target bundleno = 847 (0x34f), region = 126  ;;  %s9119_s14 = smov (!%p5581_p11), %s8974_s6 }
 0x32a   : > { %s9120_s20 = smov (!%p5581_p11), %s6736_s10  ;;  %s8989_s27 = smov (!%p5581_p11), 0  }
 0x32b   : > { %s8991_s9 = smov (!%p5581_p11), 0  }
 0x32e LB: >> { %v4569_v56 = vld [vmem:[%s6429_s20] sm:$0xf]  ;;  %v4571_v9 = vld [vmem:[%s6429_s20 + $0x4] sm:$0xf]  ;;  %v4573_v52 = vld [vmem:[%s6429_s20 + $0x8] sm:$0xf]  ;;  %s6437_s9 = sphi %s8991_s9, %s4563_s9   ;;  %s6433_s27 = sphi %s8989_s27, %s9123_s27   ;;  %s6429_s20 = sphi %s9120_s20, %s9122_s20   ;;  %s6425_s14 = sphi %s9119_s14, %s9121_s14  }
 0x32f   : >> { %4570 = vst [vmem:[%s6425_s14] sm:$0xf] %v4569_v56  ;;  %v4575_v32 = vld [vmem:[%s6429_s20 + $0xc] sm:$0xf]  ;;  %v4577_v40 = vld [vmem:[%s6429_s20 + $0x10] sm:$0xf]  ;;  %s4633_s11 = sadd.s32 1, %s6433_s27 }
 0x330   : >> { %4572 = vst [vmem:[%s6425_s14 + $0x4] sm:$0xf] %v4571_v9  ;;  %v4579_v55 = vld [vmem:[%s6429_s20 + $0x14] sm:$0xf]  ;;  %v4581_v62 = vld [vmem:[%s6429_s20 + $0x18] sm:$0xf]  ;;  %p4634_p12 = scmp.ge.s32.totalorder %s4633_s11, %s8980_s8 }
 0x331   : >> { %4574 = vst [vmem:[%s6425_s14 + $0x8] sm:$0xf] %v4573_v52  ;;  %v4583_v3 = vld [vmem:[%s6429_s20 + $0x1c] sm:$0xf]  ;;  %v4585_v35 = vld [vmem:[%s6429_s20 + $0x20] sm:$0xf] }
 0x332   : >> { %4576 = vst [vmem:[%s6425_s14 + $0xc] sm:$0xf] %v4575_v32  ;;  %v4587_v50 = vld [vmem:[%s6429_s20 + $0x24] sm:$0xf]  ;;  %v4589_v17 = vld [vmem:[%s6429_s20 + $0x28] sm:$0xf] }
 0x333   : >> { %4578 = vst [vmem:[%s6425_s14 + $0x10] sm:$0xf] %v4577_v40  ;;  %v4591_v27 = vld [vmem:[%s6429_s20 + $0x2c] sm:$0xf]  ;;  %v4593_v5 = vld [vmem:[%s6429_s20 + $0x30] sm:$0xf] }
 0x334   : >> { %4580 = vst [vmem:[%s6425_s14 + $0x14] sm:$0xf] %v4579_v55  ;;  %v4595_v29 = vld [vmem:[%s6429_s20 + $0x34] sm:$0xf]  ;;  %v4597_v7 = vld [vmem:[%s6429_s20 + $0x38] sm:$0xf] }
 0x335   : >> { %4582 = vst [vmem:[%s6425_s14 + $0x18] sm:$0xf] %v4581_v62  ;;  %v4599_v10 = vld [vmem:[%s6429_s20 + $0x3c] sm:$0xf]  ;;  %v4601_v22 = vld [vmem:[%s6429_s20 + $0x40] sm:$0xf] }
 0x336   : >> { %4584 = vst [vmem:[%s6425_s14 + $0x1c] sm:$0xf] %v4583_v3  ;;  %v4603_v6 = vld [vmem:[%s6429_s20 + $0x44] sm:$0xf]  ;;  %s9133_s11 = smov (%p4634_p12, %s4633_s11), 0  ;;  %s4563_s9 = sadd.s32 1, %s6437_s9  }
 0x337   : >> { %4586 = vst [vmem:[%s6425_s14 + $0x20] sm:$0xf] %v4585_v35  ;;  %v4605_v20 = vld [vmem:[%s6429_s20 + $0x48] sm:$0xf]  ;;  %v4607_v39 = vld [vmem:[%s6429_s20 + $0x4c] sm:$0xf]  ;;  %p4562_p13 = scmp.ge.s32.totalorder %s4563_s9, %s8980_s8  ;;  %s9123_s27 = smov %s9133_s11 }
 0x338   : >> { %4588 = vst [vmem:[%s6425_s14 + $0x24] sm:$0xf] %v4587_v50  ;;  %s5582_s12 = sshll.u32 %s9133_s11, 7  ;;  %v4609_v8 = vld [vmem:[%s6429_s20 + $0x50] sm:$0xf] }
 0x339   : >> { %4590 = vst [vmem:[%s6425_s14 + $0x28] sm:$0xf] %v4589_v17  ;;  %s9050_s17 = scalar_lea.vmem %s6736_s10, %s5582_s12 [#allocation3]   ;;  %s4639_s19 = scalar_lea.vmem %s8974_s6, %s5582_s12   ;;  %v4611_v42 = vld [vmem:[%s6429_s20 + $0x54] sm:$0xf]  ;;  %v4613_v13 = vld [vmem:[%s6429_s20 + $0x58] sm:$0xf] }
 0x33a   : >> { %4592 = vst [vmem:[%s6425_s14 + $0x2c] sm:$0xf] %v4591_v27  ;;  %v4615_v11 = vld [vmem:[%s6429_s20 + $0x5c] sm:$0xf]  ;;  %v4617_v43 = vld [vmem:[%s6429_s20 + $0x60] sm:$0xf] }
 0x33b   : >> { %4594 = vst [vmem:[%s6425_s14 + $0x30] sm:$0xf] %v4593_v5  ;;  %v4619_v31 = vld [vmem:[%s6429_s20 + $0x64] sm:$0xf]  ;;  %v4621_v18 = vld [vmem:[%s6429_s20 + $0x68] sm:$0xf] }
 0x33c   : >> { %4596 = vst [vmem:[%s6425_s14 + $0x34] sm:$0xf] %v4595_v29  ;;  %v4623_v37 = vld [vmem:[%s6429_s20 + $0x6c] sm:$0xf]  ;;  %v4625_v25 = vld [vmem:[%s6429_s20 + $0x70] sm:$0xf] }
 0x33d   : >> { %4598 = vst [vmem:[%s6425_s14 + $0x38] sm:$0xf] %v4597_v7  ;;  %v4627_v46 = vld [vmem:[%s6429_s20 + $0x74] sm:$0xf]  ;;  %v4629_v14 = vld [vmem:[%s6429_s20 + $0x78] sm:$0xf] }
 0x33e   : >> { %4600 = vst [vmem:[%s6425_s14 + $0x3c] sm:$0xf] %v4599_v10  ;;  %v4631_v44 = vld [vmem:[%s6429_s20 + $0x7c] sm:$0xf]  ;;  %s9122_s20 = smov %s9050_s17 }
 0x33f   : >> { %4602 = vst [vmem:[%s6425_s14 + $0x40] sm:$0xf] %v4601_v22 }
 0x340   : >> { %4604 = vst [vmem:[%s6425_s14 + $0x44] sm:$0xf] %v4603_v6 }
 0x341   : >> { %4606 = vst [vmem:[%s6425_s14 + $0x48] sm:$0xf] %v4605_v20 }
 0x342   : >> { %4608 = vst [vmem:[%s6425_s14 + $0x4c] sm:$0xf] %v4607_v39 }
 0x343   : >> { %4610 = vst [vmem:[%s6425_s14 + $0x50] sm:$0xf] %v4609_v8 }
 0x344   : >> { %4612 = vst [vmem:[%s6425_s14 + $0x54] sm:$0xf] %v4611_v42 }
 0x345   : >> { %4614 = vst [vmem:[%s6425_s14 + $0x58] sm:$0xf] %v4613_v13 }
 0x346   : >> { %4616 = vst [vmem:[%s6425_s14 + $0x5c] sm:$0xf] %v4615_v11 }
 0x347   : >> { %4618 = vst [vmem:[%s6425_s14 + $0x60] sm:$0xf] %v4617_v43 }
 0x348   : >> { %4620 = vst [vmem:[%s6425_s14 + $0x64] sm:$0xf] %v4619_v31 }
 0x349   : >> { %4622 = vst [vmem:[%s6425_s14 + $0x68] sm:$0xf] %v4621_v18 }
 0x34a   : >> { %4624 = vst [vmem:[%s6425_s14 + $0x6c] sm:$0xf] %v4623_v37  ;;  %4565 = sbr.rel (!%p4562_p13) target bundleno = 814 (0x32e), region = 132 }
 0x34b   : >> { %4626 = vst [vmem:[%s6425_s14 + $0x70] sm:$0xf] %v4625_v25 }
 0x34c   : >> { %4628 = vst [vmem:[%s6425_s14 + $0x74] sm:$0xf] %v4627_v46 }
 0x34d   : >> { %4630 = vst [vmem:[%s6425_s14 + $0x78] sm:$0xf] %v4629_v14 }
 0x34e   : >> { %4632 = vst [vmem:[%s6425_s14 + $0x7c] sm:$0xf] %v4631_v44  ;;  %s9121_s14 = smov %s4639_s19 }
 0x34f PF: > { %s9091_s21 = sand.u32 31, %s9131_s29   ;;  %s5722_s23 = sshll.u32 %s8980_s8, 7 }
 0x350   : > { %s4644_s24 = scalar_lea.vmem %s6736_s10, %s5722_s23 [#allocation3]   ;;  %s4646_s25 = scalar_lea.vmem %s8974_s6, %s5722_s23  }
 0x351   : > { %p5587_p0 = scmp.le.s32.totalorder %s9091_s21, 0 }
 0x352   : > { %s6439_s26 = smov (!%p5587_p0), %s4646_s25   ;;  %s6443_s28 = smov (!%p5587_p0), %s4644_s24  }
 0x353   : > { %4862 = sbr.rel (%p5587_p0) target bundleno = 864 (0x360), region = 137  ;;  %s6447_s30 = smov (!%p5587_p0), 0  }
 0x354   : > { %s6451_s4 = smov (!%p5587_p0), 0  }
 0x358 LB: >> { %v4656_v45 = vld [vmem:[%s6445_s28] sm:$0xf]  ;;  %s4658_s29 = sadd.s32 1, %s6449_s30  ;;  %s4650_s4 = sadd.s32 1, %s6453_s4   ;;  %s6453_s4 = sphi %s6451_s4, %s4650_s4   ;;  %s6449_s30 = sphi %s6447_s30, %s6448_s30   ;;  %s6445_s28 = sphi %s6443_s28, %s4663_s28   ;;  %s6441_s26 = sphi %s6439_s26, %s4664_s26  }
 0x359   : >> { %4657 = vst [vmem:[%s6441_s26] sm:$0xf] %v4656_v45  ;;  %p4659_p1 = scmp.ge.s32.totalorder %s4658_s29, %s9091_s21  ;;  %p4649_p2 = scmp.ge.s32.totalorder %s4650_s4, %s9091_s21 }
 0x35b   : >> { %s9135_s29 = smov (%p4659_p1, %s4658_s29), 0  ;;  %4652 = sbr.rel (!%p4649_p2) target bundleno = 856 (0x358), region = 143 }
 0x35c   : >> { %s5588_s10 = sshll.u32 %s9135_s29, 2  ;;  %s6448_s30 = smov %s9135_s29  }
 0x35d   : >> { %s4663_s28 = scalar_lea.vmem %s4644_s24, %s5588_s10 [#allocation3]   ;;  %s4664_s26 = scalar_lea.vmem %s4646_s25, %s5588_s10  }
 0x360 PF: > { %s13_s16 = sadd.s32 1, %s6421_s16   ;;  %s9124_s12 = smov %s6409_s13 }
 0x361   : > { %p10_p3 = scmp.ge.s32.totalorder %s13_s16, 26   ;;  %s9125_s13 = smov %s6518_s22 }
 0x362   : > { %s9126_s14 = smov %s6417_s15  ;;  %s9127_s15 = smov %s9129_s18 }
 0x363   :  { %12 = sbr.rel (!%p10_p3) target bundleno = 3 (0x3), region = 154 }

</bundles_post_ra>
